<compile_context>
chip_gen: v7x
topology: tpu7x:2x2x1
jax: 0.10.0
libtpu: 0.0.40
codegen_flags: <defaults>
</compile_context>

<pallas_src>
import math
from functools import partial

import jax
import jax.numpy as jnp
from jax import lax
from jax.experimental import pallas as pl
from jax.experimental.pallas import tpu as pltpu

LEAKY_SLOPE = 0.01  # torch.nn.LeakyReLU default negative slope


def _leaky(x):
    return jnp.where(x >= 0, x, LEAKY_SLOPE * x)


def _rup(n, m):
    return ((n + m - 1) // m) * m


# ---------------------------------------------------------------------------
# Fused conv-as-matmul Pallas kernel (transposed / lane-dense formulation)
# ---------------------------------------------------------------------------
def _fused_mm_kernel(*refs, has_prologue, has_bias, act_mid, use_bn, act_out,
                     has_add, logsm_n):
    it = iter(refs)
    a_ref = next(it)                       # (Cout_p, Kp)        bf16 weights
    b_ref = next(it)                       # (Kp, TILE_M)        bf16 (or f32 w/ prologue)
    if has_prologue:
        si_ref = next(it)                  # (Kp, 1) f32  BN scale on input channels
        ti_ref = next(it)                  # (Kp, 1) f32  BN shift on input channels
    if has_bias:
        bias_ref = next(it)                # (Cout_p, 1) f32
    if use_bn:
        sc_ref = next(it)                  # (Cout_p, 1) f32
        sh_ref = next(it)                  # (Cout_p, 1) f32
    if has_add:
        add_ref = next(it)                 # (Cout_p, TILE_M) f32 residual
    o_ref = next(it)                       # (Cout_p, TILE_M) f32

    b = b_ref[...]
    if has_prologue:
        # BatchNorm (eval) + LeakyReLU on the input activations, then cast for MXU.
        b = _leaky(b * si_ref[...] + ti_ref[...]).astype(jnp.bfloat16)

    y = jnp.dot(a_ref[...], b, preferred_element_type=jnp.float32)

    if has_bias:
        y = y + bias_ref[...]
    if act_mid:
        y = _leaky(y)
    if use_bn:
        y = y * sc_ref[...] + sh_ref[...]
    if act_out:
        y = _leaky(y)
    if has_add:
        y = y + add_ref[...]
    if logsm_n is not None:
        # log-softmax over the (padded) class axis; mask the padded rows.
        rows = lax.broadcasted_iota(jnp.int32, y.shape, 0)
        y = jnp.where(rows < logsm_n, y, -1e30)
        m = jnp.max(y, axis=0, keepdims=True)
        z = y - m
        lse = jnp.log(jnp.sum(jnp.exp(z), axis=0, keepdims=True))
        y = z - lse
    o_ref[...] = y


def _choose_tile(M, max_tile=512):
    Mp = _rup(M, 128)
    if Mp <= max_tile:
        return Mp, Mp
    Mp = _rup(M, max_tile)
    return Mp, max_tile


def conv_mm(prep, x_flat, *, act_mid=False, act_out=False, use_bn=False,
            use_prologue=False, add=None, logsm_n=None):
    """out^T = W @ patches^T with fused bias / LeakyReLU / BN / residual / log-softmax.

    prep   : prepared weight dict (padded bf16 'A', padded bias/scale/shift).
    x_flat : (K, M) f32 patches (channel-major); M = B*H*W lives on lanes.
    add    : optional residual, already in padded (Cout_p, Mp) layout.
    Returns the padded (Cout_p, Mp) f32 result.
    """
    Cout_p, Kp = prep['Cout_p'], prep['Kp']
    K, M = x_flat.shape
    assert K == prep['K'], (K, prep['K'])
    Mp, TILE_M = _choose_tile(M)
    nt = Mp // TILE_M

    if use_prologue:
        # keep f32: BN+LeakyReLU prologue runs in f32 inside the kernel.
        b_op = jnp.zeros((Kp, Mp), jnp.float32).at[:K, :M].set(x_flat)
    else:
        b_op = jnp.zeros((Kp, Mp), jnp.bfloat16).at[:K, :M].set(
            x_flat.astype(jnp.bfloat16))

    args = [prep['A'], b_op]
    in_specs = [pl.BlockSpec((Cout_p, Kp), lambda i: (0, 0)),
                pl.BlockSpec((Kp, TILE_M), lambda i: (0, i))]

    if use_prologue:
        args += [prep['in_scale'], prep['in_shift']]
        in_specs += [pl.BlockSpec((Kp, 1), lambda i: (0, 0)),
                     pl.BlockSpec((Kp, 1), lambda i: (0, 0))]
    has_bias = prep['bias'] is not None
    if has_bias:
        args.append(prep['bias'])
        in_specs.append(pl.BlockSpec((Cout_p, 1), lambda i: (0, 0)))
    if use_bn:
        args += [prep['scale'], prep['shift']]
        in_specs += [pl.BlockSpec((Cout_p, 1), lambda i: (0, 0)),
                     pl.BlockSpec((Cout_p, 1), lambda i: (0, 0))]
    has_add = add is not None
    if has_add:
        assert add.shape == (Cout_p, Mp), (add.shape, (Cout_p, Mp))
        args.append(add)
        in_specs.append(pl.BlockSpec((Cout_p, TILE_M), lambda i: (0, i)))

    kernel = partial(_fused_mm_kernel, has_prologue=use_prologue,
                     has_bias=has_bias, act_mid=act_mid, use_bn=use_bn,
                     act_out=act_out, has_add=has_add, logsm_n=logsm_n)

    return pl.pallas_call(
        kernel,
        grid=(nt,),
        in_specs=in_specs,
        out_specs=pl.BlockSpec((Cout_p, TILE_M), lambda i: (0, i)),
        out_shape=jax.ShapeDtypeStruct((Cout_p, Mp), jnp.float32),
        compiler_params=pltpu.CompilerParams(
            dimension_semantics=("parallel",),
            vmem_limit_bytes=32 * 1024 * 1024),
    )(*args)


# ---------------------------------------------------------------------------
# MaxPool2d((1, pool)) — one contiguous block, single-pass lane reduction
# ---------------------------------------------------------------------------
def _maxpool_kernel(x_ref, o_ref):
    o_ref[...] = jnp.max(x_ref[...], axis=-1, keepdims=True)


def maxpool_w_cf(x, pool):
    """x: (C, B, H, W) channel-major; pool over the (last) time axis."""
    C, B, H, W = x.shape
    Wout = W // pool
    x = x[..., :Wout * pool]
    R = C * B * H * Wout
    Rp = _rup(R, 8)
    x2 = x.reshape(R, pool)                 # free reshape (row-major split)
    if Rp != R:
        x2 = jnp.concatenate([x2, jnp.zeros((Rp - R, pool), x2.dtype)], axis=0)
    out = pl.pallas_call(
        _maxpool_kernel,
        grid=(1,),
        in_specs=[pl.BlockSpec((Rp, pool), lambda i: (0, 0))],
        out_specs=pl.BlockSpec((Rp, 1), lambda i: (0, 0)),
        out_shape=jax.ShapeDtypeStruct((Rp, 1), jnp.float32),
    )(x2)
    return out[:R, 0].reshape(C, B, H, Wout)


# ---------------------------------------------------------------------------
# Glue: channel-major im2col (plain JAX)
# TODO(synk): im2col patch construction still materializes K-times-expanded
# patch tensors in HBM; fusing the tap shifts into the kernel is future work.
# ---------------------------------------------------------------------------
def _im2col_w_cf(x, kw, dil, pad):
    """Patches for a (1, kw) dilated kernel.  x: (C, B, H, W)."""
    C, B, H, W = x.shape
    Wout = W + 2 * pad - dil * (kw - 1)
    xp = jnp.pad(x, ((0, 0), (0, 0), (0, 0), (pad, pad)))
    cols = jnp.stack([xp[:, :, :, k * dil:k * dil + Wout] for k in range(kw)],
                     axis=1)                               # (C, kw, B, H, Wout)
    return cols.reshape(C * kw, B * H * Wout), (B, H, Wout)


def _im2col_h_cf(x, kh, pad):
    """Patches for a (kh, 1) kernel.  x: (C, B, H, W)."""
    C, B, H, W = x.shape
    Hout = H + 2 * pad - (kh - 1)
    xp = jnp.pad(x, ((0, 0), (0, 0), (pad, pad), (0, 0)))
    rows = jnp.stack([xp[:, :, k:k + Hout, :] for k in range(kh)],
                     axis=1)                               # (C, kh, B, Hout, W)
    return rows.reshape(C * kh, B * Hout * W), (B, Hout, W)


# ---------------------------------------------------------------------------
# One-time parameter preparation: pad, transpose, bf16-cast weights; fold BN.
# ---------------------------------------------------------------------------
def _bn_scale_shift(bn, eps=1e-5):
    gamma, beta, mean, var = bn
    s = gamma / jnp.sqrt(var + eps)
    return s, beta - mean * s


def _pad_col(v, n):
    v = v.reshape(-1).astype(jnp.float32)
    return jnp.zeros((n, 1), jnp.float32).at[:v.shape[0], 0].set(v)


def _prep_conv(w, b=None):
    Cout = w.shape[0]
    A = w.reshape(Cout, -1).astype(jnp.float32)
    K = A.shape[1]
    Cout_p, Kp = _rup(Cout, 16), _rup(K, 128)
    A_p = (jnp.zeros((Cout_p, Kp), jnp.float32).at[:Cout, :K].set(A)
           .astype(jnp.bfloat16))
    d = {'A': A_p, 'Cout': Cout, 'K': K, 'Cout_p': Cout_p, 'Kp': Kp, 'bias': None}
    if b is not None:
        d['bias'] = _pad_col(b, Cout_p)
    return d


def prepare_params(params):
    # NOTE: weight_norm is identity for this (synthetic) init; trained PyTorch
    # weights would need g * v / ||v|| applied before this step.
    pp = {'temporal': [_prep_conv(w, b) for (w, b) in params['temporal']],
          'temp_res': _prep_conv(*params['temp_res'])}
    dense = []
    for p in params['dense']:
        c1 = _prep_conv(*p['conv1'])
        s1, t1 = _bn_scale_shift(p['bn1'])
        c1['in_scale'] = _pad_col(s1, c1['Kp'])
        c1['in_shift'] = _pad_col(t1, c1['Kp'])
        s2, t2 = _bn_scale_shift(p['bn2'])
        c1['scale'] = _pad_col(s2, c1['Cout_p'])
        c1['shift'] = _pad_col(t2, c1['Cout_p'])
        dense.append({'conv1': c1, 'conv5': _prep_conv(*p['conv5'])})
    pp['dense'] = dense
    cc = _prep_conv(params['collapse_w'], None)
    sc, tc = _bn_scale_shift(params['collapse_bn'])
    cc['scale'] = _pad_col(sc, cc['Cout_p'])
    cc['shift'] = _pad_col(tc, cc['Cout_p'])
    pp['collapse'] = cc
    pp['classifier'] = _prep_conv(*params['classifier'])
    return pp


# ---------------------------------------------------------------------------
# TIDNet forward (eval mode), channel-major activations
# ---------------------------------------------------------------------------
def tidnet_forward(x, pp, cfg):
    # x: (batch, in_chans, input_window_samples)
    B = x.shape[0]
    chans = cfg['in_chans']
    T = x.shape[-1]
    F = cfg['t_filters']
    tl, depth = cfg['temp_len'], cfg['temp_layers']

    # Ensure4d + permute -> (B,1,chans,T); we carry CBHW: (1, B, chans, T)
    h = x[None].astype(jnp.float32)

    # ---- _TemporalFilter (residual='netwise') ------------------------------
    net = h
    net_flat = None
    for i, prep in enumerate(pp['temporal']):
        dil = depth - i
        pad = dil * (tl - 1) // 2
        patches, dims = _im2col_w_cf(net, tl, dil, pad)
        net_flat = conv_mm(prep, patches, act_mid=True)        # conv + LeakyReLU
        net = net_flat[:F, :patches.shape[1]].reshape(F, *dims)
        # Dropout2d: identity in eval mode
    # residual 1x1 conv on the original input, fused with the residual add
    res_patches = h.reshape(1, -1)                             # (1, B*chans*T)
    out_p = conv_mm(pp['temp_res'], res_patches, add=net_flat)
    temporal = out_p[:F, :res_patches.shape[1]].reshape(F, B, chans, T)

    # ---- MaxPool2d((1, pooling)) + Dropout2d(identity) ---------------------
    feat = maxpool_w_cf(temporal, cfg['pooling'])              # (F, B, chans, T//pool)

    # ---- _DenseSpatialFilter ------------------------------------------------
    for layer in pp['dense']:
        C0, Bb, H0, W0 = feat.shape
        c1, c5 = layer['conv1'], layer['conv5']
        # BN1 + LeakyReLU fused as prologue; conv1x1 + bias; BN2 affine + LeakyReLU
        y2_p = conv_mm(c1, feat.reshape(C0, -1),
                       use_prologue=True, use_bn=True, act_out=True)
        cb = c1['Cout']
        y2 = y2_p[:cb, :Bb * H0 * W0].reshape(cb, Bb, H0, W0)
        # (5,1) conv, padding (2,0), bias; Dropout2d identity
        patches, dims = _im2col_h_cf(y2, 5, 2)
        y3_p = conv_mm(c5, patches)
        growth = c5['Cout']
        y3 = y3_p[:growth, :patches.shape[1]].reshape(growth, *dims)
        feat = jnp.concatenate([feat, y3], axis=0)             # dense concat (channel axis)

    # channel collapse: conv (no bias) -> LeakyReLU -> BN
    cc = pp['collapse']
    n_filt = cc['Cout']
    patches, dims = _im2col_h_cf(feat, chans, 0)               # Hout == 1
    yc_p = conv_mm(cc, patches, act_mid=True, use_bn=True)
    Bc, Hc, Wc = dims
    yc = yc_p[:n_filt, :patches.shape[1]].reshape(n_filt, Bc, Hc, Wc)[:, :, 0, :]

    # ---- extract_features: AdaptiveAvgPool1d(summary) + Flatten -------------
    summary = cfg['summary']
    L = yc.shape[-1]
    if summary != L:
        # TODO(synk): general adaptive-average-pool kept in plain JAX
        # (identity in this configuration).
        cols = []
        for i in range(summary):
            s = (i * L) // summary
            e = -((-(i + 1) * L) // summary)
            cols.append(jnp.mean(yc[..., s:e], axis=-1))
        yc = jnp.stack(cols, axis=-1)

    # PyTorch flatten ordering: feature index = c*summary + s  (B on lanes)
    featT = yc.transpose(0, 2, 1).reshape(n_filt * summary, B)

    # ---- classifier: Linear + LogSoftmax (fused) -----------------------------
    logits_p = conv_mm(pp['classifier'], featT, logsm_n=cfg['n_classes'])
    return logits_p[:cfg['n_classes'], :B].T                   # (B, n_classes)


# ---------------------------------------------------------------------------
# Deterministic parameter initialisation (synthetic; matches module shapes)
# ---------------------------------------------------------------------------
def init_params(key, cfg):
    kit = iter(jax.random.split(key, 128))

    def nrm(shape, scale):
        return (scale * jax.random.normal(next(kit), shape)).astype(jnp.float32)

    def conv(cout, cin, kh, kw, bias=True):
        fan_in = cin * kh * kw
        w = nrm((cout, cin, kh, kw), 1.0 / math.sqrt(fan_in))
        b = nrm((cout,), 1.0 / math.sqrt(fan_in)) if bias else None
        return w, b

    def bn(c):
        return (1.0 + nrm((c,), 0.1),            # gamma
                nrm((c,), 0.1),                  # beta
                nrm((c,), 0.1),                  # running_mean
                1.0 + jnp.abs(nrm((c,), 0.1)))   # running_var

    F, tl = cfg['t_filters'], cfg['temp_len']
    temporal, cin = [], 1
    for _ in range(cfg['temp_layers']):
        temporal.append(conv(F, cin, 1, tl))
        cin = F
    temp_res = conv(F, 1, 1, 1)

    dense = []
    for d in range(cfg['spat_layers']):
        in_feat = F + cfg['s_growth'] * d
        cb = cfg['bottleneck'] * cfg['s_growth']
        dense.append({'bn1': bn(in_feat),
                      'conv1': conv(cb, in_feat, 1, 1),
                      'bn2': bn(cb),
                      'conv5': conv(cfg['s_growth'], cb, 5, 1)})

    n_filt = F + cfg['s_growth'] * cfg['spat_layers']
    collapse_w, _ = conv(n_filt, n_filt, cfg['in_chans'], 1, bias=False)
    collapse_bn = bn(n_filt)

    num_features = n_filt * cfg['summary']
    std = math.sqrt(2.0 / (num_features + cfg['n_classes']))   # xavier_normal_
    wl = nrm((cfg['n_classes'], num_features), std)
    bl = jnp.zeros((cfg['n_classes'],), jnp.float32)

    return {'temporal': temporal, 'temp_res': temp_res, 'dense': dense,
            'collapse_w': collapse_w, 'collapse_bn': collapse_bn,
            'classifier': (wl, bl)}


if __name__ == "__main__":
    cfg = dict(in_chans=4, n_classes=3, input_window_samples=64, s_growth=8,
               t_filters=16, pooling=4, temp_layers=2, spat_layers=2,
               temp_span=0.1, bottleneck=2)
    tl = math.ceil(cfg['temp_span'] * cfg['input_window_samples'])
    cfg['temp_len'] = tl + 1 - tl % 2                       # made odd inside _TemporalFilter
    cfg['summary'] = cfg['input_window_samples'] // cfg['pooling']   # summary == -1 case

    key = jax.random.PRNGKey(0)
    kx, kp = jax.random.split(key)
    x = jax.random.normal(kx, (2, cfg['in_chans'], cfg['input_window_samples']),
                          jnp.float32)
    params = init_params(kp, cfg)
    pp = prepare_params(params)       # one-time pad/transpose/bf16-cast of weights

    fwd = jax.jit(lambda xx: tidnet_forward(xx, pp, cfg))
    out = jax.block_until_ready(fwd(x))

    assert out.shape == (2, cfg['n_classes']), out.shape
    assert bool(jnp.all(jnp.isfinite(out)))
    # rows of a log-softmax must exponentiate-sum to 1
    assert bool(jnp.allclose(jnp.sum(jnp.exp(out), axis=-1), 1.0, atol=1e-4))
    print("KERNEL_OK")
</pallas_src>

<mosaic_0001>
module attributes {stable_mosaic.version = 11 : i64} {
  func.func @_fused_mm_kernel(%arg0: i32, %arg1: memref<16x128xbf16, #tpu.memory_space<vmem>>, %arg2: memref<128x512xbf16, #tpu.memory_space<vmem>>, %arg3: memref<16x1xf32, #tpu.memory_space<vmem>>, %arg4: memref<16x512xf32, #tpu.memory_space<vmem>>) attributes {dimension_semantics = [#tpu.dimension_semantics<parallel>], iteration_bounds = array<i64: 1>, scalar_prefetch = 0 : i64, scratch_operands = 0 : i64, tpu.core_type = #tpu.core_type<tc>, window_params = [{pipeline_mode = #tpu.pipeline_mode<synchronous>, transform_indices = @transform_0, window_bounds = array<i64: 16, 128>}, {transform_indices = @transform_1, window_bounds = array<i64: 128, 512>}, {pipeline_mode = #tpu.pipeline_mode<synchronous>, transform_indices = @transform_2, window_bounds = array<i64: 16, 1>}, {transform_indices = @transform_3, window_bounds = array<i64: 16, 512>}]} {
    %c0 = arith.constant 0 : index
    %c0_0 = arith.constant 0 : index
    %0 = vector.load %arg2[%c0, %c0_0] : memref<128x512xbf16, #tpu.memory_space<vmem>>, vector<128x512xbf16>
    %c0_1 = arith.constant 0 : index
    %c0_2 = arith.constant 0 : index
    %1 = vector.load %arg1[%c0_1, %c0_2] : memref<16x128xbf16, #tpu.memory_space<vmem>>, vector<16x128xbf16>
    %cst = arith.constant dense<0.000000e+00> : vector<16x512xf32>
    %2 = tpu.matmul %1, %0, %cst {dimension_numbers = #tpu.dot_dimension_numbers<[1], [0], [0], [1], [0, 0, 1, 1], [], []>} : vector<16x128xbf16>, vector<128x512xbf16>, vector<16x512xf32> -> vector<16x512xf32>
    %c0_3 = arith.constant 0 : index
    %c0_4 = arith.constant 0 : index
    %3 = vector.load %arg3[%c0_3, %c0_4] : memref<16x1xf32, #tpu.memory_space<vmem>>, vector<16x1xf32>
    %4 = vector.broadcast %3 : vector<16x1xf32> to vector<16x512xf32>
    %5 = arith.addf %2, %4 : vector<16x512xf32>
    %cst_5 = arith.constant 0.000000e+00 : f32
    %6 = vector.broadcast %cst_5 : f32 to vector<16x512xf32>
    %7 = arith.cmpf oge, %5, %6 : vector<16x512xf32>
    %cst_6 = arith.constant 0.00999999977 : f32
    %8 = vector.broadcast %cst_6 : f32 to vector<16x512xf32>
    %9 = arith.mulf %8, %5 : vector<16x512xf32>
    %10 = arith.select %7, %5, %9 : vector<16x512xi1>, vector<16x512xf32>
    %c0_7 = arith.constant 0 : index
    %c0_8 = arith.constant 0 : index
    %11 = vector.load %arg4[%c0_7, %c0_8] : memref<16x512xf32, #tpu.memory_space<vmem>>, vector<16x512xf32>
    tpu.vector_store %arg4[%c0_7, %c0_8], %10 {strides = array<i32>} : memref<16x512xf32, #tpu.memory_space<vmem>>, vector<16x512xf32>,
    return
  }
  func.func @transform_0(%arg0: i32) -> (i32, i32) {
    %c0_i32 = arith.constant 0 : i32
    %c0_i32_0 = arith.constant 0 : i32
    %c0_i32_1 = arith.constant 0 : i32
    return %c0_i32, %c0_i32_0 : i32, i32
  }
  func.func @transform_1(%arg0: i32) -> (i32, i32) {
    %c0_i32 = arith.constant 0 : i32
    %c0_i32_0 = arith.constant 0 : i32
    return %c0_i32, %arg0 : i32, i32
  }
  func.func @transform_2(%arg0: i32) -> (i32, i32) {
    %c0_i32 = arith.constant 0 : i32
    %c0_i32_0 = arith.constant 0 : i32
    %c0_i32_1 = arith.constant 0 : i32
    return %c0_i32, %c0_i32_0 : i32, i32
  }
  func.func @transform_3(%arg0: i32) -> (i32, i32) {
    %c0_i32 = arith.constant 0 : i32
    %c0_i32_0 = arith.constant 0 : i32
    return %c0_i32, %arg0 : i32, i32
  }
}

module attributes {stable_mosaic.version = 11 : i64} {
  func.func @_maxpool_kernel(%arg0: i32, %arg1: memref<2048x4xf32, #tpu.memory_space<vmem>>, %arg2: memref<2048x1xf32, #tpu.memory_space<vmem>>) attributes {dimension_semantics = [#tpu.dimension_semantics<arbitrary>], iteration_bounds = array<i64: 1>, scalar_prefetch = 0 : i64, scratch_operands = 0 : i64, tpu.core_type = #tpu.core_type<tc>, window_params = [{pipeline_mode = #tpu.pipeline_mode<synchronous>, transform_indices = @transform_0, window_bounds = array<i64: 2048, 4>}, {pipeline_mode = #tpu.pipeline_mode<synchronous>, transform_indices = @transform_1, window_bounds = array<i64: 2048, 1>}]} {
    %c0 = arith.constant 0 : index
    %c0_0 = arith.constant 0 : index
    %0 = vector.load %arg1[%c0, %c0_0] : memref<2048x4xf32, #tpu.memory_space<vmem>>, vector<2048x4xf32>
    %cst = arith.constant dense<0xFF800000> : vector<2048xf32>
    %1 = vector.multi_reduction <maximumf>, %0, %cst [1] : vector<2048x4xf32> to vector<2048xf32>
    %2 = vector.shape_cast %1 : vector<2048xf32> to vector<2048x1xf32>
    %c0_1 = arith.constant 0 : index
    %c0_2 = arith.constant 0 : index
    %3 = vector.load %arg2[%c0_1, %c0_2] : memref<2048x1xf32, #tpu.memory_space<vmem>>, vector<2048x1xf32>
    tpu.vector_store %arg2[%c0_1, %c0_2], %2 {strides = array<i32>} : memref<2048x1xf32, #tpu.memory_space<vmem>>, vector<2048x1xf32>,
    return
  }
  func.func @transform_0(%arg0: i32) -> (i32, i32) {
    %c0_i32 = arith.constant 0 : i32
    %c0_i32_0 = arith.constant 0 : i32
    %c0_i32_1 = arith.constant 0 : i32
    return %c0_i32, %c0_i32_0 : i32, i32
  }
  func.func @transform_1(%arg0: i32) -> (i32, i32) {
    %c0_i32 = arith.constant 0 : i32
    %c0_i32_0 = arith.constant 0 : i32
    %c0_i32_1 = arith.constant 0 : i32
    return %c0_i32, %c0_i32_0 : i32, i32
  }
}

module attributes {stable_mosaic.version = 11 : i64} {
  func.func @_fused_mm_kernel(%arg0: i32, %arg1: memref<16x128xbf16, #tpu.memory_space<vmem>>, %arg2: memref<128x512xbf16, #tpu.memory_space<vmem>>, %arg3: memref<16x1xf32, #tpu.memory_space<vmem>>, %arg4: memref<16x512xf32, #tpu.memory_space<vmem>>, %arg5: memref<16x512xf32, #tpu.memory_space<vmem>>) attributes {dimension_semantics = [#tpu.dimension_semantics<parallel>], iteration_bounds = array<i64: 1>, scalar_prefetch = 0 : i64, scratch_operands = 0 : i64, tpu.core_type = #tpu.core_type<tc>, window_params = [{pipeline_mode = #tpu.pipeline_mode<synchronous>, transform_indices = @transform_0, window_bounds = array<i64: 16, 128>}, {transform_indices = @transform_1, window_bounds = array<i64: 128, 512>}, {pipeline_mode = #tpu.pipeline_mode<synchronous>, transform_indices = @transform_2, window_bounds = array<i64: 16, 1>}, {transform_indices = @transform_3, window_bounds = array<i64: 16, 512>}, {transform_indices = @transform_4, window_bounds = array<i64: 16, 512>}]} {
    %c0 = arith.constant 0 : index
    %c0_0 = arith.constant 0 : index
    %0 = vector.load %arg2[%c0, %c0_0] : memref<128x512xbf16, #tpu.memory_space<vmem>>, vector<128x512xbf16>
    %c0_1 = arith.constant 0 : index
    %c0_2 = arith.constant 0 : index
    %1 = vector.load %arg1[%c0_1, %c0_2] : memref<16x128xbf16, #tpu.memory_space<vmem>>, vector<16x128xbf16>
    %cst = arith.constant dense<0.000000e+00> : vector<16x512xf32>
    %2 = tpu.matmul %1, %0, %cst {dimension_numbers = #tpu.dot_dimension_numbers<[1], [0], [0], [1], [0, 0, 1, 1], [], []>} : vector<16x128xbf16>, vector<128x512xbf16>, vector<16x512xf32> -> vector<16x512xf32>
    %c0_3 = arith.constant 0 : index
    %c0_4 = arith.constant 0 : index
    %3 = vector.load %arg3[%c0_3, %c0_4] : memref<16x1xf32, #tpu.memory_space<vmem>>, vector<16x1xf32>
    %4 = vector.broadcast %3 : vector<16x1xf32> to vector<16x512xf32>
    %5 = arith.addf %2, %4 : vector<16x512xf32>
    %c0_5 = arith.constant 0 : index
    %c0_6 = arith.constant 0 : index
    %6 = vector.load %arg4[%c0_5, %c0_6] : memref<16x512xf32, #tpu.memory_space<vmem>>, vector<16x512xf32>
    %7 = arith.addf %5, %6 : vector<16x512xf32>
    %c0_7 = arith.constant 0 : index
    %c0_8 = arith.constant 0 : index
    %8 = vector.load %arg5[%c0_7, %c0_8] : memref<16x512xf32, #tpu.memory_space<vmem>>, vector<16x512xf32>
    tpu.vector_store %arg5[%c0_7, %c0_8], %7 {strides = array<i32>} : memref<16x512xf32, #tpu.memory_space<vmem>>, vector<16x512xf32>,
    return
  }
  func.func @transform_0(%arg0: i32) -> (i32, i32) {
    %c0_i32 = arith.constant 0 : i32
    %c0_i32_0 = arith.constant 0 : i32
    %c0_i32_1 = arith.constant 0 : i32
    return %c0_i32, %c0_i32_0 : i32, i32
  }
  func.func @transform_1(%arg0: i32) -> (i32, i32) {
    %c0_i32 = arith.constant 0 : i32
    %c0_i32_0 = arith.constant 0 : i32
    return %c0_i32, %arg0 : i32, i32
  }
  func.func @transform_2(%arg0: i32) -> (i32, i32) {
    %c0_i32 = arith.constant 0 : i32
    %c0_i32_0 = arith.constant 0 : i32
    %c0_i32_1 = arith.constant 0 : i32
    return %c0_i32, %c0_i32_0 : i32, i32
  }
  func.func @transform_3(%arg0: i32) -> (i32, i32) {
    %c0_i32 = arith.constant 0 : i32
    %c0_i32_0 = arith.constant 0 : i32
    return %c0_i32, %arg0 : i32, i32
  }
  func.func @transform_4(%arg0: i32) -> (i32, i32) {
    %c0_i32 = arith.constant 0 : i32
    %c0_i32_0 = arith.constant 0 : i32
    return %c0_i32, %arg0 : i32, i32
  }
}

module attributes {stable_mosaic.version = 11 : i64} {
  func.func @_fused_mm_kernel(%arg0: i32, %arg1: memref<16x128xbf16, #tpu.memory_space<vmem>>, %arg2: memref<128x128xf32, #tpu.memory_space<vmem>>, %arg3: memref<128x1xf32, #tpu.memory_space<vmem>>, %arg4: memref<128x1xf32, #tpu.memory_space<vmem>>, %arg5: memref<16x1xf32, #tpu.memory_space<vmem>>, %arg6: memref<16x1xf32, #tpu.memory_space<vmem>>, %arg7: memref<16x1xf32, #tpu.memory_space<vmem>>, %arg8: memref<16x128xf32, #tpu.memory_space<vmem>>) attributes {dimension_semantics = [#tpu.dimension_semantics<parallel>], iteration_bounds = array<i64: 1>, scalar_prefetch = 0 : i64, scratch_operands = 0 : i64, tpu.core_type = #tpu.core_type<tc>, window_params = [{pipeline_mode = #tpu.pipeline_mode<synchronous>, transform_indices = @transform_0, window_bounds = array<i64: 16, 128>}, {transform_indices = @transform_1, window_bounds = array<i64: 128, 128>}, {pipeline_mode = #tpu.pipeline_mode<synchronous>, transform_indices = @transform_2, window_bounds = array<i64: 128, 1>}, {pipeline_mode = #tpu.pipeline_mode<synchronous>, transform_indices = @transform_3, window_bounds = array<i64: 128, 1>}, {pipeline_mode = #tpu.pipeline_mode<synchronous>, transform_indices = @transform_4, window_bounds = array<i64: 16, 1>}, {pipeline_mode = #tpu.pipeline_mode<synchronous>, transform_indices = @transform_5, window_bounds = array<i64: 16, 1>}, {pipeline_mode = #tpu.pipeline_mode<synchronous>, transform_indices = @transform_6, window_bounds = array<i64: 16, 1>}, {transform_indices = @transform_7, window_bounds = array<i64: 16, 128>}]} {
    %c0 = arith.constant 0 : index
    %c0_0 = arith.constant 0 : index
    %0 = vector.load %arg2[%c0, %c0_0] : memref<128x128xf32, #tpu.memory_space<vmem>>, vector<128x128xf32>
    %c0_1 = arith.constant 0 : index
    %c0_2 = arith.constant 0 : index
    %1 = vector.load %arg3[%c0_1, %c0_2] : memref<128x1xf32, #tpu.memory_space<vmem>>, vector<128x1xf32>
    %2 = vector.broadcast %1 : vector<128x1xf32> to vector<128x128xf32>
    %3 = arith.mulf %0, %2 : vector<128x128xf32>
    %c0_3 = arith.constant 0 : index
    %c0_4 = arith.constant 0 : index
    %4 = vector.load %arg4[%c0_3, %c0_4] : memref<128x1xf32, #tpu.memory_space<vmem>>, vector<128x1xf32>
    %5 = vector.broadcast %4 : vector<128x1xf32> to vector<128x128xf32>
    %6 = arith.addf %3, %5 : vector<128x128xf32>
    %cst = arith.constant 0.000000e+00 : f32
    %7 = vector.broadcast %cst : f32 to vector<128x128xf32>
    %8 = arith.cmpf oge, %6, %7 : vector<128x128xf32>
    %cst_5 = arith.constant 0.00999999977 : f32
    %9 = vector.broadcast %cst_5 : f32 to vector<128x128xf32>
    %10 = arith.mulf %9, %6 : vector<128x128xf32>
    %11 = arith.select %8, %6, %10 : vector<128x128xi1>, vector<128x128xf32>
    %12 = arith.truncf %11 : vector<128x128xf32> to vector<128x128xbf16>
    %c0_6 = arith.constant 0 : index
    %c0_7 = arith.constant 0 : index
    %13 = vector.load %arg1[%c0_6, %c0_7] : memref<16x128xbf16, #tpu.memory_space<vmem>>, vector<16x128xbf16>
    %cst_8 = arith.constant dense<0.000000e+00> : vector<16x128xf32>
    %14 = tpu.matmul %13, %12, %cst_8 {dimension_numbers = #tpu.dot_dimension_numbers<[1], [0], [0], [1], [0, 0, 1, 1], [], []>} : vector<16x128xbf16>, vector<128x128xbf16>, vector<16x128xf32> -> vector<16x128xf32>
    %c0_9 = arith.constant 0 : index
    %c0_10 = arith.constant 0 : index
    %15 = vector.load %arg5[%c0_9, %c0_10] : memref<16x1xf32, #tpu.memory_space<vmem>>, vector<16x1xf32>
    %16 = vector.broadcast %15 : vector<16x1xf32> to vector<16x128xf32>
    %17 = arith.addf %14, %16 : vector<16x128xf32>
    %c0_11 = arith.constant 0 : index
    %c0_12 = arith.constant 0 : index
    %18 = vector.load %arg6[%c0_11, %c0_12] : memref<16x1xf32, #tpu.memory_space<vmem>>, vector<16x1xf32>
    %19 = vector.broadcast %18 : vector<16x1xf32> to vector<16x128xf32>
    %20 = arith.mulf %17, %19 : vector<16x128xf32>
    %c0_13 = arith.constant 0 : index
    %c0_14 = arith.constant 0 : index
    %21 = vector.load %arg7[%c0_13, %c0_14] : memref<16x1xf32, #tpu.memory_space<vmem>>, vector<16x1xf32>
    %22 = vector.broadcast %21 : vector<16x1xf32> to vector<16x128xf32>
    %23 = arith.addf %20, %22 : vector<16x128xf32>
    %cst_15 = arith.constant 0.000000e+00 : f32
    %24 = vector.broadcast %cst_15 : f32 to vector<16x128xf32>
    %25 = arith.cmpf oge, %23, %24 : vector<16x128xf32>
    %cst_16 = arith.constant 0.00999999977 : f32
    %26 = vector.broadcast %cst_16 : f32 to vector<16x128xf32>
    %27 = arith.mulf %26, %23 : vector<16x128xf32>
    %28 = arith.select %25, %23, %27 : vector<16x128xi1>, vector<16x128xf32>
    %c0_17 = arith.constant 0 : index
    %c0_18 = arith.constant 0 : index
    %29 = vector.load %arg8[%c0_17, %c0_18] : memref<16x128xf32, #tpu.memory_space<vmem>>, vector<16x128xf32>
    tpu.vector_store %arg8[%c0_17, %c0_18], %28 {strides = array<i32>} : memref<16x128xf32, #tpu.memory_space<vmem>>, vector<16x128xf32>,
    return
  }
  func.func @transform_0(%arg0: i32) -> (i32, i32) {
    %c0_i32 = arith.constant 0 : i32
    %c0_i32_0 = arith.constant 0 : i32
    %c0_i32_1 = arith.constant 0 : i32
    return %c0_i32, %c0_i32_0 : i32, i32
  }
  func.func @transform_1(%arg0: i32) -> (i32, i32) {
    %c0_i32 = arith.constant 0 : i32
    %c0_i32_0 = arith.constant 0 : i32
    return %c0_i32, %arg0 : i32, i32
  }
  func.func @transform_2(%arg0: i32) -> (i32, i32) {
    %c0_i32 = arith.constant 0 : i32
    %c0_i32_0 = arith.constant 0 : i32
    %c0_i32_1 = arith.constant 0 : i32
    return %c0_i32, %c0_i32_0 : i32, i32
  }
  func.func @transform_3(%arg0: i32) -> (i32, i32) {
    %c0_i32 = arith.constant 0 : i32
    %c0_i32_0 = arith.constant 0 : i32
    %c0_i32_1 = arith.constant 0 : i32
    return %c0_i32, %c0_i32_0 : i32, i32
  }
  func.func @transform_4(%arg0: i32) -> (i32, i32) {
    %c0_i32 = arith.constant 0 : i32
    %c0_i32_0 = arith.constant 0 : i32
    %c0_i32_1 = arith.constant 0 : i32
    return %c0_i32, %c0_i32_0 : i32, i32
  }
  func.func @transform_5(%arg0: i32) -> (i32, i32) {
    %c0_i32 = arith.constant 0 : i32
    %c0_i32_0 = arith.constant 0 : i32
    %c0_i32_1 = arith.constant 0 : i32
    return %c0_i32, %c0_i32_0 : i32, i32
  }
  func.func @transform_6(%arg0: i32) -> (i32, i32) {
    %c0_i32 = arith.constant 0 : i32
    %c0_i32_0 = arith.constant 0 : i32
    %c0_i32_1 = arith.constant 0 : i32
    return %c0_i32, %c0_i32_0 : i32, i32
  }
  func.func @transform_7(%arg0: i32) -> (i32, i32) {
    %c0_i32 = arith.constant 0 : i32
    %c0_i32_0 = arith.constant 0 : i32
    return %c0_i32, %arg0 : i32, i32
  }
}

module attributes {stable_mosaic.version = 11 : i64} {
  func.func @_fused_mm_kernel(%arg0: i32, %arg1: memref<16x128xbf16, #tpu.memory_space<vmem>>, %arg2: memref<128x128xbf16, #tpu.memory_space<vmem>>, %arg3: memref<16x1xf32, #tpu.memory_space<vmem>>, %arg4: memref<16x128xf32, #tpu.memory_space<vmem>>) attributes {dimension_semantics = [#tpu.dimension_semantics<parallel>], iteration_bounds = array<i64: 1>, scalar_prefetch = 0 : i64, scratch_operands = 0 : i64, tpu.core_type = #tpu.core_type<tc>, window_params = [{pipeline_mode = #tpu.pipeline_mode<synchronous>, transform_indices = @transform_0, window_bounds = array<i64: 16, 128>}, {transform_indices = @transform_1, window_bounds = array<i64: 128, 128>}, {pipeline_mode = #tpu.pipeline_mode<synchronous>, transform_indices = @transform_2, window_bounds = array<i64: 16, 1>}, {transform_indices = @transform_3, window_bounds = array<i64: 16, 128>}]} {
    %c0 = arith.constant 0 : index
    %c0_0 = arith.constant 0 : index
    %0 = vector.load %arg2[%c0, %c0_0] : memref<128x128xbf16, #tpu.memory_space<vmem>>, vector<128x128xbf16>
    %c0_1 = arith.constant 0 : index
    %c0_2 = arith.constant 0 : index
    %1 = vector.load %arg1[%c0_1, %c0_2] : memref<16x128xbf16, #tpu.memory_space<vmem>>, vector<16x128xbf16>
    %cst = arith.constant dense<0.000000e+00> : vector<16x128xf32>
    %2 = tpu.matmul %1, %0, %cst {dimension_numbers = #tpu.dot_dimension_numbers<[1], [0], [0], [1], [0, 0, 1, 1], [], []>} : vector<16x128xbf16>, vector<128x128xbf16>, vector<16x128xf32> -> vector<16x128xf32>
    %c0_3 = arith.constant 0 : index
    %c0_4 = arith.constant 0 : index
    %3 = vector.load %arg3[%c0_3, %c0_4] : memref<16x1xf32, #tpu.memory_space<vmem>>, vector<16x1xf32>
    %4 = vector.broadcast %3 : vector<16x1xf32> to vector<16x128xf32>
    %5 = arith.addf %2, %4 : vector<16x128xf32>
    %c0_5 = arith.constant 0 : index
    %c0_6 = arith.constant 0 : index
    %6 = vector.load %arg4[%c0_5, %c0_6] : memref<16x128xf32, #tpu.memory_space<vmem>>, vector<16x128xf32>
    tpu.vector_store %arg4[%c0_5, %c0_6], %5 {strides = array<i32>} : memref<16x128xf32, #tpu.memory_space<vmem>>, vector<16x128xf32>,
    return
  }
  func.func @transform_0(%arg0: i32) -> (i32, i32) {
    %c0_i32 = arith.constant 0 : i32
    %c0_i32_0 = arith.constant 0 : i32
    %c0_i32_1 = arith.constant 0 : i32
    return %c0_i32, %c0_i32_0 : i32, i32
  }
  func.func @transform_1(%arg0: i32) -> (i32, i32) {
    %c0_i32 = arith.constant 0 : i32
    %c0_i32_0 = arith.constant 0 : i32
    return %c0_i32, %arg0 : i32, i32
  }
  func.func @transform_2(%arg0: i32) -> (i32, i32) {
    %c0_i32 = arith.constant 0 : i32
    %c0_i32_0 = arith.constant 0 : i32
    %c0_i32_1 = arith.constant 0 : i32
    return %c0_i32, %c0_i32_0 : i32, i32
  }
  func.func @transform_3(%arg0: i32) -> (i32, i32) {
    %c0_i32 = arith.constant 0 : i32
    %c0_i32_0 = arith.constant 0 : i32
    return %c0_i32, %arg0 : i32, i32
  }
}

module attributes {stable_mosaic.version = 11 : i64} {
  func.func @_fused_mm_kernel(%arg0: i32, %arg1: memref<16x512xbf16, #tpu.memory_space<vmem>>, %arg2: memref<512x128xbf16, #tpu.memory_space<vmem>>, %arg3: memref<16x1xf32, #tpu.memory_space<vmem>>, %arg4: memref<16x128xf32, #tpu.memory_space<vmem>>) attributes {dimension_semantics = [#tpu.dimension_semantics<parallel>], iteration_bounds = array<i64: 1>, scalar_prefetch = 0 : i64, scratch_operands = 0 : i64, tpu.core_type = #tpu.core_type<tc>, window_params = [{pipeline_mode = #tpu.pipeline_mode<synchronous>, transform_indices = @transform_0, window_bounds = array<i64: 16, 512>}, {transform_indices = @transform_1, window_bounds = array<i64: 512, 128>}, {pipeline_mode = #tpu.pipeline_mode<synchronous>, transform_indices = @transform_2, window_bounds = array<i64: 16, 1>}, {transform_indices = @transform_3, window_bounds = array<i64: 16, 128>}]} {
    %c0 = arith.constant 0 : index
    %c0_0 = arith.constant 0 : index
    %0 = vector.load %arg2[%c0, %c0_0] : memref<512x128xbf16, #tpu.memory_space<vmem>>, vector<512x128xbf16>
    %c0_1 = arith.constant 0 : index
    %c0_2 = arith.constant 0 : index
    %1 = vector.load %arg1[%c0_1, %c0_2] : memref<16x512xbf16, #tpu.memory_space<vmem>>, vector<16x512xbf16>
    %cst = arith.constant dense<0.000000e+00> : vector<16x128xf32>
    %2 = tpu.matmul %1, %0, %cst {dimension_numbers = #tpu.dot_dimension_numbers<[1], [0], [0], [1], [0, 0, 1, 1], [], []>} : vector<16x512xbf16>, vector<512x128xbf16>, vector<16x128xf32> -> vector<16x128xf32>
    %c0_3 = arith.constant 0 : index
    %c0_4 = arith.constant 0 : index
    %3 = vector.load %arg3[%c0_3, %c0_4] : memref<16x1xf32, #tpu.memory_space<vmem>>, vector<16x1xf32>
    %4 = vector.broadcast %3 : vector<16x1xf32> to vector<16x128xf32>
    %5 = arith.addf %2, %4 : vector<16x128xf32>
    %6 = tpu.iota {dimensions = array<i32: 0>} : vector<16x128xi32>
    %c3_i32 = arith.constant 3 : i32
    %7 = vector.broadcast %c3_i32 : i32 to vector<16x128xi32>
    %8 = arith.cmpi slt, %6, %7 : vector<16x128xi32>
    %cst_5 = arith.constant -1.000000e+30 : f32
    %9 = vector.broadcast %cst_5 : f32 to vector<16x128xf32>
    %10 = arith.select %8, %5, %9 : vector<16x128xi1>, vector<16x128xf32>
    %cst_6 = arith.constant dense<0xFF800000> : vector<128xf32>
    %11 = vector.multi_reduction <maximumf>, %10, %cst_6 [0] : vector<16x128xf32> to vector<128xf32>
    %12 = vector.shape_cast %11 : vector<128xf32> to vector<1x128xf32>
    %13 = vector.broadcast %12 : vector<1x128xf32> to vector<16x128xf32>
    %14 = arith.subf %10, %13 : vector<16x128xf32>
    %15 = math.exp %14 : vector<16x128xf32>
    %cst_7 = arith.constant dense<0.000000e+00> : vector<128xf32>
    %16 = vector.multi_reduction <add>, %15, %cst_7 [0] : vector<16x128xf32> to vector<128xf32>
    %17 = vector.shape_cast %16 : vector<128xf32> to vector<1x128xf32>
    %18 = math.log %17 : vector<1x128xf32>
    %19 = vector.broadcast %18 : vector<1x128xf32> to vector<16x128xf32>
    %20 = arith.subf %14, %19 : vector<16x128xf32>
    %c0_8 = arith.constant 0 : index
    %c0_9 = arith.constant 0 : index
    %21 = vector.load %arg4[%c0_8, %c0_9] : memref<16x128xf32, #tpu.memory_space<vmem>>, vector<16x128xf32>
    tpu.vector_store %arg4[%c0_8, %c0_9], %20 {strides = array<i32>} : memref<16x128xf32, #tpu.memory_space<vmem>>, vector<16x128xf32>,
    return
  }
  func.func @transform_0(%arg0: i32) -> (i32, i32) {
    %c0_i32 = arith.constant 0 : i32
    %c0_i32_0 = arith.constant 0 : i32
    %c0_i32_1 = arith.constant 0 : i32
    return %c0_i32, %c0_i32_0 : i32, i32
  }
  func.func @transform_1(%arg0: i32) -> (i32, i32) {
    %c0_i32 = arith.constant 0 : i32
    %c0_i32_0 = arith.constant 0 : i32
    return %c0_i32, %arg0 : i32, i32
  }
  func.func @transform_2(%arg0: i32) -> (i32, i32) {
    %c0_i32 = arith.constant 0 : i32
    %c0_i32_0 = arith.constant 0 : i32
    %c0_i32_1 = arith.constant 0 : i32
    return %c0_i32, %c0_i32_0 : i32, i32
  }
  func.func @transform_3(%arg0: i32) -> (i32, i32) {
    %c0_i32 = arith.constant 0 : i32
    %c0_i32_0 = arith.constant 0 : i32
    return %c0_i32, %arg0 : i32, i32
  }
}

module attributes {stable_mosaic.version = 11 : i64} {
  func.func @_fused_mm_kernel(%arg0: i32, %arg1: memref<32x128xbf16, #tpu.memory_space<vmem>>, %arg2: memref<128x128xbf16, #tpu.memory_space<vmem>>, %arg3: memref<32x1xf32, #tpu.memory_space<vmem>>, %arg4: memref<32x1xf32, #tpu.memory_space<vmem>>, %arg5: memref<32x128xf32, #tpu.memory_space<vmem>>) attributes {dimension_semantics = [#tpu.dimension_semantics<parallel>], iteration_bounds = array<i64: 1>, scalar_prefetch = 0 : i64, scratch_operands = 0 : i64, tpu.core_type = #tpu.core_type<tc>, window_params = [{pipeline_mode = #tpu.pipeline_mode<synchronous>, transform_indices = @transform_0, window_bounds = array<i64: 32, 128>}, {transform_indices = @transform_1, window_bounds = array<i64: 128, 128>}, {pipeline_mode = #tpu.pipeline_mode<synchronous>, transform_indices = @transform_2, window_bounds = array<i64: 32, 1>}, {pipeline_mode = #tpu.pipeline_mode<synchronous>, transform_indices = @transform_3, window_bounds = array<i64: 32, 1>}, {transform_indices = @transform_4, window_bounds = array<i64: 32, 128>}]} {
    %c0 = arith.constant 0 : index
    %c0_0 = arith.constant 0 : index
    %0 = vector.load %arg2[%c0, %c0_0] : memref<128x128xbf16, #tpu.memory_space<vmem>>, vector<128x128xbf16>
    %c0_1 = arith.constant 0 : index
    %c0_2 = arith.constant 0 : index
    %1 = vector.load %arg1[%c0_1, %c0_2] : memref<32x128xbf16, #tpu.memory_space<vmem>>, vector<32x128xbf16>
    %cst = arith.constant dense<0.000000e+00> : vector<32x128xf32>
    %2 = tpu.matmul %1, %0, %cst {dimension_numbers = #tpu.dot_dimension_numbers<[1], [0], [0], [1], [0, 0, 1, 1], [], []>} : vector<32x128xbf16>, vector<128x128xbf16>, vector<32x128xf32> -> vector<32x128xf32>
    %cst_3 = arith.constant 0.000000e+00 : f32
    %3 = vector.broadcast %cst_3 : f32 to vector<32x128xf32>
    %4 = arith.cmpf oge, %2, %3 : vector<32x128xf32>
    %cst_4 = arith.constant 0.00999999977 : f32
    %5 = vector.broadcast %cst_4 : f32 to vector<32x128xf32>
    %6 = arith.mulf %5, %2 : vector<32x128xf32>
    %7 = arith.select %4, %2, %6 : vector<32x128xi1>, vector<32x128xf32>
    %c0_5 = arith.constant 0 : index
    %c0_6 = arith.constant 0 : index
    %8 = vector.load %arg3[%c0_5, %c0_6] : memref<32x1xf32, #tpu.memory_space<vmem>>, vector<32x1xf32>
    %9 = vector.broadcast %8 : vector<32x1xf32> to vector<32x128xf32>
    %10 = arith.mulf %7, %9 : vector<32x128xf32>
    %c0_7 = arith.constant 0 : index
    %c0_8 = arith.constant 0 : index
    %11 = vector.load %arg4[%c0_7, %c0_8] : memref<32x1xf32, #tpu.memory_space<vmem>>, vector<32x1xf32>
    %12 = vector.broadcast %11 : vector<32x1xf32> to vector<32x128xf32>
    %13 = arith.addf %10, %12 : vector<32x128xf32>
    %c0_9 = arith.constant 0 : index
    %c0_10 = arith.constant 0 : index
    %14 = vector.load %arg5[%c0_9, %c0_10] : memref<32x128xf32, #tpu.memory_space<vmem>>, vector<32x128xf32>
    tpu.vector_store %arg5[%c0_9, %c0_10], %13 {strides = array<i32>} : memref<32x128xf32, #tpu.memory_space<vmem>>, vector<32x128xf32>,
    return
  }
  func.func @transform_0(%arg0: i32) -> (i32, i32) {
    %c0_i32 = arith.constant 0 : i32
    %c0_i32_0 = arith.constant 0 : i32
    %c0_i32_1 = arith.constant 0 : i32
    return %c0_i32, %c0_i32_0 : i32, i32
  }
  func.func @transform_1(%arg0: i32) -> (i32, i32) {
    %c0_i32 = arith.constant 0 : i32
    %c0_i32_0 = arith.constant 0 : i32
    return %c0_i32, %arg0 : i32, i32
  }
  func.func @transform_2(%arg0: i32) -> (i32, i32) {
    %c0_i32 = arith.constant 0 : i32
    %c0_i32_0 = arith.constant 0 : i32
    %c0_i32_1 = arith.constant 0 : i32
    return %c0_i32, %c0_i32_0 : i32, i32
  }
  func.func @transform_3(%arg0: i32) -> (i32, i32) {
    %c0_i32 = arith.constant 0 : i32
    %c0_i32_0 = arith.constant 0 : i32
    %c0_i32_1 = arith.constant 0 : i32
    return %c0_i32, %c0_i32_0 : i32, i32
  }
  func.func @transform_4(%arg0: i32) -> (i32, i32) {
    %c0_i32 = arith.constant 0 : i32
    %c0_i32_0 = arith.constant 0 : i32
    return %c0_i32, %arg0 : i32, i32
  }
}

</mosaic_0001>

<bundles_post_ra>
// kernel: _lambda_.10
= control target key start
LH: loop header
LB: loop body
LE: loop exit
PB: predicated region body
PF: predicated region fallthrough
CT: control target
= control target key end

     0   :  { %v433_v1 = vmov 0   ;;  %s583_s1 = inlined_call_operand.vmem [shape: bf16[128,512], index: 1, kind: input, shape index: {}]   ;;  %s584_s2 = inlined_call_operand.vmem [shape: f32[16,1], index: 2, kind: input, shape index: {}]   ;;  %s585_s0 = inlined_call_operand.vmem [shape: bf16[16,128], index: 0, kind: input, shape index: {}]   ;;  %s586_s3 = inlined_call_operand.vmem [shape: f32[16,512], index: 3, kind: output, shape index: {}]  }
   0x1   :  { %v384_v0 = vld [vmem:[%s583_s1 + $0x4] ss:$16 sps:$4 sm:$0xff]   ;;  %259 = vmatprep.mubr.bf16.mxu0 %v433_v1  ;;  %302 = vmatprep.mubr.bf16.mxu1 %v433_v1  ;;  %v386_v2 = vld [vmem:[%s583_s1 + $0xc] ss:$16 sps:$4 sm:$0xff]   ;;  %v388_v3 = vld [vmem:[%s583_s1] ss:$16 sps:$4 sm:$0xff]  }
   0x2   :  { %383 = vset.pattern.permute.xlu0 %v433_v1  ;;  %227 = vmatprep.subr.bf16.mxu0 %v384_v0  ;;  %v389_v4 = vld [vmem:[%s583_s1 + $0x8] ss:$16 sps:$4 sm:$0xff]   ;;  %v390_v5 = vld [vmem:[%s583_s1 + $0x24] ss:$16 sps:$4 sm:$0xff]   ;;  %v392_v6 = vld [vmem:[%s583_s1 + $0x2c] ss:$16 sps:$4 sm:$0xff]  }
   0x3   :  { %270 = vmatprep.subr.bf16.mxu1 %v386_v2  ;;  %228 = vmatpush1.bf16.msra.mxu0 %v388_v3  ;;  %v394_v7 = vld [vmem:[%s583_s1 + $0x20] ss:$16 sps:$4 sm:$0xff]   ;;  %v395_v8 = vld [vmem:[%s583_s1 + $0x28] ss:$16 sps:$4 sm:$0xff]   ;;  %v396_v9 = vld [vmem:[%s583_s1 + $0x44] ss:$16 sps:$4 sm:$0xff]  }
   0x4   :  { %271 = vmatpush1.bf16.msra.mxu1 %v389_v4  ;;  %229 = vmatprep.subr.bf16.mxu0 %v390_v5  ;;  %v398_v10 = vld [vmem:[%s583_s1 + $0x4c] ss:$16 sps:$4 sm:$0xff]   ;;  %v400_v11 = vld [vmem:[%s583_s1 + $0x40] ss:$16 sps:$4 sm:$0xff]   ;;  %v401_v12 = vld [vmem:[%s583_s1 + $0x48] ss:$16 sps:$4 sm:$0xff]  }
   0x5   :  { %272 = vmatprep.subr.bf16.mxu1 %v392_v6  ;;  %v402_v13 = vld [vmem:[%s583_s1 + $0x64] ss:$16 sps:$4 sm:$0xff]   ;;  %v404_v14 = vld [vmem:[%s583_s1 + $0x6c] ss:$16 sps:$4 sm:$0xff]   ;;  %v406_v15 = vld [vmem:[%s583_s1 + $0x60] ss:$16 sps:$4 sm:$0xff]  }
   0x6   :  { %v407_v16 = vld [vmem:[%s583_s1 + $0x68] ss:$16 sps:$4 sm:$0xff]   ;;  %v408_v17 = vld [vmem:[%s583_s1 + $0x84] ss:$16 sps:$4 sm:$0xff]   ;;  %v410_v18 = vld [vmem:[%s583_s1 + $0x8c] ss:$16 sps:$4 sm:$0xff]  }
   0x7   :  { %230 = vmatpush1.bf16.msra.mxu0 %v394_v7  ;;  %v412_v19 = vld [vmem:[%s583_s1 + $0x80] ss:$16 sps:$4 sm:$0xff]   ;;  %v413_v20 = vld [vmem:[%s583_s1 + $0x88] ss:$16 sps:$4 sm:$0xff]   ;;  %v414_v21 = vld [vmem:[%s583_s1 + $0xa4] ss:$16 sps:$4 sm:$0xff]  }
   0x8   :  { %273 = vmatpush1.bf16.msra.mxu1 %v395_v8  ;;  %231 = vmatprep.subr.bf16.mxu0 %v396_v9  ;;  %v416_v22 = vld [vmem:[%s583_s1 + $0xac] ss:$16 sps:$4 sm:$0xff]   ;;  %v418_v23 = vld [vmem:[%s583_s1 + $0xa0] ss:$16 sps:$4 sm:$0xff]   ;;  %v419_v24 = vld [vmem:[%s583_s1 + $0xa8] ss:$16 sps:$4 sm:$0xff]  }
   0x9   :  { %274 = vmatprep.subr.bf16.mxu1 %v398_v10  ;;  %v420_v25 = vld [vmem:[%s583_s1 + $0xc4] ss:$16 sps:$4 sm:$0xff]   ;;  %v422_v26 = vld [vmem:[%s583_s1 + $0xcc] ss:$16 sps:$4 sm:$0xff]   ;;  %v424_v28 = vld [vmem:[%s583_s1 + $0xc0] ss:$16 sps:$4 sm:$0xff]  }
   0xa   :  { %v49_v27 = vld [vmem:[%s584_s2] sm:$0xff]  ;;  %v425_v29 = vld [vmem:[%s583_s1 + $0xc8] ss:$16 sps:$4 sm:$0xff]   ;;  %v428_v32 = vld [vmem:[%s583_s1 + $0xec] ss:$16 sps:$4 sm:$0xff]  }
   0xb   :  { %232 = vmatpush1.bf16.msra.mxu0 %v400_v11  ;;  %53 = vperm.xlu0 %383, %v49_v27   ;;  %v50_v30 = vld [vmem:[%s584_s2 + $0x8] sm:$0xff]  ;;  %v426_v31 = vld [vmem:[%s583_s1 + $0xe4] ss:$16 sps:$4 sm:$0xff]   ;;  %v430_v33 = vld [vmem:[%s583_s1 + $0xe0] ss:$16 sps:$4 sm:$0xff]  }
   0xc   :  { %275 = vmatpush1.bf16.msra.mxu1 %v401_v12  ;;  %233 = vmatprep.subr.bf16.mxu0 %v402_v13  ;;  %v431_v34 = vld [vmem:[%s583_s1 + $0xe8] ss:$16 sps:$4 sm:$0xff]   ;;  %v432_v35 = vld [vmem:[%s585_s0] sm:$0xff]  }
   0xd   :  { %276 = vmatprep.subr.bf16.mxu1 %v404_v14 }
   0xf   :  { %234 = vmatpush1.bf16.msra.mxu0 %v406_v15  ;;  %58 = vperm.xlu0 %383, %v50_v30  }
  0x10   :  { %277 = vmatpush1.bf16.msra.mxu1 %v407_v16  ;;  %235 = vmatprep.subr.bf16.mxu0 %v408_v17 }
  0x11   :  { %278 = vmatprep.subr.bf16.mxu1 %v410_v18 }
  0x13   :  { %236 = vmatpush1.bf16.msra.mxu0 %v412_v19 }
  0x14   :  { %279 = vmatpush1.bf16.msra.mxu1 %v413_v20  ;;  %237 = vmatprep.subr.bf16.mxu0 %v414_v21 }
  0x15   :  { %280 = vmatprep.subr.bf16.mxu1 %v416_v22 }
  0x17   :  { %238 = vmatpush1.bf16.msra.mxu0 %v418_v23 }
  0x18   :  { %281 = vmatpush1.bf16.msra.mxu1 %v419_v24  ;;  %239 = vmatprep.subr.bf16.mxu0 %v420_v25 }
  0x19   :  { %282 = vmatprep.subr.bf16.mxu1 %v422_v26 }
  0x1b   :  { %240 = vmatpush1.bf16.msra.mxu0 %v424_v28 }
  0x1c   :  { %283 = vmatpush1.bf16.msra.mxu1 %v425_v29  ;;  %241 = vmatprep.subr.bf16.mxu0 %v426_v31 }
  0x1d   :  { %284 = vmatprep.subr.bf16.mxu1 %v428_v32 }
  0x1f   :  { %242 = vmatpush1.bf16.msra.mxu0 %v430_v33 }
  0x20   :  { %285 = vmatpush1.bf16.msra.mxu1 %v431_v34 }
  0x22   :  { %260 = vmatmul.mubr.bf16.vlgmr.msra.gmra.mrb[0].mxu0 %v432_v35 }
  0x23   :  { %303 = vmatmul.mubr.bf16.vlgmr.msra.gmra.mrb[0].mxu1 %v432_v35 }
  0x8a   :  { %v54_v36 = vpop.permute.xlu0 %53 }
  0x8e   :  { %v59_v49 = vpop.permute.xlu0 %58 }
  0xf5   :  { %v261_v37 = vpop.f32.mrb[0].mxu0 }
  0xf6   :  { %v304_v38 = vpop.f32.mrb[0].mxu1  ;;  %v262_v39 = vadd.f32 %v261_v37, %v54_v36  ;;  %v263_v41 = vpop.f32.mrb[1].mxu0 }
  0xf7   :  { %v305_v40 = vadd.f32 %v304_v38, %v54_v36  ;;  %v306_v42 = vpop.f32.mrb[1].mxu1  ;;  %v264_v43 = vadd.f32 %v263_v41, %v54_v36  ;;  %v265_v45 = vpop.f32.mrb[2].mxu0 }
  0xf8   :  { %v307_v44 = vadd.f32 %v306_v42, %v54_v36  ;;  %v308_v46 = vpop.f32.mrb[2].mxu1  ;;  %vm313_vm0 = vcmp.ge.f32.partialorder %v262_v39, 0.0  ;;  %v321_v47 = vmul.f32 0.01, %v262_v39  ;;  %v266_v54 = vadd.f32 %v265_v45, %v59_v49  ;;  %v267_v56 = vpop.f32.mrb[3].mxu0 }
  0xf9   :  { %vm315_vm1 = vcmp.ge.f32.partialorder %v305_v40, 0.0  ;;  %v323_v48 = vmul.f32 0.01, %v305_v40  ;;  %vm314_vm2 = vcmp.ge.f32.partialorder %v264_v43, 0.0  ;;  %v322_v50 = vmul.f32 0.01, %v264_v43 }
  0xfa   :  { %vm316_vm3 = vcmp.ge.f32.partialorder %v307_v44, 0.0  ;;  %v324_v51 = vmul.f32 0.01, %v307_v44  ;;  %v329_v52 = vsel %vm313_vm0, %v262_v39, %v321_v47  ;;  %v309_v55 = vadd.f32 %v308_v46, %v59_v49  ;;  %v310_v57 = vpop.f32.mrb[3].mxu1 }
  0xfb   :  { %v331_v53 = vsel %vm315_vm1, %v305_v40, %v323_v48  ;;  %337 = vst [vmem:[%s586_s3] sm:$0xff] %v329_v52  ;;  %v330_v58 = vsel %vm314_vm2, %v264_v43, %v322_v50  ;;  %v268_v60 = vadd.f32 %v267_v56, %v59_v49  ;;  %v311_v61 = vadd.f32 %v310_v57, %v59_v49 }
  0xfc   :  { %339 = vst [vmem:[%s586_s3 + $0x10] sm:$0xff] %v331_v53  ;;  %v332_v59 = vsel %vm316_vm3, %v307_v44, %v324_v51  ;;  %338 = vst [vmem:[%s586_s3 + $0x8] sm:$0xff] %v330_v58  ;;  %vm317_vm4 = vcmp.ge.f32.partialorder %v266_v54, 0.0  ;;  %v325_v62 = vmul.f32 0.01, %v266_v54  ;;  %vm319_vm5 = vcmp.ge.f32.partialorder %v309_v55, 0.0 }
  0xfd   :  { %340 = vst [vmem:[%s586_s3 + $0x18] sm:$0xff] %v332_v59  ;;  %v327_v63 = vmul.f32 0.01, %v309_v55  ;;  %vm318_vm6 = vcmp.ge.f32.partialorder %v268_v60, 0.0  ;;  %v326_v0 = vmul.f32 0.01, %v268_v60 }
  0xfe   :  { %vm320_vm7 = vcmp.ge.f32.partialorder %v311_v61, 0.0  ;;  %v328_v1 = vmul.f32 0.01, %v311_v61  ;;  %v333_v2 = vsel %vm317_vm4, %v266_v54, %v325_v62 }
  0xff   :  { %v335_v3 = vsel %vm319_vm5, %v309_v55, %v327_v63  ;;  %341 = vst [vmem:[%s586_s3 + $0x20] sm:$0xff] %v333_v2  ;;  %v334_v4 = vsel %vm318_vm6, %v268_v60, %v326_v0 }
 0x100   :  { %343 = vst [vmem:[%s586_s3 + $0x30] sm:$0xff] %v335_v3  ;;  %v336_v5 = vsel %vm320_vm7, %v311_v61, %v328_v1  ;;  %342 = vst [vmem:[%s586_s3 + $0x28] sm:$0xff] %v334_v4 }
 0x101   :  { %344 = vst [vmem:[%s586_s3 + $0x38] sm:$0xff] %v336_v5 }

// kernel: _lambda_.12
= control target key start
LH: loop header
LB: loop body
LE: loop exit
PB: predicated region body
PF: predicated region fallthrough
CT: control target
= control target key end

     0   :  { %v428_v1 = vmov 0   ;;  %s607_s1 = inlined_call_operand.vmem [shape: bf16[128,512], index: 1, kind: input, shape index: {}]   ;;  %s608_s2 = inlined_call_operand.vmem [shape: f32[16,1], index: 2, kind: input, shape index: {}]   ;;  %s609_s0 = inlined_call_operand.vmem [shape: bf16[16,128], index: 0, kind: input, shape index: {}]   ;;  %s610_s3 = inlined_call_operand.vmem [shape: f32[16,512], index: 3, kind: input, shape index: {}]   ;;  %s611_s4 = inlined_call_operand.vmem [shape: f32[16,512], index: 4, kind: output, shape index: {}]  }
   0x1   :  { %v379_v0 = vld [vmem:[%s607_s1 + $0x4] ss:$16 sps:$4 sm:$0xff]   ;;  %262 = vmatprep.mubr.bf16.mxu0 %v428_v1  ;;  %305 = vmatprep.mubr.bf16.mxu1 %v428_v1  ;;  %v381_v2 = vld [vmem:[%s607_s1 + $0xc] ss:$16 sps:$4 sm:$0xff]   ;;  %v383_v3 = vld [vmem:[%s607_s1] ss:$16 sps:$4 sm:$0xff]  }
   0x2   :  { %378 = vset.pattern.permute.xlu0 %v428_v1  ;;  %230 = vmatprep.subr.bf16.mxu0 %v379_v0  ;;  %v384_v4 = vld [vmem:[%s607_s1 + $0x8] ss:$16 sps:$4 sm:$0xff]   ;;  %v385_v5 = vld [vmem:[%s607_s1 + $0x24] ss:$16 sps:$4 sm:$0xff]   ;;  %v387_v6 = vld [vmem:[%s607_s1 + $0x2c] ss:$16 sps:$4 sm:$0xff]  }
   0x3   :  { %273 = vmatprep.subr.bf16.mxu1 %v381_v2  ;;  %231 = vmatpush1.bf16.msra.mxu0 %v383_v3  ;;  %v389_v7 = vld [vmem:[%s607_s1 + $0x20] ss:$16 sps:$4 sm:$0xff]   ;;  %v390_v8 = vld [vmem:[%s607_s1 + $0x28] ss:$16 sps:$4 sm:$0xff]   ;;  %v391_v9 = vld [vmem:[%s607_s1 + $0x44] ss:$16 sps:$4 sm:$0xff]  }
   0x4   :  { %274 = vmatpush1.bf16.msra.mxu1 %v384_v4  ;;  %232 = vmatprep.subr.bf16.mxu0 %v385_v5  ;;  %v393_v10 = vld [vmem:[%s607_s1 + $0x4c] ss:$16 sps:$4 sm:$0xff]   ;;  %v395_v11 = vld [vmem:[%s607_s1 + $0x40] ss:$16 sps:$4 sm:$0xff]   ;;  %v396_v12 = vld [vmem:[%s607_s1 + $0x48] ss:$16 sps:$4 sm:$0xff]  }
   0x5   :  { %275 = vmatprep.subr.bf16.mxu1 %v387_v6  ;;  %v397_v13 = vld [vmem:[%s607_s1 + $0x64] ss:$16 sps:$4 sm:$0xff]   ;;  %v399_v14 = vld [vmem:[%s607_s1 + $0x6c] ss:$16 sps:$4 sm:$0xff]   ;;  %v401_v15 = vld [vmem:[%s607_s1 + $0x60] ss:$16 sps:$4 sm:$0xff]  }
   0x6   :  { %v402_v16 = vld [vmem:[%s607_s1 + $0x68] ss:$16 sps:$4 sm:$0xff]   ;;  %v403_v17 = vld [vmem:[%s607_s1 + $0x84] ss:$16 sps:$4 sm:$0xff]   ;;  %v405_v18 = vld [vmem:[%s607_s1 + $0x8c] ss:$16 sps:$4 sm:$0xff]  }
   0x7   :  { %233 = vmatpush1.bf16.msra.mxu0 %v389_v7  ;;  %v407_v19 = vld [vmem:[%s607_s1 + $0x80] ss:$16 sps:$4 sm:$0xff]   ;;  %v408_v20 = vld [vmem:[%s607_s1 + $0x88] ss:$16 sps:$4 sm:$0xff]   ;;  %v409_v21 = vld [vmem:[%s607_s1 + $0xa4] ss:$16 sps:$4 sm:$0xff]  }
   0x8   :  { %276 = vmatpush1.bf16.msra.mxu1 %v390_v8  ;;  %234 = vmatprep.subr.bf16.mxu0 %v391_v9  ;;  %v411_v22 = vld [vmem:[%s607_s1 + $0xac] ss:$16 sps:$4 sm:$0xff]   ;;  %v413_v23 = vld [vmem:[%s607_s1 + $0xa0] ss:$16 sps:$4 sm:$0xff]   ;;  %v414_v24 = vld [vmem:[%s607_s1 + $0xa8] ss:$16 sps:$4 sm:$0xff]  }
   0x9   :  { %277 = vmatprep.subr.bf16.mxu1 %v393_v10  ;;  %v415_v25 = vld [vmem:[%s607_s1 + $0xc4] ss:$16 sps:$4 sm:$0xff]   ;;  %v417_v26 = vld [vmem:[%s607_s1 + $0xcc] ss:$16 sps:$4 sm:$0xff]   ;;  %v419_v28 = vld [vmem:[%s607_s1 + $0xc0] ss:$16 sps:$4 sm:$0xff]  }
   0xa   :  { %v52_v27 = vld [vmem:[%s608_s2] sm:$0xff]  ;;  %v420_v29 = vld [vmem:[%s607_s1 + $0xc8] ss:$16 sps:$4 sm:$0xff]   ;;  %v423_v32 = vld [vmem:[%s607_s1 + $0xec] ss:$16 sps:$4 sm:$0xff]  }
   0xb   :  { %235 = vmatpush1.bf16.msra.mxu0 %v395_v11  ;;  %56 = vperm.xlu0 %378, %v52_v27   ;;  %v53_v30 = vld [vmem:[%s608_s2 + $0x8] sm:$0xff]  ;;  %v421_v31 = vld [vmem:[%s607_s1 + $0xe4] ss:$16 sps:$4 sm:$0xff]   ;;  %v425_v33 = vld [vmem:[%s607_s1 + $0xe0] ss:$16 sps:$4 sm:$0xff]  }
   0xc   :  { %278 = vmatpush1.bf16.msra.mxu1 %v396_v12  ;;  %236 = vmatprep.subr.bf16.mxu0 %v397_v13  ;;  %v426_v34 = vld [vmem:[%s607_s1 + $0xe8] ss:$16 sps:$4 sm:$0xff]   ;;  %v427_v35 = vld [vmem:[%s609_s0] sm:$0xff]   ;;  %v318_v41 = vld [vmem:[%s610_s3 + $0x10] sm:$0xff] }
   0xd   :  { %279 = vmatprep.subr.bf16.mxu1 %v399_v14  ;;  %v316_v39 = vld [vmem:[%s610_s3] sm:$0xff]  ;;  %v317_v45 = vld [vmem:[%s610_s3 + $0x8] sm:$0xff]  ;;  %v319_v47 = vld [vmem:[%s610_s3 + $0x18] sm:$0xff] }
   0xe   :  { %v320_v51 = vld [vmem:[%s610_s3 + $0x20] sm:$0xff]  ;;  %v322_v53 = vld [vmem:[%s610_s3 + $0x30] sm:$0xff]  ;;  %v321_v59 = vld [vmem:[%s610_s3 + $0x28] sm:$0xff] }
   0xf   :  { %237 = vmatpush1.bf16.msra.mxu0 %v401_v15  ;;  %61 = vperm.xlu0 %378, %v53_v30   ;;  %v323_v61 = vld [vmem:[%s610_s3 + $0x38] sm:$0xff] }
  0x10   :  { %280 = vmatpush1.bf16.msra.mxu1 %v402_v16  ;;  %238 = vmatprep.subr.bf16.mxu0 %v403_v17 }
  0x11   :  { %281 = vmatprep.subr.bf16.mxu1 %v405_v18 }
  0x13   :  { %239 = vmatpush1.bf16.msra.mxu0 %v407_v19 }
  0x14   :  { %282 = vmatpush1.bf16.msra.mxu1 %v408_v20  ;;  %240 = vmatprep.subr.bf16.mxu0 %v409_v21 }
  0x15   :  { %283 = vmatprep.subr.bf16.mxu1 %v411_v22 }
  0x17   :  { %241 = vmatpush1.bf16.msra.mxu0 %v413_v23 }
  0x18   :  { %284 = vmatpush1.bf16.msra.mxu1 %v414_v24  ;;  %242 = vmatprep.subr.bf16.mxu0 %v415_v25 }
  0x19   :  { %285 = vmatprep.subr.bf16.mxu1 %v417_v26 }
  0x1b   :  { %243 = vmatpush1.bf16.msra.mxu0 %v419_v28 }
  0x1c   :  { %286 = vmatpush1.bf16.msra.mxu1 %v420_v29  ;;  %244 = vmatprep.subr.bf16.mxu0 %v421_v31 }
  0x1d   :  { %287 = vmatprep.subr.bf16.mxu1 %v423_v32 }
  0x1f   :  { %245 = vmatpush1.bf16.msra.mxu0 %v425_v33 }
  0x20   :  { %288 = vmatpush1.bf16.msra.mxu1 %v426_v34 }
  0x22   :  { %263 = vmatmul.mubr.bf16.vlgmr.msra.gmra.mrb[0].mxu0 %v427_v35 }
  0x23   :  { %306 = vmatmul.mubr.bf16.vlgmr.msra.gmra.mrb[0].mxu1 %v427_v35 }
  0x8a   :  { %v57_v36 = vpop.permute.xlu0 %56 }
  0x8e   :  { %v62_v37 = vpop.permute.xlu0 %61 }
  0xf5   :  { %v264_v38 = vpop.f32.mrb[0].mxu0 }
  0xf6   :  { %v307_v40 = vpop.f32.mrb[0].mxu1  ;;  %v265_v42 = vadd.f32 %v264_v38, %v57_v36  ;;  %v266_v44 = vpop.f32.mrb[1].mxu0 }
  0xf7   :  { %v308_v43 = vadd.f32 %v307_v40, %v57_v36  ;;  %v309_v46 = vpop.f32.mrb[1].mxu1  ;;  %v267_v48 = vadd.f32 %v266_v44, %v57_v36  ;;  %v268_v50 = vpop.f32.mrb[2].mxu0 }
  0xf8   :  { %v310_v49 = vadd.f32 %v309_v46, %v57_v36  ;;  %v311_v52 = vpop.f32.mrb[2].mxu1  ;;  %v324_v54 = vadd.f32 %v316_v39, %v265_v42  ;;  %v269_v56 = vadd.f32 %v268_v50, %v62_v37  ;;  %v270_v58 = vpop.f32.mrb[3].mxu0 }
  0xf9   :  { %v326_v55 = vadd.f32 %v318_v41, %v308_v43  ;;  %v312_v57 = vadd.f32 %v311_v52, %v62_v37  ;;  %v313_v60 = vpop.f32.mrb[3].mxu1  ;;  %v325_v62 = vadd.f32 %v317_v45, %v267_v48  ;;  %v271_v0 = vadd.f32 %v270_v58, %v62_v37 }
  0xfa   :  { %v327_v63 = vadd.f32 %v319_v47, %v310_v49  ;;  %v314_v1 = vadd.f32 %v313_v60, %v62_v37  ;;  %332 = vst [vmem:[%s611_s4] sm:$0xff] %v324_v54  ;;  %v328_v2 = vadd.f32 %v320_v51, %v269_v56 }
  0xfb   :  { %334 = vst [vmem:[%s611_s4 + $0x10] sm:$0xff] %v326_v55  ;;  %v330_v3 = vadd.f32 %v322_v53, %v312_v57  ;;  %333 = vst [vmem:[%s611_s4 + $0x8] sm:$0xff] %v325_v62  ;;  %v329_v4 = vadd.f32 %v321_v59, %v271_v0 }
  0xfc   :  { %335 = vst [vmem:[%s611_s4 + $0x18] sm:$0xff] %v327_v63  ;;  %v331_v5 = vadd.f32 %v323_v61, %v314_v1  ;;  %336 = vst [vmem:[%s611_s4 + $0x20] sm:$0xff] %v328_v2 }
  0xfd   :  { %338 = vst [vmem:[%s611_s4 + $0x30] sm:$0xff] %v330_v3  ;;  %337 = vst [vmem:[%s611_s4 + $0x28] sm:$0xff] %v329_v4 }
  0xfe   :  { %339 = vst [vmem:[%s611_s4 + $0x38] sm:$0xff] %v331_v5 }

// kernel: _lambda_.13
= control target key start
LH: loop header
LB: loop body
LE: loop exit
PB: predicated region body
PF: predicated region fallthrough
CT: control target
= control target key end

     0   :  { %vm264_vm0 = vcmask 31744   ;;  %vm1033_vm1 = vcmask 7168   ;;  %s3352_s0 = inlined_call_operand.vmem [shape: f32[2048,4], index: 0, kind: input, shape index: {}]   ;;  %s3353_s1 = inlined_call_operand.vmem [shape: f32[2048,1], index: 1, kind: output, shape index: {}]  }
   0x1   :  { %v10_v0 = vld [vmem:[%s3352_s0 + $0x10] sm:$0xff]  ;;  %v8_v1 = vld [vmem:[%s3352_s0] sm:$0xff]  ;;  %v11_v2 = vld [vmem:[%s3352_s0 + $0x18] sm:$0xff] }
   0x2   :  { %v271_v3 = vsel %vm264_vm0, %v10_v0, -inf  ;;  %v265_v4 = vsel %vm264_vm0, %v8_v1, -inf  ;;  %v9_v5 = vld [vmem:[%s3352_s0 + $0x8] sm:$0xff]  ;;  %v274_v6 = vsel %vm264_vm0, %v11_v2, -inf  ;;  %v12_v9 = vld [vmem:[%s3352_s0 + $0x20] sm:$0xff]  ;;  %v15_v12 = vld [vmem:[%s3352_s0 + $0x38] sm:$0xff] }
   0x3   :  { %272 = vmax.xlane.f32.xlu1 %v271_v3  ;;  %266 = vmax.xlane.f32.xlu0 %v265_v4  ;;  %v268_v7 = vsel %vm264_vm0, %v9_v5, -inf  ;;  %v13_v8 = vld [vmem:[%s3352_s0 + $0x28] sm:$0xff]  ;;  %v277_v11 = vsel %vm264_vm0, %v12_v9, -inf  ;;  %v14_v13 = vld [vmem:[%s3352_s0 + $0x30] sm:$0xff]  ;;  %v286_v14 = vsel %vm264_vm0, %v15_v12, -inf  ;;  %v16_v17 = vld [vmem:[%s3352_s0 + $0x40] sm:$0xff] }
   0x4   :  { %v280_v10 = vsel %vm264_vm0, %v13_v8, -inf  ;;  %v283_v15 = vsel %vm264_vm0, %v14_v13, -inf  ;;  %v17_v16 = vld [vmem:[%s3352_s0 + $0x48] sm:$0xff]  ;;  %v289_v19 = vsel %vm264_vm0, %v16_v17, -inf  ;;  %v19_v20 = vld [vmem:[%s3352_s0 + $0x58] sm:$0xff]  ;;  %v18_v21 = vld [vmem:[%s3352_s0 + $0x50] sm:$0xff] }
   0x5   :  { %v292_v18 = vsel %vm264_vm0, %v17_v16, -inf  ;;  %v298_v22 = vsel %vm264_vm0, %v19_v20, -inf  ;;  %v295_v23 = vsel %vm264_vm0, %v18_v21, -inf  ;;  %v21_v24 = vld [vmem:[%s3352_s0 + $0x68] sm:$0xff]  ;;  %v20_v25 = vld [vmem:[%s3352_s0 + $0x60] sm:$0xff]  ;;  %v23_v28 = vld [vmem:[%s3352_s0 + $0x78] sm:$0xff] }
   0x6   :  { %v304_v26 = vsel %vm264_vm0, %v21_v24, -inf  ;;  %v301_v27 = vsel %vm264_vm0, %v20_v25, -inf  ;;  %v22_v29 = vld [vmem:[%s3352_s0 + $0x70] sm:$0xff]  ;;  %v310_v30 = vsel %vm264_vm0, %v23_v28, -inf  ;;  %v25_v32 = vld [vmem:[%s3352_s0 + $0x88] sm:$0xff]  ;;  %v24_v33 = vld [vmem:[%s3352_s0 + $0x80] sm:$0xff] }
   0x7   :  { %275 = vmax.xlane.f32.xlu1 %v274_v6  ;;  %269 = vmax.xlane.f32.xlu0 %v268_v7  ;;  %v307_v31 = vsel %vm264_vm0, %v22_v29, -inf  ;;  %v316_v34 = vsel %vm264_vm0, %v25_v32, -inf  ;;  %v313_v35 = vsel %vm264_vm0, %v24_v33, -inf  ;;  %v27_v36 = vld [vmem:[%s3352_s0 + $0x98] sm:$0xff]  ;;  %v26_v37 = vld [vmem:[%s3352_s0 + $0x90] sm:$0xff]  ;;  %v29_v40 = vld [vmem:[%s3352_s0 + $0xa8] sm:$0xff] }
   0x8   :  { %v322_v38 = vsel %vm264_vm0, %v27_v36, -inf  ;;  %v319_v39 = vsel %vm264_vm0, %v26_v37, -inf  ;;  %v28_v41 = vld [vmem:[%s3352_s0 + $0xa0] sm:$0xff]  ;;  %v328_v42 = vsel %vm264_vm0, %v29_v40, -inf  ;;  %v31_v44 = vld [vmem:[%s3352_s0 + $0xb8] sm:$0xff]  ;;  %v30_v45 = vld [vmem:[%s3352_s0 + $0xb0] sm:$0xff] }
   0x9   :  { %v325_v43 = vsel %vm264_vm0, %v28_v41, -inf  ;;  %v334_v46 = vsel %vm264_vm0, %v31_v44, -inf  ;;  %v331_v47 = vsel %vm264_vm0, %v30_v45, -inf  ;;  %v33_v48 = vld [vmem:[%s3352_s0 + $0xc8] sm:$0xff]  ;;  %v32_v49 = vld [vmem:[%s3352_s0 + $0xc0] sm:$0xff]  ;;  %v35_v52 = vld [vmem:[%s3352_s0 + $0xd8] sm:$0xff] }
   0xa   :  { %v340_v50 = vsel %vm264_vm0, %v33_v48, -inf  ;;  %v337_v51 = vsel %vm264_vm0, %v32_v49, -inf  ;;  %v34_v53 = vld [vmem:[%s3352_s0 + $0xd0] sm:$0xff]  ;;  %v346_v54 = vsel %vm264_vm0, %v35_v52, -inf  ;;  %v37_v56 = vld [vmem:[%s3352_s0 + $0xe8] sm:$0xff]  ;;  %v36_v57 = vld [vmem:[%s3352_s0 + $0xe0] sm:$0xff] }
   0xb   :  { %281 = vmax.xlane.f32.xlu1 %v280_v10  ;;  %278 = vmax.xlane.f32.xlu0 %v277_v11  ;;  %v343_v55 = vsel %vm264_vm0, %v34_v53, -inf  ;;  %v352_v58 = vsel %vm264_vm0, %v37_v56, -inf  ;;  %v349_v59 = vsel %vm264_vm0, %v36_v57, -inf  ;;  %v39_v60 = vld [vmem:[%s3352_s0 + $0xf8] sm:$0xff]  ;;  %v38_v61 = vld [vmem:[%s3352_s0 + $0xf0] sm:$0xff]  ;;  %v41_v0 = vld [vmem:[%s3352_s0 + $0x108] sm:$0xff] }
   0xc   :  { %v358_v62 = vsel %vm264_vm0, %v39_v60, -inf  ;;  %v355_v63 = vsel %vm264_vm0, %v38_v61, -inf  ;;  %v40_v1 = vld [vmem:[%s3352_s0 + $0x100] sm:$0xff]  ;;  %v364_v2 = vsel %vm264_vm0, %v41_v0, -inf  ;;  %v43_v4 = vld [vmem:[%s3352_s0 + $0x118] sm:$0xff]  ;;  %v42_v5 = vld [vmem:[%s3352_s0 + $0x110] sm:$0xff] }
   0xd   :  { %v361_v3 = vsel %vm264_vm0, %v40_v1, -inf  ;;  %v370_v6 = vsel %vm264_vm0, %v43_v4, -inf  ;;  %v367_v7 = vsel %vm264_vm0, %v42_v5, -inf  ;;  %v45_v8 = vld [vmem:[%s3352_s0 + $0x128] sm:$0xff]  ;;  %v44_v9 = vld [vmem:[%s3352_s0 + $0x120] sm:$0xff]  ;;  %v47_v12 = vld [vmem:[%s3352_s0 + $0x138] sm:$0xff] }
   0xe   :  { %v376_v10 = vsel %vm264_vm0, %v45_v8, -inf  ;;  %v373_v11 = vsel %vm264_vm0, %v44_v9, -inf  ;;  %v46_v13 = vld [vmem:[%s3352_s0 + $0x130] sm:$0xff]  ;;  %v49_v16 = vld [vmem:[%s3352_s0 + $0x148] sm:$0xff]  ;;  %v48_v17 = vld [vmem:[%s3352_s0 + $0x140] sm:$0xff] }
   0xf   :  { %287 = vmax.xlane.f32.xlu1 %v286_v14  ;;  %284 = vmax.xlane.f32.xlu0 %v283_v15  ;;  %v382_v14 = vsel %vm264_vm0, %v47_v12, -inf  ;;  %v379_v15 = vsel %vm264_vm0, %v46_v13, -inf  ;;  %v51_v20 = vld [vmem:[%s3352_s0 + $0x158] sm:$0xff]  ;;  %v50_v21 = vld [vmem:[%s3352_s0 + $0x150] sm:$0xff]  ;;  %v53_v24 = vld [vmem:[%s3352_s0 + $0x168] sm:$0xff] }
  0x10   :  { %v52_v25 = vld [vmem:[%s3352_s0 + $0x160] sm:$0xff]  ;;  %v55_v28 = vld [vmem:[%s3352_s0 + $0x178] sm:$0xff]  ;;  %v54_v29 = vld [vmem:[%s3352_s0 + $0x170] sm:$0xff] }
  0x11   :  { %v57_v32 = vld [vmem:[%s3352_s0 + $0x188] sm:$0xff]  ;;  %v56_v33 = vld [vmem:[%s3352_s0 + $0x180] sm:$0xff]  ;;  %v59_v36 = vld [vmem:[%s3352_s0 + $0x198] sm:$0xff] }
  0x12   :  { %v58_v37 = vld [vmem:[%s3352_s0 + $0x190] sm:$0xff]  ;;  %v61_v40 = vld [vmem:[%s3352_s0 + $0x1a8] sm:$0xff]  ;;  %v60_v41 = vld [vmem:[%s3352_s0 + $0x1a0] sm:$0xff] }
  0x13   :  { %293 = vmax.xlane.f32.xlu1 %v292_v18  ;;  %290 = vmax.xlane.f32.xlu0 %v289_v19  ;;  %v388_v18 = vsel %vm264_vm0, %v49_v16, -inf  ;;  %v385_v19 = vsel %vm264_vm0, %v48_v17, -inf  ;;  %v63_v44 = vld [vmem:[%s3352_s0 + $0x1b8] sm:$0xff]  ;;  %v62_v45 = vld [vmem:[%s3352_s0 + $0x1b0] sm:$0xff]  ;;  %v65_v48 = vld [vmem:[%s3352_s0 + $0x1c8] sm:$0xff] }
  0x14   :  { %v64_v49 = vld [vmem:[%s3352_s0 + $0x1c0] sm:$0xff]  ;;  %v67_v52 = vld [vmem:[%s3352_s0 + $0x1d8] sm:$0xff]  ;;  %v66_v53 = vld [vmem:[%s3352_s0 + $0x1d0] sm:$0xff] }
  0x15   :  { %v69_v56 = vld [vmem:[%s3352_s0 + $0x1e8] sm:$0xff]  ;;  %v68_v57 = vld [vmem:[%s3352_s0 + $0x1e0] sm:$0xff]  ;;  %v71_v60 = vld [vmem:[%s3352_s0 + $0x1f8] sm:$0xff] }
  0x16   :  { %v70_v61 = vld [vmem:[%s3352_s0 + $0x1f0] sm:$0xff]  ;;  %v73_v0 = vld [vmem:[%s3352_s0 + $0x208] sm:$0xff]  ;;  %v72_v1 = vld [vmem:[%s3352_s0 + $0x200] sm:$0xff] }
  0x17   :  { %299 = vmax.xlane.f32.xlu1 %v298_v22  ;;  %296 = vmax.xlane.f32.xlu0 %v295_v23  ;;  %v394_v22 = vsel %vm264_vm0, %v51_v20, -inf  ;;  %v391_v23 = vsel %vm264_vm0, %v50_v21, -inf  ;;  %v75_v4 = vld [vmem:[%s3352_s0 + $0x218] sm:$0xff]  ;;  %v74_v5 = vld [vmem:[%s3352_s0 + $0x210] sm:$0xff]  ;;  %v77_v8 = vld [vmem:[%s3352_s0 + $0x228] sm:$0xff] }
  0x18   :  { %v76_v9 = vld [vmem:[%s3352_s0 + $0x220] sm:$0xff]  ;;  %v79_v12 = vld [vmem:[%s3352_s0 + $0x238] sm:$0xff]  ;;  %v78_v13 = vld [vmem:[%s3352_s0 + $0x230] sm:$0xff] }
  0x19   :  { %v81_v16 = vld [vmem:[%s3352_s0 + $0x248] sm:$0xff]  ;;  %v80_v17 = vld [vmem:[%s3352_s0 + $0x240] sm:$0xff] }
  0x1a   :  { %v484_v20 = vsel %vm264_vm0, %v81_v16, -inf  ;;  %v481_v21 = vsel %vm264_vm0, %v80_v17, -inf }
  0x1b   :  { %305 = vmax.xlane.f32.xlu1 %v304_v26  ;;  %302 = vmax.xlane.f32.xlu0 %v301_v27  ;;  %v400_v26 = vsel %vm264_vm0, %v53_v24, -inf  ;;  %v397_v27 = vsel %vm264_vm0, %v52_v25, -inf }
  0x1f   :  { %311 = vmax.xlane.f32.xlu1 %v310_v30  ;;  %308 = vmax.xlane.f32.xlu0 %v307_v31  ;;  %v406_v30 = vsel %vm264_vm0, %v55_v28, -inf  ;;  %v403_v31 = vsel %vm264_vm0, %v54_v29, -inf  ;;  %v85_v28 = vld [vmem:[%s3352_s0 + $0x268] sm:$0xff]  ;;  %v84_v29 = vld [vmem:[%s3352_s0 + $0x260] sm:$0xff] }
  0x23   :  { %317 = vmax.xlane.f32.xlu1 %v316_v34  ;;  %314 = vmax.xlane.f32.xlu0 %v313_v35  ;;  %v412_v34 = vsel %vm264_vm0, %v57_v32, -inf  ;;  %v409_v35 = vsel %vm264_vm0, %v56_v33, -inf  ;;  %v496_v32 = vsel %vm264_vm0, %v85_v28, -inf  ;;  %v493_v33 = vsel %vm264_vm0, %v84_v29, -inf }
  0x27   :  { %323 = vmax.xlane.f32.xlu1 %v322_v38  ;;  %320 = vmax.xlane.f32.xlu0 %v319_v39  ;;  %v418_v38 = vsel %vm264_vm0, %v59_v36, -inf  ;;  %v415_v39 = vsel %vm264_vm0, %v58_v37, -inf }
  0x2b   :  { %329 = vmax.xlane.f32.xlu1 %v328_v42  ;;  %326 = vmax.xlane.f32.xlu0 %v325_v43  ;;  %v424_v42 = vsel %vm264_vm0, %v61_v40, -inf  ;;  %v421_v43 = vsel %vm264_vm0, %v60_v41, -inf  ;;  %v89_v40 = vld [vmem:[%s3352_s0 + $0x288] sm:$0xff]  ;;  %v88_v41 = vld [vmem:[%s3352_s0 + $0x280] sm:$0xff] }
  0x2f   :  { %335 = vmax.xlane.f32.xlu1 %v334_v46  ;;  %332 = vmax.xlane.f32.xlu0 %v331_v47  ;;  %v430_v46 = vsel %vm264_vm0, %v63_v44, -inf  ;;  %v427_v47 = vsel %vm264_vm0, %v62_v45, -inf  ;;  %v508_v44 = vsel %vm264_vm0, %v89_v40, -inf  ;;  %v505_v45 = vsel %vm264_vm0, %v88_v41, -inf }
  0x33   :  { %341 = vmax.xlane.f32.xlu1 %v340_v50  ;;  %338 = vmax.xlane.f32.xlu0 %v337_v51  ;;  %v436_v50 = vsel %vm264_vm0, %v65_v48, -inf  ;;  %v433_v51 = vsel %vm264_vm0, %v64_v49, -inf }
  0x37   :  { %347 = vmax.xlane.f32.xlu1 %v346_v54  ;;  %344 = vmax.xlane.f32.xlu0 %v343_v55  ;;  %v442_v54 = vsel %vm264_vm0, %v67_v52, -inf  ;;  %v439_v55 = vsel %vm264_vm0, %v66_v53, -inf  ;;  %v93_v52 = vld [vmem:[%s3352_s0 + $0x2a8] sm:$0xff]  ;;  %v92_v53 = vld [vmem:[%s3352_s0 + $0x2a0] sm:$0xff] }
  0x3b   :  { %353 = vmax.xlane.f32.xlu1 %v352_v58  ;;  %350 = vmax.xlane.f32.xlu0 %v349_v59  ;;  %v448_v58 = vsel %vm264_vm0, %v69_v56, -inf  ;;  %v445_v59 = vsel %vm264_vm0, %v68_v57, -inf  ;;  %v520_v56 = vsel %vm264_vm0, %v93_v52, -inf  ;;  %v517_v57 = vsel %vm264_vm0, %v92_v53, -inf }
  0x3f   :  { %359 = vmax.xlane.f32.xlu1 %v358_v62  ;;  %356 = vmax.xlane.f32.xlu0 %v355_v63  ;;  %v454_v62 = vsel %vm264_vm0, %v71_v60, -inf  ;;  %v451_v63 = vsel %vm264_vm0, %v70_v61, -inf }
  0x43   :  { %365 = vmax.xlane.f32.xlu1 %v364_v2  ;;  %362 = vmax.xlane.f32.xlu0 %v361_v3  ;;  %v460_v2 = vsel %vm264_vm0, %v73_v0, -inf  ;;  %v457_v3 = vsel %vm264_vm0, %v72_v1, -inf  ;;  %v97_v0 = vld [vmem:[%s3352_s0 + $0x2c8] sm:$0xff]  ;;  %v96_v1 = vld [vmem:[%s3352_s0 + $0x2c0] sm:$0xff] }
  0x47   :  { %371 = vmax.xlane.f32.xlu1 %v370_v6  ;;  %368 = vmax.xlane.f32.xlu0 %v367_v7  ;;  %v466_v6 = vsel %vm264_vm0, %v75_v4, -inf  ;;  %v463_v7 = vsel %vm264_vm0, %v74_v5, -inf  ;;  %v532_v4 = vsel %vm264_vm0, %v97_v0, -inf  ;;  %v529_v5 = vsel %vm264_vm0, %v96_v1, -inf }
  0x4b   :  { %377 = vmax.xlane.f32.xlu1 %v376_v10  ;;  %374 = vmax.xlane.f32.xlu0 %v373_v11  ;;  %v472_v10 = vsel %vm264_vm0, %v77_v8, -inf  ;;  %v469_v11 = vsel %vm264_vm0, %v76_v9, -inf }
  0x4f   :  { %383 = vmax.xlane.f32.xlu1 %v382_v14  ;;  %380 = vmax.xlane.f32.xlu0 %v379_v15  ;;  %v478_v14 = vsel %vm264_vm0, %v79_v12, -inf  ;;  %v475_v15 = vsel %vm264_vm0, %v78_v13, -inf  ;;  %v101_v12 = vld [vmem:[%s3352_s0 + $0x2e8] sm:$0xff]  ;;  %v100_v13 = vld [vmem:[%s3352_s0 + $0x2e0] sm:$0xff] }
  0x50   :  { %v544_v16 = vsel %vm264_vm0, %v101_v12, -inf  ;;  %v541_v17 = vsel %vm264_vm0, %v100_v13, -inf }
  0x53   :  { %389 = vmax.xlane.f32.xlu1 %v388_v18  ;;  %386 = vmax.xlane.f32.xlu0 %v385_v19 }
  0x57   :  { %395 = vmax.xlane.f32.xlu1 %v394_v22  ;;  %392 = vmax.xlane.f32.xlu0 %v391_v23  ;;  %v83_v22 = vld [vmem:[%s3352_s0 + $0x258] sm:$0xff]  ;;  %v82_v23 = vld [vmem:[%s3352_s0 + $0x250] sm:$0xff] }
  0x5b   :  { %401 = vmax.xlane.f32.xlu1 %v400_v26  ;;  %398 = vmax.xlane.f32.xlu0 %v397_v27  ;;  %v490_v26 = vsel %vm264_vm0, %v83_v22, -inf  ;;  %v487_v27 = vsel %vm264_vm0, %v82_v23, -inf }
  0x5f   :  { %407 = vmax.xlane.f32.xlu1 %v406_v30  ;;  %404 = vmax.xlane.f32.xlu0 %v403_v31 }
  0x63   :  { %413 = vmax.xlane.f32.xlu1 %v412_v34  ;;  %410 = vmax.xlane.f32.xlu0 %v409_v35  ;;  %v87_v34 = vld [vmem:[%s3352_s0 + $0x278] sm:$0xff]  ;;  %v86_v35 = vld [vmem:[%s3352_s0 + $0x270] sm:$0xff] }
  0x67   :  { %419 = vmax.xlane.f32.xlu1 %v418_v38  ;;  %416 = vmax.xlane.f32.xlu0 %v415_v39  ;;  %v502_v38 = vsel %vm264_vm0, %v87_v34, -inf  ;;  %v499_v39 = vsel %vm264_vm0, %v86_v35, -inf }
  0x6b   :  { %425 = vmax.xlane.f32.xlu1 %v424_v42  ;;  %422 = vmax.xlane.f32.xlu0 %v421_v43 }
  0x6f   :  { %431 = vmax.xlane.f32.xlu1 %v430_v46  ;;  %428 = vmax.xlane.f32.xlu0 %v427_v47  ;;  %v91_v46 = vld [vmem:[%s3352_s0 + $0x298] sm:$0xff]  ;;  %v90_v47 = vld [vmem:[%s3352_s0 + $0x290] sm:$0xff] }
  0x73   :  { %437 = vmax.xlane.f32.xlu1 %v436_v50  ;;  %434 = vmax.xlane.f32.xlu0 %v433_v51  ;;  %v514_v50 = vsel %vm264_vm0, %v91_v46, -inf  ;;  %v511_v51 = vsel %vm264_vm0, %v90_v47, -inf }
  0x77   :  { %443 = vmax.xlane.f32.xlu1 %v442_v54  ;;  %440 = vmax.xlane.f32.xlu0 %v439_v55 }
  0x7b   :  { %449 = vmax.xlane.f32.xlu1 %v448_v58  ;;  %446 = vmax.xlane.f32.xlu0 %v445_v59  ;;  %v95_v58 = vld [vmem:[%s3352_s0 + $0x2b8] sm:$0xff]  ;;  %v94_v59 = vld [vmem:[%s3352_s0 + $0x2b0] sm:$0xff] }
  0x7f   :  { %455 = vmax.xlane.f32.xlu1 %v454_v62  ;;  %452 = vmax.xlane.f32.xlu0 %v451_v63  ;;  %v526_v62 = vsel %vm264_vm0, %v95_v58, -inf  ;;  %v523_v63 = vsel %vm264_vm0, %v94_v59, -inf }
  0x83   :  { %461 = vmax.xlane.f32.xlu1 %v460_v2  ;;  %458 = vmax.xlane.f32.xlu0 %v457_v3 }
  0x87   :  { %467 = vmax.xlane.f32.xlu1 %v466_v6  ;;  %464 = vmax.xlane.f32.xlu0 %v463_v7  ;;  %v99_v6 = vld [vmem:[%s3352_s0 + $0x2d8] sm:$0xff]  ;;  %v98_v7 = vld [vmem:[%s3352_s0 + $0x2d0] sm:$0xff] }
  0x8b   :  { %473 = vmax.xlane.f32.xlu1 %v472_v10  ;;  %470 = vmax.xlane.f32.xlu0 %v469_v11  ;;  %v538_v10 = vsel %vm264_vm0, %v99_v6, -inf  ;;  %v535_v11 = vsel %vm264_vm0, %v98_v7, -inf }
  0x8f   :  { %479 = vmax.xlane.f32.xlu1 %v478_v14  ;;  %476 = vmax.xlane.f32.xlu0 %v475_v15 }
  0x90   :  { %v273_v18 = vpop.xlane.xlu1 %272  ;;  %v267_v19 = vpop.xlane.xlu0 %266 }
  0x91   :  { %1036 = vst.msk [vmem:[%s3353_s1 + $0x10] sm:$0xff] %vm1033_vm1, %v273_v18  ;;  %1034 = vst.msk [vmem:[%s3353_s1] sm:$0xff] %vm1033_vm1, %v267_v19  ;;  %v103_v18 = vld [vmem:[%s3352_s0 + $0x2f8] sm:$0xff]  ;;  %v102_v19 = vld [vmem:[%s3352_s0 + $0x2f0] sm:$0xff] }
  0x92   :  { %v550_v22 = vsel %vm264_vm0, %v103_v18, -inf  ;;  %v547_v23 = vsel %vm264_vm0, %v102_v19, -inf }
  0x93   :  { %485 = vmax.xlane.f32.xlu1 %v484_v20  ;;  %482 = vmax.xlane.f32.xlu0 %v481_v21 }
  0x94   :  { %v276_v24 = vpop.xlane.xlu1 %275  ;;  %v270_v25 = vpop.xlane.xlu0 %269 }
  0x95   :  { %1037 = vst.msk [vmem:[%s3353_s1 + $0x18] sm:$0xff] %vm1033_vm1, %v276_v24  ;;  %1035 = vst.msk [vmem:[%s3353_s1 + $0x8] sm:$0xff] %vm1033_vm1, %v270_v25  ;;  %v105_v24 = vld [vmem:[%s3352_s0 + $0x308] sm:$0xff]  ;;  %v104_v25 = vld [vmem:[%s3352_s0 + $0x300] sm:$0xff] }
  0x96   :  { %v556_v28 = vsel %vm264_vm0, %v105_v24, -inf  ;;  %v553_v29 = vsel %vm264_vm0, %v104_v25, -inf }
  0x97   :  { %491 = vmax.xlane.f32.xlu1 %v490_v26  ;;  %488 = vmax.xlane.f32.xlu0 %v487_v27 }
  0x98   :  { %v282_v30 = vpop.xlane.xlu1 %281  ;;  %v279_v31 = vpop.xlane.xlu0 %278 }
  0x99   :  { %1039 = vst.msk [vmem:[%s3353_s1 + $0x28] sm:$0xff] %vm1033_vm1, %v282_v30  ;;  %1038 = vst.msk [vmem:[%s3353_s1 + $0x20] sm:$0xff] %vm1033_vm1, %v279_v31  ;;  %v107_v30 = vld [vmem:[%s3352_s0 + $0x318] sm:$0xff]  ;;  %v106_v31 = vld [vmem:[%s3352_s0 + $0x310] sm:$0xff] }
  0x9a   :  { %v562_v34 = vsel %vm264_vm0, %v107_v30, -inf  ;;  %v559_v35 = vsel %vm264_vm0, %v106_v31, -inf }
  0x9b   :  { %497 = vmax.xlane.f32.xlu1 %v496_v32  ;;  %494 = vmax.xlane.f32.xlu0 %v493_v33 }
  0x9c   :  { %v288_v36 = vpop.xlane.xlu1 %287  ;;  %v285_v37 = vpop.xlane.xlu0 %284 }
  0x9d   :  { %1041 = vst.msk [vmem:[%s3353_s1 + $0x38] sm:$0xff] %vm1033_vm1, %v288_v36  ;;  %1040 = vst.msk [vmem:[%s3353_s1 + $0x30] sm:$0xff] %vm1033_vm1, %v285_v37  ;;  %v109_v36 = vld [vmem:[%s3352_s0 + $0x328] sm:$0xff]  ;;  %v108_v37 = vld [vmem:[%s3352_s0 + $0x320] sm:$0xff] }
  0x9e   :  { %v568_v40 = vsel %vm264_vm0, %v109_v36, -inf  ;;  %v565_v41 = vsel %vm264_vm0, %v108_v37, -inf }
  0x9f   :  { %503 = vmax.xlane.f32.xlu1 %v502_v38  ;;  %500 = vmax.xlane.f32.xlu0 %v499_v39 }
  0xa0   :  { %v294_v42 = vpop.xlane.xlu1 %293  ;;  %v291_v43 = vpop.xlane.xlu0 %290 }
  0xa1   :  { %1043 = vst.msk [vmem:[%s3353_s1 + $0x48] sm:$0xff] %vm1033_vm1, %v294_v42  ;;  %1042 = vst.msk [vmem:[%s3353_s1 + $0x40] sm:$0xff] %vm1033_vm1, %v291_v43  ;;  %v111_v42 = vld [vmem:[%s3352_s0 + $0x338] sm:$0xff]  ;;  %v110_v43 = vld [vmem:[%s3352_s0 + $0x330] sm:$0xff] }
  0xa2   :  { %v574_v46 = vsel %vm264_vm0, %v111_v42, -inf  ;;  %v571_v47 = vsel %vm264_vm0, %v110_v43, -inf }
  0xa3   :  { %509 = vmax.xlane.f32.xlu1 %v508_v44  ;;  %506 = vmax.xlane.f32.xlu0 %v505_v45 }
  0xa4   :  { %v300_v48 = vpop.xlane.xlu1 %299  ;;  %v297_v49 = vpop.xlane.xlu0 %296 }
  0xa5   :  { %1045 = vst.msk [vmem:[%s3353_s1 + $0x58] sm:$0xff] %vm1033_vm1, %v300_v48  ;;  %1044 = vst.msk [vmem:[%s3353_s1 + $0x50] sm:$0xff] %vm1033_vm1, %v297_v49  ;;  %v113_v48 = vld [vmem:[%s3352_s0 + $0x348] sm:$0xff]  ;;  %v112_v49 = vld [vmem:[%s3352_s0 + $0x340] sm:$0xff] }
  0xa6   :  { %v580_v52 = vsel %vm264_vm0, %v113_v48, -inf  ;;  %v577_v53 = vsel %vm264_vm0, %v112_v49, -inf }
  0xa7   :  { %515 = vmax.xlane.f32.xlu1 %v514_v50  ;;  %512 = vmax.xlane.f32.xlu0 %v511_v51 }
  0xa8   :  { %v306_v54 = vpop.xlane.xlu1 %305  ;;  %v303_v55 = vpop.xlane.xlu0 %302 }
  0xa9   :  { %1047 = vst.msk [vmem:[%s3353_s1 + $0x68] sm:$0xff] %vm1033_vm1, %v306_v54  ;;  %1046 = vst.msk [vmem:[%s3353_s1 + $0x60] sm:$0xff] %vm1033_vm1, %v303_v55  ;;  %v115_v54 = vld [vmem:[%s3352_s0 + $0x358] sm:$0xff]  ;;  %v114_v55 = vld [vmem:[%s3352_s0 + $0x350] sm:$0xff] }
  0xaa   :  { %v586_v58 = vsel %vm264_vm0, %v115_v54, -inf  ;;  %v583_v59 = vsel %vm264_vm0, %v114_v55, -inf }
  0xab   :  { %521 = vmax.xlane.f32.xlu1 %v520_v56  ;;  %518 = vmax.xlane.f32.xlu0 %v517_v57 }
  0xac   :  { %v312_v60 = vpop.xlane.xlu1 %311  ;;  %v309_v61 = vpop.xlane.xlu0 %308 }
  0xad   :  { %1049 = vst.msk [vmem:[%s3353_s1 + $0x78] sm:$0xff] %vm1033_vm1, %v312_v60  ;;  %1048 = vst.msk [vmem:[%s3353_s1 + $0x70] sm:$0xff] %vm1033_vm1, %v309_v61  ;;  %v117_v60 = vld [vmem:[%s3352_s0 + $0x368] sm:$0xff]  ;;  %v116_v61 = vld [vmem:[%s3352_s0 + $0x360] sm:$0xff] }
  0xae   :  { %v592_v0 = vsel %vm264_vm0, %v117_v60, -inf  ;;  %v589_v1 = vsel %vm264_vm0, %v116_v61, -inf }
  0xaf   :  { %527 = vmax.xlane.f32.xlu1 %v526_v62  ;;  %524 = vmax.xlane.f32.xlu0 %v523_v63 }
  0xb0   :  { %v318_v2 = vpop.xlane.xlu1 %317  ;;  %v315_v3 = vpop.xlane.xlu0 %314 }
  0xb1   :  { %1051 = vst.msk [vmem:[%s3353_s1 + $0x88] sm:$0xff] %vm1033_vm1, %v318_v2  ;;  %1050 = vst.msk [vmem:[%s3353_s1 + $0x80] sm:$0xff] %vm1033_vm1, %v315_v3  ;;  %v119_v2 = vld [vmem:[%s3352_s0 + $0x378] sm:$0xff]  ;;  %v118_v3 = vld [vmem:[%s3352_s0 + $0x370] sm:$0xff] }
  0xb2   :  { %v598_v6 = vsel %vm264_vm0, %v119_v2, -inf  ;;  %v595_v7 = vsel %vm264_vm0, %v118_v3, -inf }
  0xb3   :  { %533 = vmax.xlane.f32.xlu1 %v532_v4  ;;  %530 = vmax.xlane.f32.xlu0 %v529_v5 }
  0xb4   :  { %v324_v8 = vpop.xlane.xlu1 %323  ;;  %v321_v9 = vpop.xlane.xlu0 %320 }
  0xb5   :  { %1053 = vst.msk [vmem:[%s3353_s1 + $0x98] sm:$0xff] %vm1033_vm1, %v324_v8  ;;  %1052 = vst.msk [vmem:[%s3353_s1 + $0x90] sm:$0xff] %vm1033_vm1, %v321_v9  ;;  %v121_v8 = vld [vmem:[%s3352_s0 + $0x388] sm:$0xff]  ;;  %v120_v9 = vld [vmem:[%s3352_s0 + $0x380] sm:$0xff] }
  0xb6   :  { %v604_v12 = vsel %vm264_vm0, %v121_v8, -inf  ;;  %v601_v13 = vsel %vm264_vm0, %v120_v9, -inf }
  0xb7   :  { %539 = vmax.xlane.f32.xlu1 %v538_v10  ;;  %536 = vmax.xlane.f32.xlu0 %v535_v11 }
  0xb8   :  { %v330_v14 = vpop.xlane.xlu1 %329  ;;  %v327_v15 = vpop.xlane.xlu0 %326 }
  0xb9   :  { %1055 = vst.msk [vmem:[%s3353_s1 + $0xa8] sm:$0xff] %vm1033_vm1, %v330_v14  ;;  %1054 = vst.msk [vmem:[%s3353_s1 + $0xa0] sm:$0xff] %vm1033_vm1, %v327_v15  ;;  %v123_v14 = vld [vmem:[%s3352_s0 + $0x398] sm:$0xff]  ;;  %v122_v15 = vld [vmem:[%s3352_s0 + $0x390] sm:$0xff] }
  0xba   :  { %v610_v18 = vsel %vm264_vm0, %v123_v14, -inf  ;;  %v607_v19 = vsel %vm264_vm0, %v122_v15, -inf }
  0xbb   :  { %545 = vmax.xlane.f32.xlu1 %v544_v16  ;;  %542 = vmax.xlane.f32.xlu0 %v541_v17 }
  0xbc   :  { %v336_v20 = vpop.xlane.xlu1 %335  ;;  %v333_v21 = vpop.xlane.xlu0 %332 }
  0xbd   :  { %1057 = vst.msk [vmem:[%s3353_s1 + $0xb8] sm:$0xff] %vm1033_vm1, %v336_v20  ;;  %1056 = vst.msk [vmem:[%s3353_s1 + $0xb0] sm:$0xff] %vm1033_vm1, %v333_v21  ;;  %v125_v20 = vld [vmem:[%s3352_s0 + $0x3a8] sm:$0xff]  ;;  %v124_v21 = vld [vmem:[%s3352_s0 + $0x3a0] sm:$0xff] }
  0xbe   :  { %v616_v24 = vsel %vm264_vm0, %v125_v20, -inf  ;;  %v613_v25 = vsel %vm264_vm0, %v124_v21, -inf }
  0xbf   :  { %551 = vmax.xlane.f32.xlu1 %v550_v22  ;;  %548 = vmax.xlane.f32.xlu0 %v547_v23 }
  0xc0   :  { %v342_v26 = vpop.xlane.xlu1 %341  ;;  %v339_v27 = vpop.xlane.xlu0 %338 }
  0xc1   :  { %1059 = vst.msk [vmem:[%s3353_s1 + $0xc8] sm:$0xff] %vm1033_vm1, %v342_v26  ;;  %1058 = vst.msk [vmem:[%s3353_s1 + $0xc0] sm:$0xff] %vm1033_vm1, %v339_v27  ;;  %v127_v26 = vld [vmem:[%s3352_s0 + $0x3b8] sm:$0xff]  ;;  %v126_v27 = vld [vmem:[%s3352_s0 + $0x3b0] sm:$0xff] }
  0xc2   :  { %v622_v30 = vsel %vm264_vm0, %v127_v26, -inf  ;;  %v619_v31 = vsel %vm264_vm0, %v126_v27, -inf }
  0xc3   :  { %557 = vmax.xlane.f32.xlu1 %v556_v28  ;;  %554 = vmax.xlane.f32.xlu0 %v553_v29 }
  0xc4   :  { %v348_v32 = vpop.xlane.xlu1 %347  ;;  %v345_v33 = vpop.xlane.xlu0 %344 }
  0xc5   :  { %1061 = vst.msk [vmem:[%s3353_s1 + $0xd8] sm:$0xff] %vm1033_vm1, %v348_v32  ;;  %1060 = vst.msk [vmem:[%s3353_s1 + $0xd0] sm:$0xff] %vm1033_vm1, %v345_v33  ;;  %v129_v32 = vld [vmem:[%s3352_s0 + $0x3c8] sm:$0xff]  ;;  %v128_v33 = vld [vmem:[%s3352_s0 + $0x3c0] sm:$0xff] }
  0xc6   :  { %v628_v36 = vsel %vm264_vm0, %v129_v32, -inf  ;;  %v625_v37 = vsel %vm264_vm0, %v128_v33, -inf }
  0xc7   :  { %563 = vmax.xlane.f32.xlu1 %v562_v34  ;;  %560 = vmax.xlane.f32.xlu0 %v559_v35 }
  0xc8   :  { %v354_v38 = vpop.xlane.xlu1 %353  ;;  %v351_v39 = vpop.xlane.xlu0 %350 }
  0xc9   :  { %1063 = vst.msk [vmem:[%s3353_s1 + $0xe8] sm:$0xff] %vm1033_vm1, %v354_v38  ;;  %1062 = vst.msk [vmem:[%s3353_s1 + $0xe0] sm:$0xff] %vm1033_vm1, %v351_v39  ;;  %v131_v38 = vld [vmem:[%s3352_s0 + $0x3d8] sm:$0xff]  ;;  %v130_v39 = vld [vmem:[%s3352_s0 + $0x3d0] sm:$0xff] }
  0xca   :  { %v634_v42 = vsel %vm264_vm0, %v131_v38, -inf  ;;  %v631_v43 = vsel %vm264_vm0, %v130_v39, -inf }
  0xcb   :  { %569 = vmax.xlane.f32.xlu1 %v568_v40  ;;  %566 = vmax.xlane.f32.xlu0 %v565_v41 }
  0xcc   :  { %v360_v44 = vpop.xlane.xlu1 %359  ;;  %v357_v45 = vpop.xlane.xlu0 %356 }
  0xcd   :  { %1065 = vst.msk [vmem:[%s3353_s1 + $0xf8] sm:$0xff] %vm1033_vm1, %v360_v44  ;;  %1064 = vst.msk [vmem:[%s3353_s1 + $0xf0] sm:$0xff] %vm1033_vm1, %v357_v45  ;;  %v133_v44 = vld [vmem:[%s3352_s0 + $0x3e8] sm:$0xff]  ;;  %v132_v45 = vld [vmem:[%s3352_s0 + $0x3e0] sm:$0xff] }
  0xce   :  { %v640_v48 = vsel %vm264_vm0, %v133_v44, -inf  ;;  %v637_v49 = vsel %vm264_vm0, %v132_v45, -inf }
  0xcf   :  { %575 = vmax.xlane.f32.xlu1 %v574_v46  ;;  %572 = vmax.xlane.f32.xlu0 %v571_v47 }
  0xd0   :  { %v366_v50 = vpop.xlane.xlu1 %365  ;;  %v363_v51 = vpop.xlane.xlu0 %362 }
  0xd1   :  { %1067 = vst.msk [vmem:[%s3353_s1 + $0x108] sm:$0xff] %vm1033_vm1, %v366_v50  ;;  %1066 = vst.msk [vmem:[%s3353_s1 + $0x100] sm:$0xff] %vm1033_vm1, %v363_v51  ;;  %v135_v50 = vld [vmem:[%s3352_s0 + $0x3f8] sm:$0xff]  ;;  %v134_v51 = vld [vmem:[%s3352_s0 + $0x3f0] sm:$0xff] }
  0xd2   :  { %v646_v54 = vsel %vm264_vm0, %v135_v50, -inf  ;;  %v643_v55 = vsel %vm264_vm0, %v134_v51, -inf }
  0xd3   :  { %581 = vmax.xlane.f32.xlu1 %v580_v52  ;;  %578 = vmax.xlane.f32.xlu0 %v577_v53 }
  0xd4   :  { %v372_v56 = vpop.xlane.xlu1 %371  ;;  %v369_v57 = vpop.xlane.xlu0 %368 }
  0xd5   :  { %1069 = vst.msk [vmem:[%s3353_s1 + $0x118] sm:$0xff] %vm1033_vm1, %v372_v56  ;;  %1068 = vst.msk [vmem:[%s3353_s1 + $0x110] sm:$0xff] %vm1033_vm1, %v369_v57  ;;  %v137_v56 = vld [vmem:[%s3352_s0 + $0x408] sm:$0xff]  ;;  %v136_v57 = vld [vmem:[%s3352_s0 + $0x400] sm:$0xff] }
  0xd6   :  { %v652_v60 = vsel %vm264_vm0, %v137_v56, -inf  ;;  %v649_v61 = vsel %vm264_vm0, %v136_v57, -inf }
  0xd7   :  { %587 = vmax.xlane.f32.xlu1 %v586_v58  ;;  %584 = vmax.xlane.f32.xlu0 %v583_v59 }
  0xd8   :  { %v378_v62 = vpop.xlane.xlu1 %377  ;;  %v375_v63 = vpop.xlane.xlu0 %374 }
  0xd9   :  { %1071 = vst.msk [vmem:[%s3353_s1 + $0x128] sm:$0xff] %vm1033_vm1, %v378_v62  ;;  %1070 = vst.msk [vmem:[%s3353_s1 + $0x120] sm:$0xff] %vm1033_vm1, %v375_v63  ;;  %v139_v62 = vld [vmem:[%s3352_s0 + $0x418] sm:$0xff]  ;;  %v138_v63 = vld [vmem:[%s3352_s0 + $0x410] sm:$0xff] }
  0xda   :  { %v658_v2 = vsel %vm264_vm0, %v139_v62, -inf  ;;  %v655_v3 = vsel %vm264_vm0, %v138_v63, -inf }
  0xdb   :  { %593 = vmax.xlane.f32.xlu1 %v592_v0  ;;  %590 = vmax.xlane.f32.xlu0 %v589_v1 }
  0xdc   :  { %v384_v4 = vpop.xlane.xlu1 %383  ;;  %v381_v5 = vpop.xlane.xlu0 %380 }
  0xdd   :  { %1073 = vst.msk [vmem:[%s3353_s1 + $0x138] sm:$0xff] %vm1033_vm1, %v384_v4  ;;  %1072 = vst.msk [vmem:[%s3353_s1 + $0x130] sm:$0xff] %vm1033_vm1, %v381_v5  ;;  %v141_v4 = vld [vmem:[%s3352_s0 + $0x428] sm:$0xff]  ;;  %v140_v5 = vld [vmem:[%s3352_s0 + $0x420] sm:$0xff] }
  0xde   :  { %v664_v8 = vsel %vm264_vm0, %v141_v4, -inf  ;;  %v661_v9 = vsel %vm264_vm0, %v140_v5, -inf }
  0xdf   :  { %599 = vmax.xlane.f32.xlu1 %v598_v6  ;;  %596 = vmax.xlane.f32.xlu0 %v595_v7 }
  0xe0   :  { %v390_v10 = vpop.xlane.xlu1 %389  ;;  %v387_v11 = vpop.xlane.xlu0 %386 }
  0xe1   :  { %1075 = vst.msk [vmem:[%s3353_s1 + $0x148] sm:$0xff] %vm1033_vm1, %v390_v10  ;;  %1074 = vst.msk [vmem:[%s3353_s1 + $0x140] sm:$0xff] %vm1033_vm1, %v387_v11  ;;  %v143_v10 = vld [vmem:[%s3352_s0 + $0x438] sm:$0xff]  ;;  %v142_v11 = vld [vmem:[%s3352_s0 + $0x430] sm:$0xff] }
  0xe2   :  { %v670_v14 = vsel %vm264_vm0, %v143_v10, -inf  ;;  %v667_v15 = vsel %vm264_vm0, %v142_v11, -inf }
  0xe3   :  { %605 = vmax.xlane.f32.xlu1 %v604_v12  ;;  %602 = vmax.xlane.f32.xlu0 %v601_v13 }
  0xe4   :  { %v396_v16 = vpop.xlane.xlu1 %395  ;;  %v393_v17 = vpop.xlane.xlu0 %392 }
  0xe5   :  { %1077 = vst.msk [vmem:[%s3353_s1 + $0x158] sm:$0xff] %vm1033_vm1, %v396_v16  ;;  %1076 = vst.msk [vmem:[%s3353_s1 + $0x150] sm:$0xff] %vm1033_vm1, %v393_v17  ;;  %v145_v16 = vld [vmem:[%s3352_s0 + $0x448] sm:$0xff]  ;;  %v144_v17 = vld [vmem:[%s3352_s0 + $0x440] sm:$0xff] }
  0xe6   :  { %v676_v20 = vsel %vm264_vm0, %v145_v16, -inf  ;;  %v673_v21 = vsel %vm264_vm0, %v144_v17, -inf }
  0xe7   :  { %611 = vmax.xlane.f32.xlu1 %v610_v18  ;;  %608 = vmax.xlane.f32.xlu0 %v607_v19 }
  0xe8   :  { %v402_v22 = vpop.xlane.xlu1 %401  ;;  %v399_v23 = vpop.xlane.xlu0 %398 }
  0xe9   :  { %1079 = vst.msk [vmem:[%s3353_s1 + $0x168] sm:$0xff] %vm1033_vm1, %v402_v22  ;;  %1078 = vst.msk [vmem:[%s3353_s1 + $0x160] sm:$0xff] %vm1033_vm1, %v399_v23  ;;  %v147_v22 = vld [vmem:[%s3352_s0 + $0x458] sm:$0xff]  ;;  %v146_v23 = vld [vmem:[%s3352_s0 + $0x450] sm:$0xff] }
  0xea   :  { %v682_v26 = vsel %vm264_vm0, %v147_v22, -inf  ;;  %v679_v27 = vsel %vm264_vm0, %v146_v23, -inf }
  0xeb   :  { %617 = vmax.xlane.f32.xlu1 %v616_v24  ;;  %614 = vmax.xlane.f32.xlu0 %v613_v25 }
  0xec   :  { %v408_v28 = vpop.xlane.xlu1 %407  ;;  %v405_v29 = vpop.xlane.xlu0 %404 }
  0xed   :  { %1081 = vst.msk [vmem:[%s3353_s1 + $0x178] sm:$0xff] %vm1033_vm1, %v408_v28  ;;  %1080 = vst.msk [vmem:[%s3353_s1 + $0x170] sm:$0xff] %vm1033_vm1, %v405_v29  ;;  %v149_v28 = vld [vmem:[%s3352_s0 + $0x468] sm:$0xff]  ;;  %v148_v29 = vld [vmem:[%s3352_s0 + $0x460] sm:$0xff] }
  0xee   :  { %v688_v32 = vsel %vm264_vm0, %v149_v28, -inf  ;;  %v685_v33 = vsel %vm264_vm0, %v148_v29, -inf }
  0xef   :  { %623 = vmax.xlane.f32.xlu1 %v622_v30  ;;  %620 = vmax.xlane.f32.xlu0 %v619_v31 }
  0xf0   :  { %v414_v34 = vpop.xlane.xlu1 %413  ;;  %v411_v35 = vpop.xlane.xlu0 %410 }
  0xf1   :  { %1083 = vst.msk [vmem:[%s3353_s1 + $0x188] sm:$0xff] %vm1033_vm1, %v414_v34  ;;  %1082 = vst.msk [vmem:[%s3353_s1 + $0x180] sm:$0xff] %vm1033_vm1, %v411_v35  ;;  %v151_v34 = vld [vmem:[%s3352_s0 + $0x478] sm:$0xff]  ;;  %v150_v35 = vld [vmem:[%s3352_s0 + $0x470] sm:$0xff] }
  0xf2   :  { %v694_v38 = vsel %vm264_vm0, %v151_v34, -inf  ;;  %v691_v39 = vsel %vm264_vm0, %v150_v35, -inf }
  0xf3   :  { %629 = vmax.xlane.f32.xlu1 %v628_v36  ;;  %626 = vmax.xlane.f32.xlu0 %v625_v37 }
  0xf4   :  { %v420_v40 = vpop.xlane.xlu1 %419  ;;  %v417_v41 = vpop.xlane.xlu0 %416 }
  0xf5   :  { %1085 = vst.msk [vmem:[%s3353_s1 + $0x198] sm:$0xff] %vm1033_vm1, %v420_v40  ;;  %1084 = vst.msk [vmem:[%s3353_s1 + $0x190] sm:$0xff] %vm1033_vm1, %v417_v41  ;;  %v153_v40 = vld [vmem:[%s3352_s0 + $0x488] sm:$0xff]  ;;  %v152_v41 = vld [vmem:[%s3352_s0 + $0x480] sm:$0xff] }
  0xf6   :  { %v700_v44 = vsel %vm264_vm0, %v153_v40, -inf  ;;  %v697_v45 = vsel %vm264_vm0, %v152_v41, -inf }
  0xf7   :  { %635 = vmax.xlane.f32.xlu1 %v634_v42  ;;  %632 = vmax.xlane.f32.xlu0 %v631_v43 }
  0xf8   :  { %v426_v46 = vpop.xlane.xlu1 %425  ;;  %v423_v47 = vpop.xlane.xlu0 %422 }
  0xf9   :  { %1087 = vst.msk [vmem:[%s3353_s1 + $0x1a8] sm:$0xff] %vm1033_vm1, %v426_v46  ;;  %1086 = vst.msk [vmem:[%s3353_s1 + $0x1a0] sm:$0xff] %vm1033_vm1, %v423_v47  ;;  %v155_v46 = vld [vmem:[%s3352_s0 + $0x498] sm:$0xff]  ;;  %v154_v47 = vld [vmem:[%s3352_s0 + $0x490] sm:$0xff] }
  0xfa   :  { %v706_v50 = vsel %vm264_vm0, %v155_v46, -inf  ;;  %v703_v51 = vsel %vm264_vm0, %v154_v47, -inf }
  0xfb   :  { %641 = vmax.xlane.f32.xlu1 %v640_v48  ;;  %638 = vmax.xlane.f32.xlu0 %v637_v49 }
  0xfc   :  { %v432_v52 = vpop.xlane.xlu1 %431  ;;  %v429_v53 = vpop.xlane.xlu0 %428 }
  0xfd   :  { %1089 = vst.msk [vmem:[%s3353_s1 + $0x1b8] sm:$0xff] %vm1033_vm1, %v432_v52  ;;  %1088 = vst.msk [vmem:[%s3353_s1 + $0x1b0] sm:$0xff] %vm1033_vm1, %v429_v53  ;;  %v157_v52 = vld [vmem:[%s3352_s0 + $0x4a8] sm:$0xff]  ;;  %v156_v53 = vld [vmem:[%s3352_s0 + $0x4a0] sm:$0xff] }
  0xfe   :  { %v712_v56 = vsel %vm264_vm0, %v157_v52, -inf  ;;  %v709_v57 = vsel %vm264_vm0, %v156_v53, -inf }
  0xff   :  { %647 = vmax.xlane.f32.xlu1 %v646_v54  ;;  %644 = vmax.xlane.f32.xlu0 %v643_v55 }
 0x100   :  { %v438_v58 = vpop.xlane.xlu1 %437  ;;  %v435_v59 = vpop.xlane.xlu0 %434 }
 0x101   :  { %1091 = vst.msk [vmem:[%s3353_s1 + $0x1c8] sm:$0xff] %vm1033_vm1, %v438_v58  ;;  %1090 = vst.msk [vmem:[%s3353_s1 + $0x1c0] sm:$0xff] %vm1033_vm1, %v435_v59  ;;  %v159_v58 = vld [vmem:[%s3352_s0 + $0x4b8] sm:$0xff]  ;;  %v158_v59 = vld [vmem:[%s3352_s0 + $0x4b0] sm:$0xff] }
 0x102   :  { %v718_v62 = vsel %vm264_vm0, %v159_v58, -inf  ;;  %v715_v63 = vsel %vm264_vm0, %v158_v59, -inf }
 0x103   :  { %653 = vmax.xlane.f32.xlu1 %v652_v60  ;;  %650 = vmax.xlane.f32.xlu0 %v649_v61 }
 0x104   :  { %v444_v0 = vpop.xlane.xlu1 %443  ;;  %v441_v1 = vpop.xlane.xlu0 %440 }
 0x105   :  { %1093 = vst.msk [vmem:[%s3353_s1 + $0x1d8] sm:$0xff] %vm1033_vm1, %v444_v0  ;;  %1092 = vst.msk [vmem:[%s3353_s1 + $0x1d0] sm:$0xff] %vm1033_vm1, %v441_v1  ;;  %v161_v0 = vld [vmem:[%s3352_s0 + $0x4c8] sm:$0xff]  ;;  %v160_v1 = vld [vmem:[%s3352_s0 + $0x4c0] sm:$0xff] }
 0x106   :  { %v724_v4 = vsel %vm264_vm0, %v161_v0, -inf  ;;  %v721_v5 = vsel %vm264_vm0, %v160_v1, -inf }
 0x107   :  { %659 = vmax.xlane.f32.xlu1 %v658_v2  ;;  %656 = vmax.xlane.f32.xlu0 %v655_v3 }
 0x108   :  { %v450_v6 = vpop.xlane.xlu1 %449  ;;  %v447_v7 = vpop.xlane.xlu0 %446 }
 0x109   :  { %1095 = vst.msk [vmem:[%s3353_s1 + $0x1e8] sm:$0xff] %vm1033_vm1, %v450_v6  ;;  %1094 = vst.msk [vmem:[%s3353_s1 + $0x1e0] sm:$0xff] %vm1033_vm1, %v447_v7  ;;  %v163_v6 = vld [vmem:[%s3352_s0 + $0x4d8] sm:$0xff]  ;;  %v162_v7 = vld [vmem:[%s3352_s0 + $0x4d0] sm:$0xff] }
 0x10a   :  { %v730_v10 = vsel %vm264_vm0, %v163_v6, -inf  ;;  %v727_v11 = vsel %vm264_vm0, %v162_v7, -inf }
 0x10b   :  { %665 = vmax.xlane.f32.xlu1 %v664_v8  ;;  %662 = vmax.xlane.f32.xlu0 %v661_v9 }
 0x10c   :  { %v456_v12 = vpop.xlane.xlu1 %455  ;;  %v453_v13 = vpop.xlane.xlu0 %452 }
 0x10d   :  { %1097 = vst.msk [vmem:[%s3353_s1 + $0x1f8] sm:$0xff] %vm1033_vm1, %v456_v12  ;;  %1096 = vst.msk [vmem:[%s3353_s1 + $0x1f0] sm:$0xff] %vm1033_vm1, %v453_v13  ;;  %v165_v12 = vld [vmem:[%s3352_s0 + $0x4e8] sm:$0xff]  ;;  %v164_v13 = vld [vmem:[%s3352_s0 + $0x4e0] sm:$0xff] }
 0x10e   :  { %v736_v16 = vsel %vm264_vm0, %v165_v12, -inf  ;;  %v733_v17 = vsel %vm264_vm0, %v164_v13, -inf }
 0x10f   :  { %671 = vmax.xlane.f32.xlu1 %v670_v14  ;;  %668 = vmax.xlane.f32.xlu0 %v667_v15 }
 0x110   :  { %v462_v18 = vpop.xlane.xlu1 %461  ;;  %v459_v19 = vpop.xlane.xlu0 %458 }
 0x111   :  { %1099 = vst.msk [vmem:[%s3353_s1 + $0x208] sm:$0xff] %vm1033_vm1, %v462_v18  ;;  %1098 = vst.msk [vmem:[%s3353_s1 + $0x200] sm:$0xff] %vm1033_vm1, %v459_v19  ;;  %v167_v18 = vld [vmem:[%s3352_s0 + $0x4f8] sm:$0xff]  ;;  %v166_v19 = vld [vmem:[%s3352_s0 + $0x4f0] sm:$0xff] }
 0x112   :  { %v742_v22 = vsel %vm264_vm0, %v167_v18, -inf  ;;  %v739_v23 = vsel %vm264_vm0, %v166_v19, -inf }
 0x113   :  { %677 = vmax.xlane.f32.xlu1 %v676_v20  ;;  %674 = vmax.xlane.f32.xlu0 %v673_v21 }
 0x114   :  { %v468_v24 = vpop.xlane.xlu1 %467  ;;  %v465_v25 = vpop.xlane.xlu0 %464 }
 0x115   :  { %1101 = vst.msk [vmem:[%s3353_s1 + $0x218] sm:$0xff] %vm1033_vm1, %v468_v24  ;;  %1100 = vst.msk [vmem:[%s3353_s1 + $0x210] sm:$0xff] %vm1033_vm1, %v465_v25  ;;  %v169_v24 = vld [vmem:[%s3352_s0 + $0x508] sm:$0xff]  ;;  %v168_v25 = vld [vmem:[%s3352_s0 + $0x500] sm:$0xff] }
 0x116   :  { %v748_v28 = vsel %vm264_vm0, %v169_v24, -inf  ;;  %v745_v29 = vsel %vm264_vm0, %v168_v25, -inf }
 0x117   :  { %683 = vmax.xlane.f32.xlu1 %v682_v26  ;;  %680 = vmax.xlane.f32.xlu0 %v679_v27 }
 0x118   :  { %v474_v30 = vpop.xlane.xlu1 %473  ;;  %v471_v31 = vpop.xlane.xlu0 %470 }
 0x119   :  { %1103 = vst.msk [vmem:[%s3353_s1 + $0x228] sm:$0xff] %vm1033_vm1, %v474_v30  ;;  %1102 = vst.msk [vmem:[%s3353_s1 + $0x220] sm:$0xff] %vm1033_vm1, %v471_v31  ;;  %v171_v30 = vld [vmem:[%s3352_s0 + $0x518] sm:$0xff]  ;;  %v170_v31 = vld [vmem:[%s3352_s0 + $0x510] sm:$0xff] }
 0x11a   :  { %v754_v34 = vsel %vm264_vm0, %v171_v30, -inf  ;;  %v751_v35 = vsel %vm264_vm0, %v170_v31, -inf }
 0x11b   :  { %689 = vmax.xlane.f32.xlu1 %v688_v32  ;;  %686 = vmax.xlane.f32.xlu0 %v685_v33 }
 0x11c   :  { %v480_v36 = vpop.xlane.xlu1 %479  ;;  %v477_v37 = vpop.xlane.xlu0 %476 }
 0x11d   :  { %1105 = vst.msk [vmem:[%s3353_s1 + $0x238] sm:$0xff] %vm1033_vm1, %v480_v36  ;;  %1104 = vst.msk [vmem:[%s3353_s1 + $0x230] sm:$0xff] %vm1033_vm1, %v477_v37  ;;  %v173_v36 = vld [vmem:[%s3352_s0 + $0x528] sm:$0xff]  ;;  %v172_v37 = vld [vmem:[%s3352_s0 + $0x520] sm:$0xff] }
 0x11e   :  { %v760_v40 = vsel %vm264_vm0, %v173_v36, -inf  ;;  %v757_v41 = vsel %vm264_vm0, %v172_v37, -inf }
 0x11f   :  { %695 = vmax.xlane.f32.xlu1 %v694_v38  ;;  %692 = vmax.xlane.f32.xlu0 %v691_v39 }
 0x120   :  { %v486_v42 = vpop.xlane.xlu1 %485  ;;  %v483_v43 = vpop.xlane.xlu0 %482 }
 0x121   :  { %1107 = vst.msk [vmem:[%s3353_s1 + $0x248] sm:$0xff] %vm1033_vm1, %v486_v42  ;;  %1106 = vst.msk [vmem:[%s3353_s1 + $0x240] sm:$0xff] %vm1033_vm1, %v483_v43  ;;  %v175_v42 = vld [vmem:[%s3352_s0 + $0x538] sm:$0xff]  ;;  %v174_v43 = vld [vmem:[%s3352_s0 + $0x530] sm:$0xff] }
 0x122   :  { %v766_v46 = vsel %vm264_vm0, %v175_v42, -inf  ;;  %v763_v47 = vsel %vm264_vm0, %v174_v43, -inf }
 0x123   :  { %701 = vmax.xlane.f32.xlu1 %v700_v44  ;;  %698 = vmax.xlane.f32.xlu0 %v697_v45 }
 0x124   :  { %v492_v48 = vpop.xlane.xlu1 %491  ;;  %v489_v49 = vpop.xlane.xlu0 %488 }
 0x125   :  { %1109 = vst.msk [vmem:[%s3353_s1 + $0x258] sm:$0xff] %vm1033_vm1, %v492_v48  ;;  %1108 = vst.msk [vmem:[%s3353_s1 + $0x250] sm:$0xff] %vm1033_vm1, %v489_v49  ;;  %v177_v48 = vld [vmem:[%s3352_s0 + $0x548] sm:$0xff]  ;;  %v176_v49 = vld [vmem:[%s3352_s0 + $0x540] sm:$0xff] }
 0x126   :  { %v772_v52 = vsel %vm264_vm0, %v177_v48, -inf  ;;  %v769_v53 = vsel %vm264_vm0, %v176_v49, -inf }
 0x127   :  { %707 = vmax.xlane.f32.xlu1 %v706_v50  ;;  %704 = vmax.xlane.f32.xlu0 %v703_v51 }
 0x128   :  { %v498_v54 = vpop.xlane.xlu1 %497  ;;  %v495_v55 = vpop.xlane.xlu0 %494 }
 0x129   :  { %1111 = vst.msk [vmem:[%s3353_s1 + $0x268] sm:$0xff] %vm1033_vm1, %v498_v54  ;;  %1110 = vst.msk [vmem:[%s3353_s1 + $0x260] sm:$0xff] %vm1033_vm1, %v495_v55  ;;  %v179_v54 = vld [vmem:[%s3352_s0 + $0x558] sm:$0xff]  ;;  %v178_v55 = vld [vmem:[%s3352_s0 + $0x550] sm:$0xff] }
 0x12a   :  { %v778_v58 = vsel %vm264_vm0, %v179_v54, -inf  ;;  %v775_v59 = vsel %vm264_vm0, %v178_v55, -inf }
 0x12b   :  { %713 = vmax.xlane.f32.xlu1 %v712_v56  ;;  %710 = vmax.xlane.f32.xlu0 %v709_v57 }
 0x12c   :  { %v504_v60 = vpop.xlane.xlu1 %503  ;;  %v501_v61 = vpop.xlane.xlu0 %500 }
 0x12d   :  { %1113 = vst.msk [vmem:[%s3353_s1 + $0x278] sm:$0xff] %vm1033_vm1, %v504_v60  ;;  %1112 = vst.msk [vmem:[%s3353_s1 + $0x270] sm:$0xff] %vm1033_vm1, %v501_v61  ;;  %v181_v60 = vld [vmem:[%s3352_s0 + $0x568] sm:$0xff]  ;;  %v180_v61 = vld [vmem:[%s3352_s0 + $0x560] sm:$0xff] }
 0x12e   :  { %v784_v0 = vsel %vm264_vm0, %v181_v60, -inf  ;;  %v781_v1 = vsel %vm264_vm0, %v180_v61, -inf }
 0x12f   :  { %719 = vmax.xlane.f32.xlu1 %v718_v62  ;;  %716 = vmax.xlane.f32.xlu0 %v715_v63 }
 0x130   :  { %v510_v2 = vpop.xlane.xlu1 %509  ;;  %v507_v3 = vpop.xlane.xlu0 %506 }
 0x131   :  { %1115 = vst.msk [vmem:[%s3353_s1 + $0x288] sm:$0xff] %vm1033_vm1, %v510_v2  ;;  %1114 = vst.msk [vmem:[%s3353_s1 + $0x280] sm:$0xff] %vm1033_vm1, %v507_v3  ;;  %v183_v2 = vld [vmem:[%s3352_s0 + $0x578] sm:$0xff]  ;;  %v182_v3 = vld [vmem:[%s3352_s0 + $0x570] sm:$0xff] }
 0x132   :  { %v790_v6 = vsel %vm264_vm0, %v183_v2, -inf  ;;  %v787_v7 = vsel %vm264_vm0, %v182_v3, -inf }
 0x133   :  { %725 = vmax.xlane.f32.xlu1 %v724_v4  ;;  %722 = vmax.xlane.f32.xlu0 %v721_v5 }
 0x134   :  { %v516_v8 = vpop.xlane.xlu1 %515  ;;  %v513_v9 = vpop.xlane.xlu0 %512 }
 0x135   :  { %1117 = vst.msk [vmem:[%s3353_s1 + $0x298] sm:$0xff] %vm1033_vm1, %v516_v8  ;;  %1116 = vst.msk [vmem:[%s3353_s1 + $0x290] sm:$0xff] %vm1033_vm1, %v513_v9  ;;  %v185_v8 = vld [vmem:[%s3352_s0 + $0x588] sm:$0xff]  ;;  %v184_v9 = vld [vmem:[%s3352_s0 + $0x580] sm:$0xff] }
 0x136   :  { %v796_v12 = vsel %vm264_vm0, %v185_v8, -inf  ;;  %v793_v13 = vsel %vm264_vm0, %v184_v9, -inf }
 0x137   :  { %731 = vmax.xlane.f32.xlu1 %v730_v10  ;;  %728 = vmax.xlane.f32.xlu0 %v727_v11 }
 0x138   :  { %v522_v14 = vpop.xlane.xlu1 %521  ;;  %v519_v15 = vpop.xlane.xlu0 %518 }
 0x139   :  { %1119 = vst.msk [vmem:[%s3353_s1 + $0x2a8] sm:$0xff] %vm1033_vm1, %v522_v14  ;;  %1118 = vst.msk [vmem:[%s3353_s1 + $0x2a0] sm:$0xff] %vm1033_vm1, %v519_v15  ;;  %v187_v14 = vld [vmem:[%s3352_s0 + $0x598] sm:$0xff]  ;;  %v186_v15 = vld [vmem:[%s3352_s0 + $0x590] sm:$0xff] }
 0x13a   :  { %v802_v18 = vsel %vm264_vm0, %v187_v14, -inf  ;;  %v799_v19 = vsel %vm264_vm0, %v186_v15, -inf }
 0x13b   :  { %737 = vmax.xlane.f32.xlu1 %v736_v16  ;;  %734 = vmax.xlane.f32.xlu0 %v733_v17 }
 0x13c   :  { %v528_v20 = vpop.xlane.xlu1 %527  ;;  %v525_v21 = vpop.xlane.xlu0 %524 }
 0x13d   :  { %1121 = vst.msk [vmem:[%s3353_s1 + $0x2b8] sm:$0xff] %vm1033_vm1, %v528_v20  ;;  %1120 = vst.msk [vmem:[%s3353_s1 + $0x2b0] sm:$0xff] %vm1033_vm1, %v525_v21  ;;  %v189_v20 = vld [vmem:[%s3352_s0 + $0x5a8] sm:$0xff]  ;;  %v188_v21 = vld [vmem:[%s3352_s0 + $0x5a0] sm:$0xff] }
 0x13e   :  { %v808_v24 = vsel %vm264_vm0, %v189_v20, -inf  ;;  %v805_v25 = vsel %vm264_vm0, %v188_v21, -inf }
 0x13f   :  { %743 = vmax.xlane.f32.xlu1 %v742_v22  ;;  %740 = vmax.xlane.f32.xlu0 %v739_v23 }
 0x140   :  { %v534_v26 = vpop.xlane.xlu1 %533  ;;  %v531_v27 = vpop.xlane.xlu0 %530 }
 0x141   :  { %1123 = vst.msk [vmem:[%s3353_s1 + $0x2c8] sm:$0xff] %vm1033_vm1, %v534_v26  ;;  %1122 = vst.msk [vmem:[%s3353_s1 + $0x2c0] sm:$0xff] %vm1033_vm1, %v531_v27  ;;  %v191_v26 = vld [vmem:[%s3352_s0 + $0x5b8] sm:$0xff]  ;;  %v190_v27 = vld [vmem:[%s3352_s0 + $0x5b0] sm:$0xff] }
 0x142   :  { %v814_v30 = vsel %vm264_vm0, %v191_v26, -inf  ;;  %v811_v31 = vsel %vm264_vm0, %v190_v27, -inf }
 0x143   :  { %749 = vmax.xlane.f32.xlu1 %v748_v28  ;;  %746 = vmax.xlane.f32.xlu0 %v745_v29 }
 0x144   :  { %v540_v32 = vpop.xlane.xlu1 %539  ;;  %v537_v33 = vpop.xlane.xlu0 %536 }
 0x145   :  { %1125 = vst.msk [vmem:[%s3353_s1 + $0x2d8] sm:$0xff] %vm1033_vm1, %v540_v32  ;;  %1124 = vst.msk [vmem:[%s3353_s1 + $0x2d0] sm:$0xff] %vm1033_vm1, %v537_v33  ;;  %v193_v32 = vld [vmem:[%s3352_s0 + $0x5c8] sm:$0xff]  ;;  %v192_v33 = vld [vmem:[%s3352_s0 + $0x5c0] sm:$0xff] }
 0x146   :  { %v820_v36 = vsel %vm264_vm0, %v193_v32, -inf  ;;  %v817_v37 = vsel %vm264_vm0, %v192_v33, -inf }
 0x147   :  { %755 = vmax.xlane.f32.xlu1 %v754_v34  ;;  %752 = vmax.xlane.f32.xlu0 %v751_v35 }
 0x148   :  { %v546_v38 = vpop.xlane.xlu1 %545  ;;  %v543_v39 = vpop.xlane.xlu0 %542 }
 0x149   :  { %1127 = vst.msk [vmem:[%s3353_s1 + $0x2e8] sm:$0xff] %vm1033_vm1, %v546_v38  ;;  %1126 = vst.msk [vmem:[%s3353_s1 + $0x2e0] sm:$0xff] %vm1033_vm1, %v543_v39  ;;  %v195_v38 = vld [vmem:[%s3352_s0 + $0x5d8] sm:$0xff]  ;;  %v194_v39 = vld [vmem:[%s3352_s0 + $0x5d0] sm:$0xff] }
 0x14a   :  { %v826_v42 = vsel %vm264_vm0, %v195_v38, -inf  ;;  %v823_v43 = vsel %vm264_vm0, %v194_v39, -inf }
 0x14b   :  { %761 = vmax.xlane.f32.xlu1 %v760_v40  ;;  %758 = vmax.xlane.f32.xlu0 %v757_v41 }
 0x14c   :  { %v552_v44 = vpop.xlane.xlu1 %551  ;;  %v549_v45 = vpop.xlane.xlu0 %548 }
 0x14d   :  { %1129 = vst.msk [vmem:[%s3353_s1 + $0x2f8] sm:$0xff] %vm1033_vm1, %v552_v44  ;;  %1128 = vst.msk [vmem:[%s3353_s1 + $0x2f0] sm:$0xff] %vm1033_vm1, %v549_v45  ;;  %v197_v44 = vld [vmem:[%s3352_s0 + $0x5e8] sm:$0xff]  ;;  %v196_v45 = vld [vmem:[%s3352_s0 + $0x5e0] sm:$0xff] }
 0x14e   :  { %v832_v48 = vsel %vm264_vm0, %v197_v44, -inf  ;;  %v829_v49 = vsel %vm264_vm0, %v196_v45, -inf }
 0x14f   :  { %767 = vmax.xlane.f32.xlu1 %v766_v46  ;;  %764 = vmax.xlane.f32.xlu0 %v763_v47 }
 0x150   :  { %v558_v50 = vpop.xlane.xlu1 %557  ;;  %v555_v51 = vpop.xlane.xlu0 %554 }
 0x151   :  { %1131 = vst.msk [vmem:[%s3353_s1 + $0x308] sm:$0xff] %vm1033_vm1, %v558_v50  ;;  %1130 = vst.msk [vmem:[%s3353_s1 + $0x300] sm:$0xff] %vm1033_vm1, %v555_v51  ;;  %v199_v50 = vld [vmem:[%s3352_s0 + $0x5f8] sm:$0xff]  ;;  %v198_v51 = vld [vmem:[%s3352_s0 + $0x5f0] sm:$0xff] }
 0x152   :  { %v838_v54 = vsel %vm264_vm0, %v199_v50, -inf  ;;  %v835_v55 = vsel %vm264_vm0, %v198_v51, -inf }
 0x153   :  { %773 = vmax.xlane.f32.xlu1 %v772_v52  ;;  %770 = vmax.xlane.f32.xlu0 %v769_v53 }
 0x154   :  { %v564_v56 = vpop.xlane.xlu1 %563  ;;  %v561_v57 = vpop.xlane.xlu0 %560 }
 0x155   :  { %1133 = vst.msk [vmem:[%s3353_s1 + $0x318] sm:$0xff] %vm1033_vm1, %v564_v56  ;;  %1132 = vst.msk [vmem:[%s3353_s1 + $0x310] sm:$0xff] %vm1033_vm1, %v561_v57  ;;  %v201_v56 = vld [vmem:[%s3352_s0 + $0x608] sm:$0xff]  ;;  %v200_v57 = vld [vmem:[%s3352_s0 + $0x600] sm:$0xff] }
 0x156   :  { %v844_v60 = vsel %vm264_vm0, %v201_v56, -inf  ;;  %v841_v61 = vsel %vm264_vm0, %v200_v57, -inf }
 0x157   :  { %779 = vmax.xlane.f32.xlu1 %v778_v58  ;;  %776 = vmax.xlane.f32.xlu0 %v775_v59 }
 0x158   :  { %v570_v62 = vpop.xlane.xlu1 %569  ;;  %v567_v63 = vpop.xlane.xlu0 %566 }
 0x159   :  { %1135 = vst.msk [vmem:[%s3353_s1 + $0x328] sm:$0xff] %vm1033_vm1, %v570_v62  ;;  %1134 = vst.msk [vmem:[%s3353_s1 + $0x320] sm:$0xff] %vm1033_vm1, %v567_v63  ;;  %v203_v62 = vld [vmem:[%s3352_s0 + $0x618] sm:$0xff]  ;;  %v202_v63 = vld [vmem:[%s3352_s0 + $0x610] sm:$0xff] }
 0x15a   :  { %v850_v2 = vsel %vm264_vm0, %v203_v62, -inf  ;;  %v847_v3 = vsel %vm264_vm0, %v202_v63, -inf }
 0x15b   :  { %785 = vmax.xlane.f32.xlu1 %v784_v0  ;;  %782 = vmax.xlane.f32.xlu0 %v781_v1 }
 0x15c   :  { %v576_v4 = vpop.xlane.xlu1 %575  ;;  %v573_v5 = vpop.xlane.xlu0 %572 }
 0x15d   :  { %1137 = vst.msk [vmem:[%s3353_s1 + $0x338] sm:$0xff] %vm1033_vm1, %v576_v4  ;;  %1136 = vst.msk [vmem:[%s3353_s1 + $0x330] sm:$0xff] %vm1033_vm1, %v573_v5  ;;  %v205_v4 = vld [vmem:[%s3352_s0 + $0x628] sm:$0xff]  ;;  %v204_v5 = vld [vmem:[%s3352_s0 + $0x620] sm:$0xff] }
 0x15e   :  { %v856_v8 = vsel %vm264_vm0, %v205_v4, -inf  ;;  %v853_v9 = vsel %vm264_vm0, %v204_v5, -inf }
 0x15f   :  { %791 = vmax.xlane.f32.xlu1 %v790_v6  ;;  %788 = vmax.xlane.f32.xlu0 %v787_v7 }
 0x160   :  { %v582_v10 = vpop.xlane.xlu1 %581  ;;  %v579_v11 = vpop.xlane.xlu0 %578 }
 0x161   :  { %1139 = vst.msk [vmem:[%s3353_s1 + $0x348] sm:$0xff] %vm1033_vm1, %v582_v10  ;;  %1138 = vst.msk [vmem:[%s3353_s1 + $0x340] sm:$0xff] %vm1033_vm1, %v579_v11  ;;  %v207_v10 = vld [vmem:[%s3352_s0 + $0x638] sm:$0xff]  ;;  %v206_v11 = vld [vmem:[%s3352_s0 + $0x630] sm:$0xff] }
 0x162   :  { %v862_v14 = vsel %vm264_vm0, %v207_v10, -inf  ;;  %v859_v15 = vsel %vm264_vm0, %v206_v11, -inf }
 0x163   :  { %797 = vmax.xlane.f32.xlu1 %v796_v12  ;;  %794 = vmax.xlane.f32.xlu0 %v793_v13 }
 0x164   :  { %v588_v16 = vpop.xlane.xlu1 %587  ;;  %v585_v17 = vpop.xlane.xlu0 %584 }
 0x165   :  { %1141 = vst.msk [vmem:[%s3353_s1 + $0x358] sm:$0xff] %vm1033_vm1, %v588_v16  ;;  %1140 = vst.msk [vmem:[%s3353_s1 + $0x350] sm:$0xff] %vm1033_vm1, %v585_v17  ;;  %v209_v16 = vld [vmem:[%s3352_s0 + $0x648] sm:$0xff]  ;;  %v208_v17 = vld [vmem:[%s3352_s0 + $0x640] sm:$0xff] }
 0x166   :  { %v868_v20 = vsel %vm264_vm0, %v209_v16, -inf  ;;  %v865_v21 = vsel %vm264_vm0, %v208_v17, -inf }
 0x167   :  { %803 = vmax.xlane.f32.xlu1 %v802_v18  ;;  %800 = vmax.xlane.f32.xlu0 %v799_v19 }
 0x168   :  { %v594_v22 = vpop.xlane.xlu1 %593  ;;  %v591_v23 = vpop.xlane.xlu0 %590 }
 0x169   :  { %1143 = vst.msk [vmem:[%s3353_s1 + $0x368] sm:$0xff] %vm1033_vm1, %v594_v22  ;;  %1142 = vst.msk [vmem:[%s3353_s1 + $0x360] sm:$0xff] %vm1033_vm1, %v591_v23  ;;  %v211_v22 = vld [vmem:[%s3352_s0 + $0x658] sm:$0xff]  ;;  %v210_v23 = vld [vmem:[%s3352_s0 + $0x650] sm:$0xff] }
 0x16a   :  { %v874_v26 = vsel %vm264_vm0, %v211_v22, -inf  ;;  %v871_v27 = vsel %vm264_vm0, %v210_v23, -inf }
 0x16b   :  { %809 = vmax.xlane.f32.xlu1 %v808_v24  ;;  %806 = vmax.xlane.f32.xlu0 %v805_v25 }
 0x16c   :  { %v600_v28 = vpop.xlane.xlu1 %599  ;;  %v597_v29 = vpop.xlane.xlu0 %596 }
 0x16d   :  { %1145 = vst.msk [vmem:[%s3353_s1 + $0x378] sm:$0xff] %vm1033_vm1, %v600_v28  ;;  %1144 = vst.msk [vmem:[%s3353_s1 + $0x370] sm:$0xff] %vm1033_vm1, %v597_v29  ;;  %v213_v28 = vld [vmem:[%s3352_s0 + $0x668] sm:$0xff]  ;;  %v212_v29 = vld [vmem:[%s3352_s0 + $0x660] sm:$0xff] }
 0x16e   :  { %v880_v32 = vsel %vm264_vm0, %v213_v28, -inf  ;;  %v877_v33 = vsel %vm264_vm0, %v212_v29, -inf }
 0x16f   :  { %815 = vmax.xlane.f32.xlu1 %v814_v30  ;;  %812 = vmax.xlane.f32.xlu0 %v811_v31 }
 0x170   :  { %v606_v34 = vpop.xlane.xlu1 %605  ;;  %v603_v35 = vpop.xlane.xlu0 %602 }
 0x171   :  { %1147 = vst.msk [vmem:[%s3353_s1 + $0x388] sm:$0xff] %vm1033_vm1, %v606_v34  ;;  %1146 = vst.msk [vmem:[%s3353_s1 + $0x380] sm:$0xff] %vm1033_vm1, %v603_v35  ;;  %v215_v34 = vld [vmem:[%s3352_s0 + $0x678] sm:$0xff]  ;;  %v214_v35 = vld [vmem:[%s3352_s0 + $0x670] sm:$0xff] }
 0x172   :  { %v886_v38 = vsel %vm264_vm0, %v215_v34, -inf  ;;  %v883_v39 = vsel %vm264_vm0, %v214_v35, -inf }
 0x173   :  { %821 = vmax.xlane.f32.xlu1 %v820_v36  ;;  %818 = vmax.xlane.f32.xlu0 %v817_v37 }
 0x174   :  { %v612_v40 = vpop.xlane.xlu1 %611  ;;  %v609_v41 = vpop.xlane.xlu0 %608 }
 0x175   :  { %1149 = vst.msk [vmem:[%s3353_s1 + $0x398] sm:$0xff] %vm1033_vm1, %v612_v40  ;;  %1148 = vst.msk [vmem:[%s3353_s1 + $0x390] sm:$0xff] %vm1033_vm1, %v609_v41  ;;  %v217_v40 = vld [vmem:[%s3352_s0 + $0x688] sm:$0xff]  ;;  %v216_v41 = vld [vmem:[%s3352_s0 + $0x680] sm:$0xff] }
 0x176   :  { %v892_v44 = vsel %vm264_vm0, %v217_v40, -inf  ;;  %v889_v45 = vsel %vm264_vm0, %v216_v41, -inf }
 0x177   :  { %827 = vmax.xlane.f32.xlu1 %v826_v42  ;;  %824 = vmax.xlane.f32.xlu0 %v823_v43 }
 0x178   :  { %v618_v46 = vpop.xlane.xlu1 %617  ;;  %v615_v47 = vpop.xlane.xlu0 %614 }
 0x179   :  { %1151 = vst.msk [vmem:[%s3353_s1 + $0x3a8] sm:$0xff] %vm1033_vm1, %v618_v46  ;;  %1150 = vst.msk [vmem:[%s3353_s1 + $0x3a0] sm:$0xff] %vm1033_vm1, %v615_v47  ;;  %v219_v46 = vld [vmem:[%s3352_s0 + $0x698] sm:$0xff]  ;;  %v218_v47 = vld [vmem:[%s3352_s0 + $0x690] sm:$0xff] }
 0x17a   :  { %v898_v50 = vsel %vm264_vm0, %v219_v46, -inf  ;;  %v895_v51 = vsel %vm264_vm0, %v218_v47, -inf }
 0x17b   :  { %833 = vmax.xlane.f32.xlu1 %v832_v48  ;;  %830 = vmax.xlane.f32.xlu0 %v829_v49 }
 0x17c   :  { %v624_v52 = vpop.xlane.xlu1 %623  ;;  %v621_v53 = vpop.xlane.xlu0 %620 }
 0x17d   :  { %1153 = vst.msk [vmem:[%s3353_s1 + $0x3b8] sm:$0xff] %vm1033_vm1, %v624_v52  ;;  %1152 = vst.msk [vmem:[%s3353_s1 + $0x3b0] sm:$0xff] %vm1033_vm1, %v621_v53  ;;  %v221_v52 = vld [vmem:[%s3352_s0 + $0x6a8] sm:$0xff]  ;;  %v220_v53 = vld [vmem:[%s3352_s0 + $0x6a0] sm:$0xff] }
 0x17e   :  { %v904_v56 = vsel %vm264_vm0, %v221_v52, -inf  ;;  %v901_v57 = vsel %vm264_vm0, %v220_v53, -inf }
 0x17f   :  { %839 = vmax.xlane.f32.xlu1 %v838_v54  ;;  %836 = vmax.xlane.f32.xlu0 %v835_v55 }
 0x180   :  { %v630_v58 = vpop.xlane.xlu1 %629  ;;  %v627_v59 = vpop.xlane.xlu0 %626 }
 0x181   :  { %1155 = vst.msk [vmem:[%s3353_s1 + $0x3c8] sm:$0xff] %vm1033_vm1, %v630_v58  ;;  %1154 = vst.msk [vmem:[%s3353_s1 + $0x3c0] sm:$0xff] %vm1033_vm1, %v627_v59  ;;  %v223_v58 = vld [vmem:[%s3352_s0 + $0x6b8] sm:$0xff]  ;;  %v222_v59 = vld [vmem:[%s3352_s0 + $0x6b0] sm:$0xff] }
 0x182   :  { %v910_v62 = vsel %vm264_vm0, %v223_v58, -inf  ;;  %v907_v63 = vsel %vm264_vm0, %v222_v59, -inf }
 0x183   :  { %845 = vmax.xlane.f32.xlu1 %v844_v60  ;;  %842 = vmax.xlane.f32.xlu0 %v841_v61 }
 0x184   :  { %v636_v0 = vpop.xlane.xlu1 %635  ;;  %v633_v1 = vpop.xlane.xlu0 %632 }
 0x185   :  { %1157 = vst.msk [vmem:[%s3353_s1 + $0x3d8] sm:$0xff] %vm1033_vm1, %v636_v0  ;;  %1156 = vst.msk [vmem:[%s3353_s1 + $0x3d0] sm:$0xff] %vm1033_vm1, %v633_v1  ;;  %v225_v0 = vld [vmem:[%s3352_s0 + $0x6c8] sm:$0xff]  ;;  %v224_v1 = vld [vmem:[%s3352_s0 + $0x6c0] sm:$0xff] }
 0x186   :  { %v916_v4 = vsel %vm264_vm0, %v225_v0, -inf  ;;  %v913_v5 = vsel %vm264_vm0, %v224_v1, -inf }
 0x187   :  { %851 = vmax.xlane.f32.xlu1 %v850_v2  ;;  %848 = vmax.xlane.f32.xlu0 %v847_v3 }
 0x188   :  { %v642_v6 = vpop.xlane.xlu1 %641  ;;  %v639_v7 = vpop.xlane.xlu0 %638 }
 0x189   :  { %1159 = vst.msk [vmem:[%s3353_s1 + $0x3e8] sm:$0xff] %vm1033_vm1, %v642_v6  ;;  %1158 = vst.msk [vmem:[%s3353_s1 + $0x3e0] sm:$0xff] %vm1033_vm1, %v639_v7  ;;  %v227_v6 = vld [vmem:[%s3352_s0 + $0x6d8] sm:$0xff]  ;;  %v226_v7 = vld [vmem:[%s3352_s0 + $0x6d0] sm:$0xff] }
 0x18a   :  { %v922_v10 = vsel %vm264_vm0, %v227_v6, -inf  ;;  %v919_v11 = vsel %vm264_vm0, %v226_v7, -inf }
 0x18b   :  { %857 = vmax.xlane.f32.xlu1 %v856_v8  ;;  %854 = vmax.xlane.f32.xlu0 %v853_v9 }
 0x18c   :  { %v648_v12 = vpop.xlane.xlu1 %647  ;;  %v645_v13 = vpop.xlane.xlu0 %644 }
 0x18d   :  { %1161 = vst.msk [vmem:[%s3353_s1 + $0x3f8] sm:$0xff] %vm1033_vm1, %v648_v12  ;;  %1160 = vst.msk [vmem:[%s3353_s1 + $0x3f0] sm:$0xff] %vm1033_vm1, %v645_v13  ;;  %v229_v12 = vld [vmem:[%s3352_s0 + $0x6e8] sm:$0xff]  ;;  %v228_v13 = vld [vmem:[%s3352_s0 + $0x6e0] sm:$0xff] }
 0x18e   :  { %v928_v16 = vsel %vm264_vm0, %v229_v12, -inf  ;;  %v925_v17 = vsel %vm264_vm0, %v228_v13, -inf }
 0x18f   :  { %863 = vmax.xlane.f32.xlu1 %v862_v14  ;;  %860 = vmax.xlane.f32.xlu0 %v859_v15 }
 0x190   :  { %v654_v18 = vpop.xlane.xlu1 %653  ;;  %v651_v19 = vpop.xlane.xlu0 %650 }
 0x191   :  { %1163 = vst.msk [vmem:[%s3353_s1 + $0x408] sm:$0xff] %vm1033_vm1, %v654_v18  ;;  %1162 = vst.msk [vmem:[%s3353_s1 + $0x400] sm:$0xff] %vm1033_vm1, %v651_v19  ;;  %v231_v18 = vld [vmem:[%s3352_s0 + $0x6f8] sm:$0xff]  ;;  %v230_v19 = vld [vmem:[%s3352_s0 + $0x6f0] sm:$0xff] }
 0x192   :  { %v934_v22 = vsel %vm264_vm0, %v231_v18, -inf  ;;  %v931_v23 = vsel %vm264_vm0, %v230_v19, -inf }
 0x193   :  { %869 = vmax.xlane.f32.xlu1 %v868_v20  ;;  %866 = vmax.xlane.f32.xlu0 %v865_v21 }
 0x194   :  { %v660_v24 = vpop.xlane.xlu1 %659  ;;  %v657_v25 = vpop.xlane.xlu0 %656 }
 0x195   :  { %1165 = vst.msk [vmem:[%s3353_s1 + $0x418] sm:$0xff] %vm1033_vm1, %v660_v24  ;;  %1164 = vst.msk [vmem:[%s3353_s1 + $0x410] sm:$0xff] %vm1033_vm1, %v657_v25  ;;  %v233_v24 = vld [vmem:[%s3352_s0 + $0x708] sm:$0xff]  ;;  %v232_v25 = vld [vmem:[%s3352_s0 + $0x700] sm:$0xff] }
 0x196   :  { %v940_v28 = vsel %vm264_vm0, %v233_v24, -inf  ;;  %v937_v29 = vsel %vm264_vm0, %v232_v25, -inf }
 0x197   :  { %875 = vmax.xlane.f32.xlu1 %v874_v26  ;;  %872 = vmax.xlane.f32.xlu0 %v871_v27 }
 0x198   :  { %v666_v30 = vpop.xlane.xlu1 %665  ;;  %v663_v31 = vpop.xlane.xlu0 %662 }
 0x199   :  { %1167 = vst.msk [vmem:[%s3353_s1 + $0x428] sm:$0xff] %vm1033_vm1, %v666_v30  ;;  %1166 = vst.msk [vmem:[%s3353_s1 + $0x420] sm:$0xff] %vm1033_vm1, %v663_v31  ;;  %v235_v30 = vld [vmem:[%s3352_s0 + $0x718] sm:$0xff]  ;;  %v234_v31 = vld [vmem:[%s3352_s0 + $0x710] sm:$0xff] }
 0x19a   :  { %v946_v34 = vsel %vm264_vm0, %v235_v30, -inf  ;;  %v943_v35 = vsel %vm264_vm0, %v234_v31, -inf }
 0x19b   :  { %881 = vmax.xlane.f32.xlu1 %v880_v32  ;;  %878 = vmax.xlane.f32.xlu0 %v877_v33 }
 0x19c   :  { %v672_v36 = vpop.xlane.xlu1 %671  ;;  %v669_v37 = vpop.xlane.xlu0 %668 }
 0x19d   :  { %1169 = vst.msk [vmem:[%s3353_s1 + $0x438] sm:$0xff] %vm1033_vm1, %v672_v36  ;;  %1168 = vst.msk [vmem:[%s3353_s1 + $0x430] sm:$0xff] %vm1033_vm1, %v669_v37  ;;  %v237_v36 = vld [vmem:[%s3352_s0 + $0x728] sm:$0xff]  ;;  %v236_v37 = vld [vmem:[%s3352_s0 + $0x720] sm:$0xff] }
 0x19e   :  { %v952_v40 = vsel %vm264_vm0, %v237_v36, -inf  ;;  %v949_v41 = vsel %vm264_vm0, %v236_v37, -inf }
 0x19f   :  { %887 = vmax.xlane.f32.xlu1 %v886_v38  ;;  %884 = vmax.xlane.f32.xlu0 %v883_v39 }
 0x1a0   :  { %v678_v42 = vpop.xlane.xlu1 %677  ;;  %v675_v43 = vpop.xlane.xlu0 %674 }
 0x1a1   :  { %1171 = vst.msk [vmem:[%s3353_s1 + $0x448] sm:$0xff] %vm1033_vm1, %v678_v42  ;;  %1170 = vst.msk [vmem:[%s3353_s1 + $0x440] sm:$0xff] %vm1033_vm1, %v675_v43  ;;  %v239_v42 = vld [vmem:[%s3352_s0 + $0x738] sm:$0xff]  ;;  %v238_v43 = vld [vmem:[%s3352_s0 + $0x730] sm:$0xff] }
 0x1a2   :  { %v958_v46 = vsel %vm264_vm0, %v239_v42, -inf  ;;  %v955_v47 = vsel %vm264_vm0, %v238_v43, -inf }
 0x1a3   :  { %893 = vmax.xlane.f32.xlu1 %v892_v44  ;;  %890 = vmax.xlane.f32.xlu0 %v889_v45 }
 0x1a4   :  { %v684_v48 = vpop.xlane.xlu1 %683  ;;  %v681_v49 = vpop.xlane.xlu0 %680 }
 0x1a5   :  { %1173 = vst.msk [vmem:[%s3353_s1 + $0x458] sm:$0xff] %vm1033_vm1, %v684_v48  ;;  %1172 = vst.msk [vmem:[%s3353_s1 + $0x450] sm:$0xff] %vm1033_vm1, %v681_v49  ;;  %v241_v48 = vld [vmem:[%s3352_s0 + $0x748] sm:$0xff]  ;;  %v240_v49 = vld [vmem:[%s3352_s0 + $0x740] sm:$0xff] }
 0x1a6   :  { %v964_v52 = vsel %vm264_vm0, %v241_v48, -inf  ;;  %v961_v53 = vsel %vm264_vm0, %v240_v49, -inf }
 0x1a7   :  { %899 = vmax.xlane.f32.xlu1 %v898_v50  ;;  %896 = vmax.xlane.f32.xlu0 %v895_v51 }
 0x1a8   :  { %v690_v54 = vpop.xlane.xlu1 %689  ;;  %v687_v55 = vpop.xlane.xlu0 %686 }
 0x1a9   :  { %1175 = vst.msk [vmem:[%s3353_s1 + $0x468] sm:$0xff] %vm1033_vm1, %v690_v54  ;;  %1174 = vst.msk [vmem:[%s3353_s1 + $0x460] sm:$0xff] %vm1033_vm1, %v687_v55  ;;  %v243_v54 = vld [vmem:[%s3352_s0 + $0x758] sm:$0xff]  ;;  %v242_v55 = vld [vmem:[%s3352_s0 + $0x750] sm:$0xff] }
 0x1aa   :  { %v970_v58 = vsel %vm264_vm0, %v243_v54, -inf  ;;  %v967_v59 = vsel %vm264_vm0, %v242_v55, -inf }
 0x1ab   :  { %905 = vmax.xlane.f32.xlu1 %v904_v56  ;;  %902 = vmax.xlane.f32.xlu0 %v901_v57 }
 0x1ac   :  { %v696_v60 = vpop.xlane.xlu1 %695  ;;  %v693_v61 = vpop.xlane.xlu0 %692 }
 0x1ad   :  { %1177 = vst.msk [vmem:[%s3353_s1 + $0x478] sm:$0xff] %vm1033_vm1, %v696_v60  ;;  %1176 = vst.msk [vmem:[%s3353_s1 + $0x470] sm:$0xff] %vm1033_vm1, %v693_v61  ;;  %v245_v60 = vld [vmem:[%s3352_s0 + $0x768] sm:$0xff]  ;;  %v244_v61 = vld [vmem:[%s3352_s0 + $0x760] sm:$0xff] }
 0x1ae   :  { %v976_v0 = vsel %vm264_vm0, %v245_v60, -inf  ;;  %v973_v1 = vsel %vm264_vm0, %v244_v61, -inf }
 0x1af   :  { %911 = vmax.xlane.f32.xlu1 %v910_v62  ;;  %908 = vmax.xlane.f32.xlu0 %v907_v63 }
 0x1b0   :  { %v702_v2 = vpop.xlane.xlu1 %701  ;;  %v699_v3 = vpop.xlane.xlu0 %698 }
 0x1b1   :  { %1179 = vst.msk [vmem:[%s3353_s1 + $0x488] sm:$0xff] %vm1033_vm1, %v702_v2  ;;  %1178 = vst.msk [vmem:[%s3353_s1 + $0x480] sm:$0xff] %vm1033_vm1, %v699_v3  ;;  %v247_v2 = vld [vmem:[%s3352_s0 + $0x778] sm:$0xff]  ;;  %v246_v3 = vld [vmem:[%s3352_s0 + $0x770] sm:$0xff] }
 0x1b2   :  { %v982_v6 = vsel %vm264_vm0, %v247_v2, -inf  ;;  %v979_v7 = vsel %vm264_vm0, %v246_v3, -inf }
 0x1b3   :  { %917 = vmax.xlane.f32.xlu1 %v916_v4  ;;  %914 = vmax.xlane.f32.xlu0 %v913_v5 }
 0x1b4   :  { %v708_v8 = vpop.xlane.xlu1 %707  ;;  %v705_v9 = vpop.xlane.xlu0 %704 }
 0x1b5   :  { %1181 = vst.msk [vmem:[%s3353_s1 + $0x498] sm:$0xff] %vm1033_vm1, %v708_v8  ;;  %1180 = vst.msk [vmem:[%s3353_s1 + $0x490] sm:$0xff] %vm1033_vm1, %v705_v9  ;;  %v249_v8 = vld [vmem:[%s3352_s0 + $0x788] sm:$0xff]  ;;  %v248_v9 = vld [vmem:[%s3352_s0 + $0x780] sm:$0xff] }
 0x1b6   :  { %v988_v12 = vsel %vm264_vm0, %v249_v8, -inf  ;;  %v985_v13 = vsel %vm264_vm0, %v248_v9, -inf }
 0x1b7   :  { %923 = vmax.xlane.f32.xlu1 %v922_v10  ;;  %920 = vmax.xlane.f32.xlu0 %v919_v11 }
 0x1b8   :  { %v714_v14 = vpop.xlane.xlu1 %713  ;;  %v711_v15 = vpop.xlane.xlu0 %710 }
 0x1b9   :  { %1183 = vst.msk [vmem:[%s3353_s1 + $0x4a8] sm:$0xff] %vm1033_vm1, %v714_v14  ;;  %1182 = vst.msk [vmem:[%s3353_s1 + $0x4a0] sm:$0xff] %vm1033_vm1, %v711_v15  ;;  %v251_v14 = vld [vmem:[%s3352_s0 + $0x798] sm:$0xff]  ;;  %v250_v15 = vld [vmem:[%s3352_s0 + $0x790] sm:$0xff] }
 0x1ba   :  { %v994_v18 = vsel %vm264_vm0, %v251_v14, -inf  ;;  %v991_v19 = vsel %vm264_vm0, %v250_v15, -inf }
 0x1bb   :  { %929 = vmax.xlane.f32.xlu1 %v928_v16  ;;  %926 = vmax.xlane.f32.xlu0 %v925_v17 }
 0x1bc   :  { %v720_v20 = vpop.xlane.xlu1 %719  ;;  %v717_v21 = vpop.xlane.xlu0 %716 }
 0x1bd   :  { %1185 = vst.msk [vmem:[%s3353_s1 + $0x4b8] sm:$0xff] %vm1033_vm1, %v720_v20  ;;  %1184 = vst.msk [vmem:[%s3353_s1 + $0x4b0] sm:$0xff] %vm1033_vm1, %v717_v21  ;;  %v253_v20 = vld [vmem:[%s3352_s0 + $0x7a8] sm:$0xff]  ;;  %v252_v21 = vld [vmem:[%s3352_s0 + $0x7a0] sm:$0xff] }
 0x1be   :  { %v1000_v24 = vsel %vm264_vm0, %v253_v20, -inf  ;;  %v997_v25 = vsel %vm264_vm0, %v252_v21, -inf }
 0x1bf   :  { %935 = vmax.xlane.f32.xlu1 %v934_v22  ;;  %932 = vmax.xlane.f32.xlu0 %v931_v23 }
 0x1c0   :  { %v726_v26 = vpop.xlane.xlu1 %725  ;;  %v723_v27 = vpop.xlane.xlu0 %722 }
 0x1c1   :  { %1187 = vst.msk [vmem:[%s3353_s1 + $0x4c8] sm:$0xff] %vm1033_vm1, %v726_v26  ;;  %1186 = vst.msk [vmem:[%s3353_s1 + $0x4c0] sm:$0xff] %vm1033_vm1, %v723_v27  ;;  %v255_v26 = vld [vmem:[%s3352_s0 + $0x7b8] sm:$0xff]  ;;  %v254_v27 = vld [vmem:[%s3352_s0 + $0x7b0] sm:$0xff] }
 0x1c2   :  { %v1006_v30 = vsel %vm264_vm0, %v255_v26, -inf  ;;  %v1003_v31 = vsel %vm264_vm0, %v254_v27, -inf }
 0x1c3   :  { %941 = vmax.xlane.f32.xlu1 %v940_v28  ;;  %938 = vmax.xlane.f32.xlu0 %v937_v29 }
 0x1c4   :  { %v732_v32 = vpop.xlane.xlu1 %731  ;;  %v729_v33 = vpop.xlane.xlu0 %728 }
 0x1c5   :  { %1189 = vst.msk [vmem:[%s3353_s1 + $0x4d8] sm:$0xff] %vm1033_vm1, %v732_v32  ;;  %1188 = vst.msk [vmem:[%s3353_s1 + $0x4d0] sm:$0xff] %vm1033_vm1, %v729_v33  ;;  %v257_v32 = vld [vmem:[%s3352_s0 + $0x7c8] sm:$0xff]  ;;  %v256_v33 = vld [vmem:[%s3352_s0 + $0x7c0] sm:$0xff] }
 0x1c6   :  { %v1012_v36 = vsel %vm264_vm0, %v257_v32, -inf  ;;  %v1009_v37 = vsel %vm264_vm0, %v256_v33, -inf }
 0x1c7   :  { %947 = vmax.xlane.f32.xlu1 %v946_v34  ;;  %944 = vmax.xlane.f32.xlu0 %v943_v35 }
 0x1c8   :  { %v738_v38 = vpop.xlane.xlu1 %737  ;;  %v735_v39 = vpop.xlane.xlu0 %734 }
 0x1c9   :  { %1191 = vst.msk [vmem:[%s3353_s1 + $0x4e8] sm:$0xff] %vm1033_vm1, %v738_v38  ;;  %1190 = vst.msk [vmem:[%s3353_s1 + $0x4e0] sm:$0xff] %vm1033_vm1, %v735_v39  ;;  %v259_v38 = vld [vmem:[%s3352_s0 + $0x7d8] sm:$0xff]  ;;  %v258_v39 = vld [vmem:[%s3352_s0 + $0x7d0] sm:$0xff] }
 0x1ca   :  { %v1018_v42 = vsel %vm264_vm0, %v259_v38, -inf  ;;  %v1015_v43 = vsel %vm264_vm0, %v258_v39, -inf }
 0x1cb   :  { %953 = vmax.xlane.f32.xlu1 %v952_v40  ;;  %950 = vmax.xlane.f32.xlu0 %v949_v41 }
 0x1cc   :  { %v744_v44 = vpop.xlane.xlu1 %743  ;;  %v741_v45 = vpop.xlane.xlu0 %740 }
 0x1cd   :  { %1193 = vst.msk [vmem:[%s3353_s1 + $0x4f8] sm:$0xff] %vm1033_vm1, %v744_v44  ;;  %1192 = vst.msk [vmem:[%s3353_s1 + $0x4f0] sm:$0xff] %vm1033_vm1, %v741_v45  ;;  %v261_v44 = vld [vmem:[%s3352_s0 + $0x7e8] sm:$0xff]  ;;  %v260_v45 = vld [vmem:[%s3352_s0 + $0x7e0] sm:$0xff] }
 0x1ce   :  { %v1024_v48 = vsel %vm264_vm0, %v261_v44, -inf  ;;  %v1021_v49 = vsel %vm264_vm0, %v260_v45, -inf }
 0x1cf   :  { %959 = vmax.xlane.f32.xlu1 %v958_v46  ;;  %956 = vmax.xlane.f32.xlu0 %v955_v47 }
 0x1d0   :  { %v750_v50 = vpop.xlane.xlu1 %749  ;;  %v747_v51 = vpop.xlane.xlu0 %746 }
 0x1d1   :  { %1195 = vst.msk [vmem:[%s3353_s1 + $0x508] sm:$0xff] %vm1033_vm1, %v750_v50  ;;  %1194 = vst.msk [vmem:[%s3353_s1 + $0x500] sm:$0xff] %vm1033_vm1, %v747_v51  ;;  %v263_v50 = vld [vmem:[%s3352_s0 + $0x7f8] sm:$0xff]  ;;  %v262_v51 = vld [vmem:[%s3352_s0 + $0x7f0] sm:$0xff] }
 0x1d2   :  { %v1030_v54 = vsel %vm264_vm0, %v263_v50, -inf  ;;  %v1027_v55 = vsel %vm264_vm0, %v262_v51, -inf }
 0x1d3   :  { %965 = vmax.xlane.f32.xlu1 %v964_v52  ;;  %962 = vmax.xlane.f32.xlu0 %v961_v53 }
 0x1d4   :  { %v756_v56 = vpop.xlane.xlu1 %755  ;;  %v753_v57 = vpop.xlane.xlu0 %752 }
 0x1d5   :  { %1197 = vst.msk [vmem:[%s3353_s1 + $0x518] sm:$0xff] %vm1033_vm1, %v756_v56  ;;  %1196 = vst.msk [vmem:[%s3353_s1 + $0x510] sm:$0xff] %vm1033_vm1, %v753_v57 }
 0x1d7   :  { %971 = vmax.xlane.f32.xlu1 %v970_v58  ;;  %968 = vmax.xlane.f32.xlu0 %v967_v59 }
 0x1d8   :  { %v762_v62 = vpop.xlane.xlu1 %761  ;;  %v759_v63 = vpop.xlane.xlu0 %758 }
 0x1d9   :  { %1199 = vst.msk [vmem:[%s3353_s1 + $0x528] sm:$0xff] %vm1033_vm1, %v762_v62  ;;  %1198 = vst.msk [vmem:[%s3353_s1 + $0x520] sm:$0xff] %vm1033_vm1, %v759_v63 }
 0x1db   :  { %977 = vmax.xlane.f32.xlu1 %v976_v0  ;;  %974 = vmax.xlane.f32.xlu0 %v973_v1 }
 0x1dc   :  { %v768_v4 = vpop.xlane.xlu1 %767  ;;  %v765_v5 = vpop.xlane.xlu0 %764 }
 0x1dd   :  { %1201 = vst.msk [vmem:[%s3353_s1 + $0x538] sm:$0xff] %vm1033_vm1, %v768_v4  ;;  %1200 = vst.msk [vmem:[%s3353_s1 + $0x530] sm:$0xff] %vm1033_vm1, %v765_v5 }
 0x1df   :  { %983 = vmax.xlane.f32.xlu1 %v982_v6  ;;  %980 = vmax.xlane.f32.xlu0 %v979_v7 }
 0x1e0   :  { %v774_v10 = vpop.xlane.xlu1 %773  ;;  %v771_v11 = vpop.xlane.xlu0 %770 }
 0x1e1   :  { %1203 = vst.msk [vmem:[%s3353_s1 + $0x548] sm:$0xff] %vm1033_vm1, %v774_v10  ;;  %1202 = vst.msk [vmem:[%s3353_s1 + $0x540] sm:$0xff] %vm1033_vm1, %v771_v11 }
 0x1e3   :  { %989 = vmax.xlane.f32.xlu1 %v988_v12  ;;  %986 = vmax.xlane.f32.xlu0 %v985_v13 }
 0x1e4   :  { %v780_v16 = vpop.xlane.xlu1 %779  ;;  %v777_v17 = vpop.xlane.xlu0 %776 }
 0x1e5   :  { %1205 = vst.msk [vmem:[%s3353_s1 + $0x558] sm:$0xff] %vm1033_vm1, %v780_v16  ;;  %1204 = vst.msk [vmem:[%s3353_s1 + $0x550] sm:$0xff] %vm1033_vm1, %v777_v17 }
 0x1e7   :  { %995 = vmax.xlane.f32.xlu1 %v994_v18  ;;  %992 = vmax.xlane.f32.xlu0 %v991_v19 }
 0x1e8   :  { %v786_v22 = vpop.xlane.xlu1 %785  ;;  %v783_v23 = vpop.xlane.xlu0 %782 }
 0x1e9   :  { %1207 = vst.msk [vmem:[%s3353_s1 + $0x568] sm:$0xff] %vm1033_vm1, %v786_v22  ;;  %1206 = vst.msk [vmem:[%s3353_s1 + $0x560] sm:$0xff] %vm1033_vm1, %v783_v23 }
 0x1eb   :  { %1001 = vmax.xlane.f32.xlu1 %v1000_v24  ;;  %998 = vmax.xlane.f32.xlu0 %v997_v25 }
 0x1ec   :  { %v792_v28 = vpop.xlane.xlu1 %791  ;;  %v789_v29 = vpop.xlane.xlu0 %788 }
 0x1ed   :  { %1209 = vst.msk [vmem:[%s3353_s1 + $0x578] sm:$0xff] %vm1033_vm1, %v792_v28  ;;  %1208 = vst.msk [vmem:[%s3353_s1 + $0x570] sm:$0xff] %vm1033_vm1, %v789_v29 }
 0x1ef   :  { %1007 = vmax.xlane.f32.xlu1 %v1006_v30  ;;  %1004 = vmax.xlane.f32.xlu0 %v1003_v31 }
 0x1f0   :  { %v798_v34 = vpop.xlane.xlu1 %797  ;;  %v795_v35 = vpop.xlane.xlu0 %794 }
 0x1f1   :  { %1211 = vst.msk [vmem:[%s3353_s1 + $0x588] sm:$0xff] %vm1033_vm1, %v798_v34  ;;  %1210 = vst.msk [vmem:[%s3353_s1 + $0x580] sm:$0xff] %vm1033_vm1, %v795_v35 }
 0x1f3   :  { %1013 = vmax.xlane.f32.xlu1 %v1012_v36  ;;  %1010 = vmax.xlane.f32.xlu0 %v1009_v37 }
 0x1f4   :  { %v804_v40 = vpop.xlane.xlu1 %803  ;;  %v801_v41 = vpop.xlane.xlu0 %800 }
 0x1f5   :  { %1213 = vst.msk [vmem:[%s3353_s1 + $0x598] sm:$0xff] %vm1033_vm1, %v804_v40  ;;  %1212 = vst.msk [vmem:[%s3353_s1 + $0x590] sm:$0xff] %vm1033_vm1, %v801_v41 }
 0x1f7   :  { %1019 = vmax.xlane.f32.xlu1 %v1018_v42  ;;  %1016 = vmax.xlane.f32.xlu0 %v1015_v43 }
 0x1f8   :  { %v810_v46 = vpop.xlane.xlu1 %809  ;;  %v807_v47 = vpop.xlane.xlu0 %806 }
 0x1f9   :  { %1215 = vst.msk [vmem:[%s3353_s1 + $0x5a8] sm:$0xff] %vm1033_vm1, %v810_v46  ;;  %1214 = vst.msk [vmem:[%s3353_s1 + $0x5a0] sm:$0xff] %vm1033_vm1, %v807_v47 }
 0x1fb   :  { %1025 = vmax.xlane.f32.xlu1 %v1024_v48  ;;  %1022 = vmax.xlane.f32.xlu0 %v1021_v49 }
 0x1fc   :  { %v816_v52 = vpop.xlane.xlu1 %815  ;;  %v813_v53 = vpop.xlane.xlu0 %812 }
 0x1fd   :  { %1217 = vst.msk [vmem:[%s3353_s1 + $0x5b8] sm:$0xff] %vm1033_vm1, %v816_v52  ;;  %1216 = vst.msk [vmem:[%s3353_s1 + $0x5b0] sm:$0xff] %vm1033_vm1, %v813_v53 }
 0x1ff   :  { %1031 = vmax.xlane.f32.xlu1 %v1030_v54  ;;  %1028 = vmax.xlane.f32.xlu0 %v1027_v55 }
 0x200   :  { %v822_v56 = vpop.xlane.xlu1 %821  ;;  %v819_v57 = vpop.xlane.xlu0 %818 }
 0x201   :  { %1219 = vst.msk [vmem:[%s3353_s1 + $0x5c8] sm:$0xff] %vm1033_vm1, %v822_v56  ;;  %1218 = vst.msk [vmem:[%s3353_s1 + $0x5c0] sm:$0xff] %vm1033_vm1, %v819_v57 }
 0x204   :  { %v828_v58 = vpop.xlane.xlu1 %827  ;;  %v825_v59 = vpop.xlane.xlu0 %824 }
 0x205   :  { %1221 = vst.msk [vmem:[%s3353_s1 + $0x5d8] sm:$0xff] %vm1033_vm1, %v828_v58  ;;  %1220 = vst.msk [vmem:[%s3353_s1 + $0x5d0] sm:$0xff] %vm1033_vm1, %v825_v59 }
 0x208   :  { %v834_v60 = vpop.xlane.xlu1 %833  ;;  %v831_v61 = vpop.xlane.xlu0 %830 }
 0x209   :  { %1223 = vst.msk [vmem:[%s3353_s1 + $0x5e8] sm:$0xff] %vm1033_vm1, %v834_v60  ;;  %1222 = vst.msk [vmem:[%s3353_s1 + $0x5e0] sm:$0xff] %vm1033_vm1, %v831_v61 }
 0x20c   :  { %v840_v62 = vpop.xlane.xlu1 %839  ;;  %v837_v63 = vpop.xlane.xlu0 %836 }
 0x20d   :  { %1225 = vst.msk [vmem:[%s3353_s1 + $0x5f8] sm:$0xff] %vm1033_vm1, %v840_v62  ;;  %1224 = vst.msk [vmem:[%s3353_s1 + $0x5f0] sm:$0xff] %vm1033_vm1, %v837_v63 }
 0x210   :  { %v846_v0 = vpop.xlane.xlu1 %845  ;;  %v843_v1 = vpop.xlane.xlu0 %842 }
 0x211   :  { %1227 = vst.msk [vmem:[%s3353_s1 + $0x608] sm:$0xff] %vm1033_vm1, %v846_v0  ;;  %1226 = vst.msk [vmem:[%s3353_s1 + $0x600] sm:$0xff] %vm1033_vm1, %v843_v1 }
 0x214   :  { %v852_v2 = vpop.xlane.xlu1 %851  ;;  %v849_v3 = vpop.xlane.xlu0 %848 }
 0x215   :  { %1229 = vst.msk [vmem:[%s3353_s1 + $0x618] sm:$0xff] %vm1033_vm1, %v852_v2  ;;  %1228 = vst.msk [vmem:[%s3353_s1 + $0x610] sm:$0xff] %vm1033_vm1, %v849_v3 }
 0x218   :  { %v858_v4 = vpop.xlane.xlu1 %857  ;;  %v855_v5 = vpop.xlane.xlu0 %854 }
 0x219   :  { %1231 = vst.msk [vmem:[%s3353_s1 + $0x628] sm:$0xff] %vm1033_vm1, %v858_v4  ;;  %1230 = vst.msk [vmem:[%s3353_s1 + $0x620] sm:$0xff] %vm1033_vm1, %v855_v5 }
 0x21c   :  { %v864_v6 = vpop.xlane.xlu1 %863  ;;  %v861_v7 = vpop.xlane.xlu0 %860 }
 0x21d   :  { %1233 = vst.msk [vmem:[%s3353_s1 + $0x638] sm:$0xff] %vm1033_vm1, %v864_v6  ;;  %1232 = vst.msk [vmem:[%s3353_s1 + $0x630] sm:$0xff] %vm1033_vm1, %v861_v7 }
 0x220   :  { %v870_v8 = vpop.xlane.xlu1 %869  ;;  %v867_v9 = vpop.xlane.xlu0 %866 }
 0x221   :  { %1235 = vst.msk [vmem:[%s3353_s1 + $0x648] sm:$0xff] %vm1033_vm1, %v870_v8  ;;  %1234 = vst.msk [vmem:[%s3353_s1 + $0x640] sm:$0xff] %vm1033_vm1, %v867_v9 }
 0x224   :  { %v876_v10 = vpop.xlane.xlu1 %875  ;;  %v873_v11 = vpop.xlane.xlu0 %872 }
 0x225   :  { %1237 = vst.msk [vmem:[%s3353_s1 + $0x658] sm:$0xff] %vm1033_vm1, %v876_v10  ;;  %1236 = vst.msk [vmem:[%s3353_s1 + $0x650] sm:$0xff] %vm1033_vm1, %v873_v11 }
 0x228   :  { %v882_v12 = vpop.xlane.xlu1 %881  ;;  %v879_v13 = vpop.xlane.xlu0 %878 }
 0x229   :  { %1239 = vst.msk [vmem:[%s3353_s1 + $0x668] sm:$0xff] %vm1033_vm1, %v882_v12  ;;  %1238 = vst.msk [vmem:[%s3353_s1 + $0x660] sm:$0xff] %vm1033_vm1, %v879_v13 }
 0x22c   :  { %v888_v14 = vpop.xlane.xlu1 %887  ;;  %v885_v15 = vpop.xlane.xlu0 %884 }
 0x22d   :  { %1241 = vst.msk [vmem:[%s3353_s1 + $0x678] sm:$0xff] %vm1033_vm1, %v888_v14  ;;  %1240 = vst.msk [vmem:[%s3353_s1 + $0x670] sm:$0xff] %vm1033_vm1, %v885_v15 }
 0x230   :  { %v894_v16 = vpop.xlane.xlu1 %893  ;;  %v891_v17 = vpop.xlane.xlu0 %890 }
 0x231   :  { %1243 = vst.msk [vmem:[%s3353_s1 + $0x688] sm:$0xff] %vm1033_vm1, %v894_v16  ;;  %1242 = vst.msk [vmem:[%s3353_s1 + $0x680] sm:$0xff] %vm1033_vm1, %v891_v17 }
 0x234   :  { %v900_v18 = vpop.xlane.xlu1 %899  ;;  %v897_v19 = vpop.xlane.xlu0 %896 }
 0x235   :  { %1245 = vst.msk [vmem:[%s3353_s1 + $0x698] sm:$0xff] %vm1033_vm1, %v900_v18  ;;  %1244 = vst.msk [vmem:[%s3353_s1 + $0x690] sm:$0xff] %vm1033_vm1, %v897_v19 }
 0x238   :  { %v906_v20 = vpop.xlane.xlu1 %905  ;;  %v903_v21 = vpop.xlane.xlu0 %902 }
 0x239   :  { %1247 = vst.msk [vmem:[%s3353_s1 + $0x6a8] sm:$0xff] %vm1033_vm1, %v906_v20  ;;  %1246 = vst.msk [vmem:[%s3353_s1 + $0x6a0] sm:$0xff] %vm1033_vm1, %v903_v21 }
 0x23c   :  { %v912_v22 = vpop.xlane.xlu1 %911  ;;  %v909_v23 = vpop.xlane.xlu0 %908 }
 0x23d   :  { %1249 = vst.msk [vmem:[%s3353_s1 + $0x6b8] sm:$0xff] %vm1033_vm1, %v912_v22  ;;  %1248 = vst.msk [vmem:[%s3353_s1 + $0x6b0] sm:$0xff] %vm1033_vm1, %v909_v23 }
 0x240   :  { %v918_v24 = vpop.xlane.xlu1 %917  ;;  %v915_v25 = vpop.xlane.xlu0 %914 }
 0x241   :  { %1251 = vst.msk [vmem:[%s3353_s1 + $0x6c8] sm:$0xff] %vm1033_vm1, %v918_v24  ;;  %1250 = vst.msk [vmem:[%s3353_s1 + $0x6c0] sm:$0xff] %vm1033_vm1, %v915_v25 }
 0x244   :  { %v924_v26 = vpop.xlane.xlu1 %923  ;;  %v921_v27 = vpop.xlane.xlu0 %920 }
 0x245   :  { %1253 = vst.msk [vmem:[%s3353_s1 + $0x6d8] sm:$0xff] %vm1033_vm1, %v924_v26  ;;  %1252 = vst.msk [vmem:[%s3353_s1 + $0x6d0] sm:$0xff] %vm1033_vm1, %v921_v27 }
 0x248   :  { %v930_v28 = vpop.xlane.xlu1 %929  ;;  %v927_v29 = vpop.xlane.xlu0 %926 }
 0x249   :  { %1255 = vst.msk [vmem:[%s3353_s1 + $0x6e8] sm:$0xff] %vm1033_vm1, %v930_v28  ;;  %1254 = vst.msk [vmem:[%s3353_s1 + $0x6e0] sm:$0xff] %vm1033_vm1, %v927_v29 }
 0x24c   :  { %v936_v30 = vpop.xlane.xlu1 %935  ;;  %v933_v31 = vpop.xlane.xlu0 %932 }
 0x24d   :  { %1257 = vst.msk [vmem:[%s3353_s1 + $0x6f8] sm:$0xff] %vm1033_vm1, %v936_v30  ;;  %1256 = vst.msk [vmem:[%s3353_s1 + $0x6f0] sm:$0xff] %vm1033_vm1, %v933_v31 }
 0x250   :  { %v942_v32 = vpop.xlane.xlu1 %941  ;;  %v939_v33 = vpop.xlane.xlu0 %938 }
 0x251   :  { %1259 = vst.msk [vmem:[%s3353_s1 + $0x708] sm:$0xff] %vm1033_vm1, %v942_v32  ;;  %1258 = vst.msk [vmem:[%s3353_s1 + $0x700] sm:$0xff] %vm1033_vm1, %v939_v33 }
 0x254   :  { %v948_v34 = vpop.xlane.xlu1 %947  ;;  %v945_v35 = vpop.xlane.xlu0 %944 }
 0x255   :  { %1261 = vst.msk [vmem:[%s3353_s1 + $0x718] sm:$0xff] %vm1033_vm1, %v948_v34  ;;  %1260 = vst.msk [vmem:[%s3353_s1 + $0x710] sm:$0xff] %vm1033_vm1, %v945_v35 }
 0x258   :  { %v954_v36 = vpop.xlane.xlu1 %953  ;;  %v951_v37 = vpop.xlane.xlu0 %950 }
 0x259   :  { %1263 = vst.msk [vmem:[%s3353_s1 + $0x728] sm:$0xff] %vm1033_vm1, %v954_v36  ;;  %1262 = vst.msk [vmem:[%s3353_s1 + $0x720] sm:$0xff] %vm1033_vm1, %v951_v37 }
 0x25c   :  { %v960_v38 = vpop.xlane.xlu1 %959  ;;  %v957_v39 = vpop.xlane.xlu0 %956 }
 0x25d   :  { %1265 = vst.msk [vmem:[%s3353_s1 + $0x738] sm:$0xff] %vm1033_vm1, %v960_v38  ;;  %1264 = vst.msk [vmem:[%s3353_s1 + $0x730] sm:$0xff] %vm1033_vm1, %v957_v39 }
 0x260   :  { %v966_v40 = vpop.xlane.xlu1 %965  ;;  %v963_v41 = vpop.xlane.xlu0 %962 }
 0x261   :  { %1267 = vst.msk [vmem:[%s3353_s1 + $0x748] sm:$0xff] %vm1033_vm1, %v966_v40  ;;  %1266 = vst.msk [vmem:[%s3353_s1 + $0x740] sm:$0xff] %vm1033_vm1, %v963_v41 }
 0x264   :  { %v972_v42 = vpop.xlane.xlu1 %971  ;;  %v969_v43 = vpop.xlane.xlu0 %968 }
 0x265   :  { %1269 = vst.msk [vmem:[%s3353_s1 + $0x758] sm:$0xff] %vm1033_vm1, %v972_v42  ;;  %1268 = vst.msk [vmem:[%s3353_s1 + $0x750] sm:$0xff] %vm1033_vm1, %v969_v43 }
 0x268   :  { %v978_v44 = vpop.xlane.xlu1 %977  ;;  %v975_v45 = vpop.xlane.xlu0 %974 }
 0x269   :  { %1271 = vst.msk [vmem:[%s3353_s1 + $0x768] sm:$0xff] %vm1033_vm1, %v978_v44  ;;  %1270 = vst.msk [vmem:[%s3353_s1 + $0x760] sm:$0xff] %vm1033_vm1, %v975_v45 }
 0x26c   :  { %v984_v46 = vpop.xlane.xlu1 %983  ;;  %v981_v47 = vpop.xlane.xlu0 %980 }
 0x26d   :  { %1273 = vst.msk [vmem:[%s3353_s1 + $0x778] sm:$0xff] %vm1033_vm1, %v984_v46  ;;  %1272 = vst.msk [vmem:[%s3353_s1 + $0x770] sm:$0xff] %vm1033_vm1, %v981_v47 }
 0x270   :  { %v990_v48 = vpop.xlane.xlu1 %989  ;;  %v987_v49 = vpop.xlane.xlu0 %986 }
 0x271   :  { %1275 = vst.msk [vmem:[%s3353_s1 + $0x788] sm:$0xff] %vm1033_vm1, %v990_v48  ;;  %1274 = vst.msk [vmem:[%s3353_s1 + $0x780] sm:$0xff] %vm1033_vm1, %v987_v49 }
 0x274   :  { %v996_v50 = vpop.xlane.xlu1 %995  ;;  %v993_v51 = vpop.xlane.xlu0 %992 }
 0x275   :  { %1277 = vst.msk [vmem:[%s3353_s1 + $0x798] sm:$0xff] %vm1033_vm1, %v996_v50  ;;  %1276 = vst.msk [vmem:[%s3353_s1 + $0x790] sm:$0xff] %vm1033_vm1, %v993_v51 }
 0x278   :  { %v1002_v52 = vpop.xlane.xlu1 %1001  ;;  %v999_v53 = vpop.xlane.xlu0 %998 }
 0x279   :  { %1279 = vst.msk [vmem:[%s3353_s1 + $0x7a8] sm:$0xff] %vm1033_vm1, %v1002_v52  ;;  %1278 = vst.msk [vmem:[%s3353_s1 + $0x7a0] sm:$0xff] %vm1033_vm1, %v999_v53 }
 0x27c   :  { %v1008_v54 = vpop.xlane.xlu1 %1007  ;;  %v1005_v55 = vpop.xlane.xlu0 %1004 }
 0x27d   :  { %1281 = vst.msk [vmem:[%s3353_s1 + $0x7b8] sm:$0xff] %vm1033_vm1, %v1008_v54  ;;  %1280 = vst.msk [vmem:[%s3353_s1 + $0x7b0] sm:$0xff] %vm1033_vm1, %v1005_v55 }
 0x280   :  { %v1014_v56 = vpop.xlane.xlu1 %1013  ;;  %v1011_v57 = vpop.xlane.xlu0 %1010 }
 0x281   :  { %1283 = vst.msk [vmem:[%s3353_s1 + $0x7c8] sm:$0xff] %vm1033_vm1, %v1014_v56  ;;  %1282 = vst.msk [vmem:[%s3353_s1 + $0x7c0] sm:$0xff] %vm1033_vm1, %v1011_v57 }
 0x284   :  { %v1020_v58 = vpop.xlane.xlu1 %1019  ;;  %v1017_v59 = vpop.xlane.xlu0 %1016 }
 0x285   :  { %1285 = vst.msk [vmem:[%s3353_s1 + $0x7d8] sm:$0xff] %vm1033_vm1, %v1020_v58  ;;  %1284 = vst.msk [vmem:[%s3353_s1 + $0x7d0] sm:$0xff] %vm1033_vm1, %v1017_v59 }
 0x288   :  { %v1026_v60 = vpop.xlane.xlu1 %1025  ;;  %v1023_v61 = vpop.xlane.xlu0 %1022 }
 0x289   :  { %1287 = vst.msk [vmem:[%s3353_s1 + $0x7e8] sm:$0xff] %vm1033_vm1, %v1026_v60  ;;  %1286 = vst.msk [vmem:[%s3353_s1 + $0x7e0] sm:$0xff] %vm1033_vm1, %v1023_v61 }
 0x28c   :  { %v1032_v62 = vpop.xlane.xlu1 %1031  ;;  %v1029_v63 = vpop.xlane.xlu0 %1028 }
 0x28d   :  { %1289 = vst.msk [vmem:[%s3353_s1 + $0x7f8] sm:$0xff] %vm1033_vm1, %v1032_v62  ;;  %1288 = vst.msk [vmem:[%s3353_s1 + $0x7f0] sm:$0xff] %vm1033_vm1, %v1029_v63 }

// kernel: _lambda_.14
= control target key start
LH: loop header
LB: loop body
LE: loop exit
PB: predicated region body
PF: predicated region fallthrough
CT: control target
= control target key end

     0   :  { %v460_v0 = vmov 0   ;;  %v461_v11 = vmov 0.0   ;;  %vm462_vm0 = vmmov 0   ;;  %s683_s3 = inlined_call_operand.vmem [shape: f32[128,1], index: 3, kind: input, shape index: {}]   ;;  %s684_s2 = inlined_call_operand.vmem [shape: f32[128,1], index: 2, kind: input, shape index: {}]   ;;  %s685_s4 = inlined_call_operand.vmem [shape: f32[16,1], index: 4, kind: input, shape index: {}]   ;;  %s686_s5 = inlined_call_operand.vmem [shape: f32[16,1], index: 5, kind: input, shape index: {}]   ;;  %s687_s6 = inlined_call_operand.vmem [shape: f32[16,1], index: 6, kind: input, shape index: {}]   ;;  %s688_s0 = inlined_call_operand.vmem [shape: bf16[16,128], index: 0, kind: input, shape index: {}]   ;;  %s689_s1 = inlined_call_operand.vmem [shape: f32[128,128], index: 1, kind: input, shape index: {}]   ;;  %s690_s7 = inlined_call_operand.vmem [shape: f32[16,128], index: 7, kind: output, shape index: {}]  }
   0x1   :  { %458 = vset.pattern.permute.xlu1 %v460_v0  ;;  %457 = vset.pattern.permute.xlu0 %v460_v0  ;;  %v155_v1 = vld [vmem:[%s683_s3] sm:$0xff]  ;;  %v156_v3 = vld [vmem:[%s683_s3 + $0x8] sm:$0xff]  ;;  %v46_v5 = vld [vmem:[%s684_s2 + $0x18] sm:$0xff] }
   0x2   :  { %v43_v2 = vld [vmem:[%s684_s2] sm:$0xff]  ;;  %173 = vperm.xlu1 %458, %v155_v1   ;;  %v44_v4 = vld [vmem:[%s684_s2 + $0x8] sm:$0xff]  ;;  %v45_v6 = vld [vmem:[%s684_s2 + $0x10] sm:$0xff]  ;;  %434 = vmatprep.subr.bf16.mxu0 %v461_v11 }
   0x3   :  { %61 = vperm.xlu0 %457, %v43_v2   ;;  %v158_v7 = vld [vmem:[%s683_s3 + $0x18] sm:$0xff]  ;;  %v157_v8 = vld [vmem:[%s683_s3 + $0x10] sm:$0xff]  ;;  %v48_v9 = vld [vmem:[%s684_s2 + $0x28] sm:$0xff]  ;;  %450 = vmatprep.mubr.msk.bf16.mxu0 %vm462_vm0, %v461_v11 }
   0x4   :  { %v47_v10 = vld [vmem:[%s684_s2 + $0x20] sm:$0xff]  ;;  %v160_v12 = vld [vmem:[%s683_s3 + $0x28] sm:$0xff]  ;;  %v50_v14 = vld [vmem:[%s684_s2 + $0x38] sm:$0xff] }
   0x5   :  { %v159_v13 = vld [vmem:[%s683_s3 + $0x20] sm:$0xff]  ;;  %v49_v15 = vld [vmem:[%s684_s2 + $0x30] sm:$0xff]  ;;  %v162_v16 = vld [vmem:[%s683_s3 + $0x38] sm:$0xff] }
   0x6   :  { %178 = vperm.xlu1 %458, %v156_v3   ;;  %v161_v17 = vld [vmem:[%s683_s3 + $0x30] sm:$0xff]  ;;  %v52_v18 = vld [vmem:[%s684_s2 + $0x48] sm:$0xff]  ;;  %v51_v19 = vld [vmem:[%s684_s2 + $0x40] sm:$0xff] }
   0x7   :  { %66 = vperm.xlu0 %457, %v44_v4   ;;  %v164_v20 = vld [vmem:[%s683_s3 + $0x48] sm:$0xff]  ;;  %v163_v21 = vld [vmem:[%s683_s3 + $0x40] sm:$0xff]  ;;  %v54_v22 = vld [vmem:[%s684_s2 + $0x58] sm:$0xff] }
   0x8   :  { %v53_v23 = vld [vmem:[%s684_s2 + $0x50] sm:$0xff]  ;;  %v166_v24 = vld [vmem:[%s683_s3 + $0x58] sm:$0xff]  ;;  %v56_v26 = vld [vmem:[%s684_s2 + $0x68] sm:$0xff] }
   0x9   :  { %v165_v25 = vld [vmem:[%s683_s3 + $0x50] sm:$0xff]  ;;  %v55_v27 = vld [vmem:[%s684_s2 + $0x60] sm:$0xff]  ;;  %v168_v28 = vld [vmem:[%s683_s3 + $0x68] sm:$0xff] }
   0xa   :  { %76 = vperm.xlu1 %458, %v46_v5   ;;  %v167_v29 = vld [vmem:[%s683_s3 + $0x60] sm:$0xff]  ;;  %v58_v30 = vld [vmem:[%s684_s2 + $0x78] sm:$0xff]  ;;  %v57_v31 = vld [vmem:[%s684_s2 + $0x70] sm:$0xff] }
   0xb   :  { %71 = vperm.xlu0 %457, %v45_v6   ;;  %v170_v32 = vld [vmem:[%s683_s3 + $0x78] sm:$0xff]  ;;  %v169_v33 = vld [vmem:[%s683_s3 + $0x70] sm:$0xff]  ;;  %v326_v34 = vld [vmem:[%s685_s4 + $0x8] sm:$0xff] }
   0xc   :  { %v325_v35 = vld [vmem:[%s685_s4] sm:$0xff]  ;;  %v385_v36 = vld [vmem:[%s686_s5 + $0x8] sm:$0xff]  ;;  %v30_v52 = vld [vmem:[%s689_s1 + $0x18] sm:$0xff] }
   0xd   :  { %v384_v37 = vld [vmem:[%s686_s5] sm:$0xff]  ;;  %v399_v38 = vld [vmem:[%s687_s6 + $0x8] sm:$0xff]  ;;  %v29_v54 = vld [vmem:[%s689_s1 + $0x10] sm:$0xff] }
   0xe   :  { %188 = vperm.xlu1 %458, %v158_v7   ;;  %v398_v39 = vld [vmem:[%s687_s6] sm:$0xff]  ;;  %v28_v44 = vld [vmem:[%s689_s1 + $0x8] sm:$0xff] }
   0xf   :  { %183 = vperm.xlu0 %457, %v157_v8   ;;  %v27_v40 = vld [vmem:[%s689_s1] sm:$0xff]  ;;  %v32_v4 = vld [vmem:[%s689_s1 + $0x28] sm:$0xff] }
  0x10   :  { %v31_v6 = vld [vmem:[%s689_s1 + $0x20] sm:$0xff] }
  0x12   :  { %86 = vperm.xlu1 %458, %v48_v9  }
  0x13   :  { %81 = vperm.xlu0 %457, %v47_v10  }
  0x16   :  { %198 = vperm.xlu1 %458, %v160_v12  }
  0x17   :  { %193 = vperm.xlu0 %457, %v159_v13  }
  0x1a   :  { %96 = vperm.xlu1 %458, %v50_v14  }
  0x1b   :  { %91 = vperm.xlu0 %457, %v49_v15  }
  0x1e   :  { %208 = vperm.xlu1 %458, %v162_v16  }
  0x1f   :  { %203 = vperm.xlu0 %457, %v161_v17  }
  0x22   :  { %106 = vperm.xlu1 %458, %v52_v18  }
  0x23   :  { %101 = vperm.xlu0 %457, %v51_v19  }
  0x26   :  { %218 = vperm.xlu1 %458, %v164_v20   ;;  %v34_v20 = vld [vmem:[%s689_s1 + $0x38] sm:$0xff] }
  0x27   :  { %213 = vperm.xlu0 %457, %v163_v21  }
  0x2a   :  { %116 = vperm.xlu1 %458, %v54_v22   ;;  %v33_v22 = vld [vmem:[%s689_s1 + $0x30] sm:$0xff] }
  0x2b   :  { %111 = vperm.xlu0 %457, %v53_v23  }
  0x2e   :  { %228 = vperm.xlu1 %458, %v166_v24  }
  0x2f   :  { %223 = vperm.xlu0 %457, %v165_v25  }
  0x32   :  { %126 = vperm.xlu1 %458, %v56_v26  }
  0x33   :  { %121 = vperm.xlu0 %457, %v55_v27  }
  0x36   :  { %238 = vperm.xlu1 %458, %v168_v28  }
  0x37   :  { %233 = vperm.xlu0 %457, %v167_v29  }
  0x3a   :  { %136 = vperm.xlu1 %458, %v58_v30  }
  0x3b   :  { %131 = vperm.xlu0 %457, %v57_v31  }
  0x3e   :  { %248 = vperm.xlu1 %458, %v170_v32  }
  0x3f   :  { %243 = vperm.xlu0 %457, %v169_v33  }
  0x42   :  { %334 = vperm.xlu1 %458, %v326_v34  }
  0x43   :  { %329 = vperm.xlu0 %457, %v325_v35   ;;  %v36_v35 = vld [vmem:[%s689_s1 + $0x48] sm:$0xff] }
  0x46   :  { %393 = vperm.xlu1 %458, %v385_v36  }
  0x47   :  { %388 = vperm.xlu0 %457, %v384_v37   ;;  %v35_v37 = vld [vmem:[%s689_s1 + $0x40] sm:$0xff] }
  0x4a   :  { %407 = vperm.xlu1 %458, %v399_v38  }
  0x4b   :  { %402 = vperm.xlu0 %457, %v398_v39  }
  0x81   :  { %v174_v41 = vpop.permute.xlu1 %173 }
  0x82   :  { %v62_v42 = vpop.permute.xlu0 %61 }
  0x83   :  { %v139_v43 = vmul.f32 %v62_v42, %v27_v40 }
  0x85   :  { %v251_v45 = vadd.f32 %v174_v41, %v139_v43  ;;  %v179_v46 = vpop.permute.xlu1 %178 }
  0x86   :  { %v67_v47 = vpop.permute.xlu0 %66 }
  0x87   :  { %v140_v48 = vmul.f32 %v67_v47, %v28_v44  ;;  %v283_v50 = vmul.f32 0.01, %v251_v45  ;;  %vm267_vm1 = vcmp.ge.f32.partialorder %v251_v45, 0.0 }
  0x89   :  { %v252_v49 = vadd.f32 %v179_v46, %v140_v48  ;;  %v77_v51 = vpop.permute.xlu1 %76  ;;  %v299_v58 = vsel %vm267_vm1, %v251_v45, %v283_v50  ;;  %v38_v50 = vld [vmem:[%s689_s1 + $0x58] sm:$0xff] }
  0x8a   :  { %v72_v53 = vpop.permute.xlu0 %71  ;;  %v142_v56 = vmul.f32 %v77_v51, %v30_v52  ;;  %v37_v52 = vld [vmem:[%s689_s1 + $0x50] sm:$0xff] }
  0x8b   :  { %vm268_vm2 = vcmp.ge.f32.partialorder %v252_v49, 0.0  ;;  %v284_v55 = vmul.f32 0.01, %v252_v49  ;;  %v141_v57 = vmul.f32 %v72_v53, %v29_v54 }
  0x8d   :  { %v300_v59 = vsel %vm268_vm2, %v252_v49, %v284_v55  ;;  %v189_v60 = vpop.permute.xlu1 %188 }
  0x8e   :  { %v184_v61 = vpop.permute.xlu0 %183  ;;  %v315_v62 = vpack.c.bf16 %v300_v59, %v299_v58  ;;  %v254_v63 = vadd.f32 %v189_v60, %v142_v56 }
  0x8f   :  { %v253_v0 = vadd.f32 %v184_v61, %v141_v57 }
  0x90   :  { %435 = vmatpush3.bf16.msra.mxu0 %v315_v62  ;;  %vm270_vm3 = vcmp.ge.f32.partialorder %v254_v63, 0.0  ;;  %v286_v1 = vmul.f32 0.01, %v254_v63 }
  0x91   :  { %vm269_vm4 = vcmp.ge.f32.partialorder %v253_v0, 0.0  ;;  %v285_v2 = vmul.f32 0.01, %v253_v0  ;;  %436 = vmatprep.subr.bf16.mxu0 %v461_v11  ;;  %v87_v3 = vpop.permute.xlu1 %86 }
  0x92   :  { %v82_v5 = vpop.permute.xlu0 %81  ;;  %v302_v8 = vsel %vm270_vm3, %v254_v63, %v286_v1  ;;  %v144_v10 = vmul.f32 %v87_v3, %v32_v4  ;;  %v40_v1 = vld [vmem:[%s689_s1 + $0x68] sm:$0xff]  ;;  %v39_v3 = vld [vmem:[%s689_s1 + $0x60] sm:$0xff] }
  0x93   :  { %v301_v7 = vsel %vm269_vm4, %v253_v0, %v285_v2  ;;  %v143_v12 = vmul.f32 %v82_v5, %v31_v6 }
  0x94   :  { %v316_v9 = vpack.c.bf16 %v302_v8, %v301_v7 }
  0x95   :  { %v199_v13 = vpop.permute.xlu1 %198 }
  0x96   :  { %v194_v14 = vpop.permute.xlu0 %193  ;;  %437 = vmatpush3.bf16.msra.mxu0 %v316_v9  ;;  %v256_v15 = vadd.f32 %v199_v13, %v144_v10 }
  0x97   :  { %v255_v16 = vadd.f32 %v194_v14, %v143_v12  ;;  %438 = vmatprep.subr.bf16.mxu0 %v461_v11 }
  0x98   :  { %vm272_vm5 = vcmp.ge.f32.partialorder %v256_v15, 0.0  ;;  %v288_v17 = vmul.f32 0.01, %v256_v15 }
  0x99   :  { %vm271_vm6 = vcmp.ge.f32.partialorder %v255_v16, 0.0  ;;  %v287_v18 = vmul.f32 0.01, %v255_v16  ;;  %v97_v19 = vpop.permute.xlu1 %96 }
  0x9a   :  { %v92_v21 = vpop.permute.xlu0 %91  ;;  %v304_v24 = vsel %vm272_vm5, %v256_v15, %v288_v17  ;;  %v146_v26 = vmul.f32 %v97_v19, %v34_v20  ;;  %v42_v17 = vld [vmem:[%s689_s1 + $0x78] sm:$0xff]  ;;  %v41_v19 = vld [vmem:[%s689_s1 + $0x70] sm:$0xff] }
  0x9b   :  { %v303_v23 = vsel %vm271_vm6, %v255_v16, %v287_v18  ;;  %v145_v27 = vmul.f32 %v92_v21, %v33_v22 }
  0x9c   :  { %v317_v25 = vpack.c.bf16 %v304_v24, %v303_v23 }
  0x9d   :  { %v209_v28 = vpop.permute.xlu1 %208 }
  0x9e   :  { %v204_v29 = vpop.permute.xlu0 %203  ;;  %439 = vmatpush3.bf16.msra.mxu0 %v317_v25  ;;  %v258_v30 = vadd.f32 %v209_v28, %v146_v26 }
  0x9f   :  { %v257_v31 = vadd.f32 %v204_v29, %v145_v27  ;;  %440 = vmatprep.subr.bf16.mxu0 %v461_v11 }
  0xa0   :  { %vm274_vm7 = vcmp.ge.f32.partialorder %v258_v30, 0.0  ;;  %v290_v32 = vmul.f32 0.01, %v258_v30 }
  0xa1   :  { %vm273_vm8 = vcmp.ge.f32.partialorder %v257_v31, 0.0  ;;  %v289_v33 = vmul.f32 0.01, %v257_v31  ;;  %v107_v34 = vpop.permute.xlu1 %106 }
  0xa2   :  { %v102_v36 = vpop.permute.xlu0 %101  ;;  %v306_v39 = vsel %vm274_vm7, %v258_v30, %v290_v32  ;;  %v148_v41 = vmul.f32 %v107_v34, %v36_v35  ;;  %v459_v34 = vld [vmem:[%s688_s0] sm:$0xff]  }
  0xa3   :  { %v305_v38 = vsel %vm273_vm8, %v257_v31, %v289_v33  ;;  %v147_v42 = vmul.f32 %v102_v36, %v35_v37 }
  0xa4   :  { %v318_v40 = vpack.c.bf16 %v306_v39, %v305_v38 }
  0xa5   :  { %v219_v43 = vpop.permute.xlu1 %218 }
  0xa6   :  { %v214_v44 = vpop.permute.xlu0 %213  ;;  %441 = vmatpush3.bf16.msra.mxu0 %v318_v40  ;;  %v260_v45 = vadd.f32 %v219_v43, %v148_v41 }
  0xa7   :  { %v259_v46 = vadd.f32 %v214_v44, %v147_v42  ;;  %442 = vmatprep.subr.bf16.mxu0 %v461_v11 }
  0xa8   :  { %vm276_vm9 = vcmp.ge.f32.partialorder %v260_v45, 0.0  ;;  %v292_v47 = vmul.f32 0.01, %v260_v45 }
  0xa9   :  { %vm275_vm10 = vcmp.ge.f32.partialorder %v259_v46, 0.0  ;;  %v291_v48 = vmul.f32 0.01, %v259_v46  ;;  %v117_v49 = vpop.permute.xlu1 %116 }
  0xaa   :  { %v112_v51 = vpop.permute.xlu0 %111  ;;  %v308_v54 = vsel %vm276_vm9, %v260_v45, %v292_v47  ;;  %v150_v56 = vmul.f32 %v117_v49, %v38_v50 }
  0xab   :  { %v307_v53 = vsel %vm275_vm10, %v259_v46, %v291_v48  ;;  %v149_v57 = vmul.f32 %v112_v51, %v37_v52 }
  0xac   :  { %v319_v55 = vpack.c.bf16 %v308_v54, %v307_v53 }
  0xad   :  { %v229_v58 = vpop.permute.xlu1 %228 }
  0xae   :  { %v224_v59 = vpop.permute.xlu0 %223  ;;  %443 = vmatpush3.bf16.msra.mxu0 %v319_v55  ;;  %v262_v60 = vadd.f32 %v229_v58, %v150_v56 }
  0xaf   :  { %v261_v61 = vadd.f32 %v224_v59, %v149_v57  ;;  %444 = vmatprep.subr.bf16.mxu0 %v461_v11 }
  0xb0   :  { %vm278_vm11 = vcmp.ge.f32.partialorder %v262_v60, 0.0  ;;  %v294_v62 = vmul.f32 0.01, %v262_v60 }
  0xb1   :  { %vm277_vm12 = vcmp.ge.f32.partialorder %v261_v61, 0.0  ;;  %v293_v63 = vmul.f32 0.01, %v261_v61  ;;  %v127_v0 = vpop.permute.xlu1 %126 }
  0xb2   :  { %v122_v2 = vpop.permute.xlu0 %121  ;;  %v310_v5 = vsel %vm278_vm11, %v262_v60, %v294_v62  ;;  %v152_v7 = vmul.f32 %v127_v0, %v40_v1 }
  0xb3   :  { %v309_v4 = vsel %vm277_vm12, %v261_v61, %v293_v63  ;;  %v151_v8 = vmul.f32 %v122_v2, %v39_v3 }
  0xb4   :  { %v320_v6 = vpack.c.bf16 %v310_v5, %v309_v4 }
  0xb5   :  { %v239_v9 = vpop.permute.xlu1 %238 }
  0xb6   :  { %v234_v10 = vpop.permute.xlu0 %233  ;;  %445 = vmatpush3.bf16.msra.mxu0 %v320_v6  ;;  %v264_v12 = vadd.f32 %v239_v9, %v152_v7 }
  0xb7   :  { %v263_v13 = vadd.f32 %v234_v10, %v151_v8  ;;  %446 = vmatprep.subr.bf16.mxu0 %v461_v11 }
  0xb8   :  { %vm280_vm13 = vcmp.ge.f32.partialorder %v264_v12, 0.0  ;;  %v296_v14 = vmul.f32 0.01, %v264_v12 }
  0xb9   :  { %vm279_vm14 = vcmp.ge.f32.partialorder %v263_v13, 0.0  ;;  %v295_v15 = vmul.f32 0.01, %v263_v13  ;;  %v137_v16 = vpop.permute.xlu1 %136 }
  0xba   :  { %v132_v18 = vpop.permute.xlu0 %131  ;;  %v312_v21 = vsel %vm280_vm13, %v264_v12, %v296_v14  ;;  %v154_v23 = vmul.f32 %v137_v16, %v42_v17 }
  0xbb   :  { %v311_v20 = vsel %vm279_vm14, %v263_v13, %v295_v15  ;;  %v153_v24 = vmul.f32 %v132_v18, %v41_v19 }
  0xbc   :  { %v321_v22 = vpack.c.bf16 %v312_v21, %v311_v20 }
  0xbd   :  { %v249_v25 = vpop.permute.xlu1 %248 }
  0xbe   :  { %v244_v26 = vpop.permute.xlu0 %243  ;;  %447 = vmatpush3.bf16.msra.mxu0 %v321_v22  ;;  %v266_v27 = vadd.f32 %v249_v25, %v154_v23 }
  0xbf   :  { %v265_v28 = vadd.f32 %v244_v26, %v153_v24  ;;  %448 = vmatprep.subr.bf16.mxu0 %v461_v11 }
  0xc0   :  { %vm282_vm15 = vcmp.ge.f32.partialorder %v266_v27, 0.0  ;;  %v298_v29 = vmul.f32 0.01, %v266_v27 }
  0xc1   :  { %vm281_vm0 = vcmp.ge.f32.partialorder %v265_v28, 0.0  ;;  %v297_v30 = vmul.f32 0.01, %v265_v28  ;;  %v335_v36 = vpop.permute.xlu1 %334 }
  0xc2   :  { %v314_v32 = vsel %vm282_vm15, %v266_v27, %v298_v29  ;;  %v330_v35 = vpop.permute.xlu0 %329 }
  0xc3   :  { %v313_v31 = vsel %vm281_vm0, %v265_v28, %v297_v30 }
  0xc4   :  { %v322_v33 = vpack.c.bf16 %v314_v32, %v313_v31 }
  0xc5   :  { %v394_v38 = vpop.permute.xlu1 %393 }
  0xc6   :  { %449 = vmatpush3.bf16.msra.mxu0 %v322_v33  ;;  %v389_v37 = vpop.permute.xlu0 %388 }
  0xc9   :  { %451 = vmatmul.mubr.bf16.vlgmr.msra.gmra.mrb[0].mxu0 %v459_v34  ;;  %v408_v48 = vpop.permute.xlu1 %407 }
  0xca   :  { %v403_v45 = vpop.permute.xlu0 %402 }
 0x19c   :  { %v377_v39 = vpop.f32.mrb[0].mxu0 }
 0x19d   :  { %v378_v40 = vadd.f32 %v377_v39, %v330_v35  ;;  %v452_v11 = vpop.f32.mrb[1].mxu0 }
 0x19e   :  { %v380_v41 = vpop.f32.mrb[2].mxu0 }
 0x19f   :  { %v396_v42 = vmul.f32 %v389_v37, %v378_v40  ;;  %v381_v43 = vadd.f32 %v380_v41, %v335_v36  ;;  %v453_v44 = vpop.f32.mrb[3].mxu0 }
 0x1a1   :  { %v410_v46 = vadd.f32 %v403_v45, %v396_v42  ;;  %v397_v47 = vmul.f32 %v394_v38, %v381_v43 }
 0x1a3   :  { %vm412_vm1 = vcmp.ge.f32.partialorder %v410_v46, 0.0  ;;  %v414_v49 = vmul.f32 0.01, %v410_v46  ;;  %v411_v50 = vadd.f32 %v408_v48, %v397_v47 }
 0x1a5   :  { %v416_v51 = vsel %vm412_vm1, %v410_v46, %v414_v49  ;;  %vm413_vm2 = vcmp.ge.f32.partialorder %v411_v50, 0.0  ;;  %v415_v52 = vmul.f32 0.01, %v411_v50 }
 0x1a6   :  { %418 = vst [vmem:[%s690_s7] sm:$0xff] %v416_v51 }
 0x1a7   :  { %v417_v53 = vsel %vm413_vm2, %v411_v50, %v415_v52 }
 0x1a8   :  { %419 = vst [vmem:[%s690_s7 + $0x8] sm:$0xff] %v417_v53 }

// kernel: _lambda_.15
= control target key start
LH: loop header
LB: loop body
LE: loop exit
PB: predicated region body
PF: predicated region fallthrough
CT: control target
= control target key end

     0   :  { %v197_v0 = vmov 0.0   ;;  %vm198_vm0 = vmmov 0   ;;  %v199_v2 = vmov 0   ;;  %s259_s1 = inlined_call_operand.vmem [shape: bf16[128,128], index: 1, kind: input, shape index: {}]   ;;  %s260_s2 = inlined_call_operand.vmem [shape: f32[16,1], index: 2, kind: input, shape index: {}]   ;;  %s261_s0 = inlined_call_operand.vmem [shape: bf16[16,128], index: 0, kind: input, shape index: {}]   ;;  %s262_s3 = inlined_call_operand.vmem [shape: f32[16,128], index: 3, kind: output, shape index: {}]  }
   0x1   :  { %164 = vmatprep.subr.bf16.mxu0 %v197_v0  ;;  %v188_v1 = vld [vmem:[%s259_s1] sm:$0xff]   ;;  %180 = vmatprep.mubr.msk.bf16.mxu0 %vm198_vm0, %v197_v0  ;;  %v189_v3 = vld [vmem:[%s259_s1 + $0x8] sm:$0xff]   ;;  %v190_v4 = vld [vmem:[%s259_s1 + $0x10] sm:$0xff]  }
   0x2   :  { %187 = vset.pattern.permute.xlu0 %v199_v2  ;;  %165 = vmatpush3.bf16.msra.mxu0 %v188_v1  ;;  %v33_v5 = vld [vmem:[%s260_s2] sm:$0xff]  ;;  %v191_v6 = vld [vmem:[%s259_s1 + $0x18] sm:$0xff]   ;;  %v34_v7 = vld [vmem:[%s260_s2 + $0x8] sm:$0xff] }
   0x3   :  { %166 = vmatprep.subr.bf16.mxu0 %v197_v0  ;;  %37 = vperm.xlu0 %187, %v33_v5   ;;  %v192_v8 = vld [vmem:[%s259_s1 + $0x20] sm:$0xff]   ;;  %v193_v9 = vld [vmem:[%s259_s1 + $0x28] sm:$0xff]   ;;  %v194_v10 = vld [vmem:[%s259_s1 + $0x30] sm:$0xff]  }
   0x4   :  { %v195_v11 = vld [vmem:[%s259_s1 + $0x38] sm:$0xff]   ;;  %v196_v12 = vld [vmem:[%s261_s0] sm:$0xff]  }
   0x6   :  { %167 = vmatpush3.bf16.msra.mxu0 %v189_v3 }
   0x7   :  { %168 = vmatprep.subr.bf16.mxu0 %v197_v0  ;;  %42 = vperm.xlu0 %187, %v34_v7  }
   0xa   :  { %169 = vmatpush3.bf16.msra.mxu0 %v190_v4 }
   0xb   :  { %170 = vmatprep.subr.bf16.mxu0 %v197_v0 }
   0xe   :  { %171 = vmatpush3.bf16.msra.mxu0 %v191_v6 }
   0xf   :  { %172 = vmatprep.subr.bf16.mxu0 %v197_v0 }
  0x12   :  { %173 = vmatpush3.bf16.msra.mxu0 %v192_v8 }
  0x13   :  { %174 = vmatprep.subr.bf16.mxu0 %v197_v0 }
  0x16   :  { %175 = vmatpush3.bf16.msra.mxu0 %v193_v9 }
  0x17   :  { %176 = vmatprep.subr.bf16.mxu0 %v197_v0 }
  0x1a   :  { %177 = vmatpush3.bf16.msra.mxu0 %v194_v10 }
  0x1b   :  { %178 = vmatprep.subr.bf16.mxu0 %v197_v0 }
  0x1e   :  { %179 = vmatpush3.bf16.msra.mxu0 %v195_v11 }
  0x21   :  { %181 = vmatmul.mubr.bf16.vlgmr.msra.gmra.mrb[0].mxu0 %v196_v12 }
  0x82   :  { %v38_v13 = vpop.permute.xlu0 %37 }
  0x86   :  { %v43_v17 = vpop.permute.xlu0 %42 }
  0xf4   :  { %v133_v14 = vpop.f32.mrb[0].mxu0 }
  0xf5   :  { %v134_v15 = vadd.f32 %v133_v14, %v38_v13  ;;  %v182_v16 = vpop.f32.mrb[1].mxu0 }
  0xf6   :  { %v136_v18 = vpop.f32.mrb[2].mxu0 }
  0xf7   :  { %140 = vst [vmem:[%s262_s3] sm:$0xff] %v134_v15  ;;  %v137_v19 = vadd.f32 %v136_v18, %v43_v17  ;;  %v183_v20 = vpop.f32.mrb[3].mxu0 }
  0xf9   :  { %141 = vst [vmem:[%s262_s3 + $0x8] sm:$0xff] %v137_v19 }

// kernel: squeeze.2
= control target key start
LH: loop header
LB: loop body
LE: loop exit
PB: predicated region body
PF: predicated region fallthrough
CT: control target
= control target key end

     0   :  { %vm3_vm0 = vcmask 130048   ;;  %s496_s10 = smov 112   ;;  %s497_s11 = smov 80   ;;  %v502_v18 = vmov 0.0   ;;  %s711_s0 = inlined_call_operand.vmem [shape: f32[2048], index: 0, kind: input, shape index: {}]   ;;  %s712_s1 = inlined_call_operand.vmem [shape: bf16[16,2,4,16], index: 1, kind: output, shape index: {}]  }
   0x1   :  { %v44_v0 = vld [vmem:[%s711_s0] sm:$0xff]   ;;  %v450_v1 = vld [vmem:[%s711_s0 + $0x8] sm:$0xff]   ;;  %s495_s0 = smov 96   ;;  %s498_s12 = smov 64  }
   0x2   :  { %45 = vrot.lane.b32.xlu1 %v44_v0, %s495_s0  ;;  %20 = vrot.lane.b32.xlu0 %v44_v0, %s496_s10  ;;  %4 = vst.msk [vmem:[#allocation0] ss:$16 sm:$0x3] %vm3_vm0, %v44_v0   ;;  %5 = vst.msk [vmem:[#allocation0] ss:$16 sm:$0xc] %vm3_vm0, %v44_v0  }
   0x3   :  { %6 = vst.msk [vmem:[#allocation0] ss:$16 sm:$0x30] %vm3_vm0, %v44_v0   ;;  %7 = vst.msk [vmem:[#allocation0] ss:$16 sm:$0xc0] %vm3_vm0, %v44_v0  }
   0x4   :  { %12 = vst.msk [vmem:[#allocation0 + $0x80] ss:$16 sm:$0x3] %vm3_vm0, %v450_v1   ;;  %14 = vst.msk [vmem:[#allocation0 + $0x80] ss:$16 sm:$0xc] %vm3_vm0, %v450_v1  }
   0x5   :  { %16 = vst.msk [vmem:[#allocation0 + $0x80] ss:$16 sm:$0x30] %vm3_vm0, %v450_v1   ;;  %18 = vst.msk [vmem:[#allocation0 + $0x80] ss:$16 sm:$0xc0] %vm3_vm0, %v450_v1  }
   0x6   :  { %58 = vrot.lane.b32.xlu1 %v450_v1, %s495_s0  ;;  %33 = vrot.lane.b32.xlu0 %v450_v1, %s496_s10  ;;  %s499_s13 = smov 48   ;;  %s500_s14 = smov 32  }
   0x7   :  { %s501_s15 = smov 16  }
   0xa   :  { %83 = vrot.lane.b32.xlu1 %v450_v1, %s497_s11  ;;  %70 = vrot.lane.b32.xlu0 %v44_v0, %s497_s11 }
   0xe   :  { %108 = vrot.lane.b32.xlu1 %v450_v1, %s498_s12  ;;  %95 = vrot.lane.b32.xlu0 %v44_v0, %s498_s12 }
  0x12   :  { %133 = vrot.lane.b32.xlu1 %v450_v1, %s499_s13  ;;  %120 = vrot.lane.b32.xlu0 %v44_v0, %s499_s13 }
  0x16   :  { %158 = vrot.lane.b32.xlu1 %v450_v1, %s500_s14  ;;  %145 = vrot.lane.b32.xlu0 %v44_v0, %s500_s14 }
  0x1a   :  { %183 = vrot.lane.b32.xlu1 %v450_v1, %s501_s15  ;;  %170 = vrot.lane.b32.xlu0 %v44_v0, %s501_s15 }
  0x74   :  { %v46_v2 = vpop.permute.xlu1 %45   ;;  %v21_v3 = vpop.permute.xlu0 %20  }
  0x75   :  { %49 = vst.msk [vmem:[#allocation0 + $0x2] ss:$16 sm:$0x3] %vm3_vm0, %v46_v2   ;;  %51 = vst.msk [vmem:[#allocation0 + $0x2] ss:$16 sm:$0xc] %vm3_vm0, %v46_v2  }
  0x76   :  { %53 = vst.msk [vmem:[#allocation0 + $0x2] ss:$16 sm:$0x30] %vm3_vm0, %v46_v2   ;;  %55 = vst.msk [vmem:[#allocation0 + $0x2] ss:$16 sm:$0xc0] %vm3_vm0, %v46_v2  }
  0x77   :  { %24 = vst.msk [vmem:[#allocation0 + $0x1] ss:$16 sm:$0x3] %vm3_vm0, %v21_v3   ;;  %26 = vst.msk [vmem:[#allocation0 + $0x1] ss:$16 sm:$0xc] %vm3_vm0, %v21_v3  }
  0x78   :  { %28 = vst.msk [vmem:[#allocation0 + $0x1] ss:$16 sm:$0x30] %vm3_vm0, %v21_v3   ;;  %30 = vst.msk [vmem:[#allocation0 + $0x1] ss:$16 sm:$0xc0] %vm3_vm0, %v21_v3   ;;  %v59_v4 = vpop.permute.xlu1 %58   ;;  %v34_v5 = vpop.permute.xlu0 %33  }
  0x79   :  { %62 = vst.msk [vmem:[#allocation0 + $0x82] ss:$16 sm:$0x3] %vm3_vm0, %v59_v4   ;;  %64 = vst.msk [vmem:[#allocation0 + $0x82] ss:$16 sm:$0xc] %vm3_vm0, %v59_v4  }
  0x7a   :  { %66 = vst.msk [vmem:[#allocation0 + $0x82] ss:$16 sm:$0x30] %vm3_vm0, %v59_v4   ;;  %68 = vst.msk [vmem:[#allocation0 + $0x82] ss:$16 sm:$0xc0] %vm3_vm0, %v59_v4  }
  0x7b   :  { %37 = vst.msk [vmem:[#allocation0 + $0x81] ss:$16 sm:$0x3] %vm3_vm0, %v34_v5   ;;  %39 = vst.msk [vmem:[#allocation0 + $0x81] ss:$16 sm:$0xc] %vm3_vm0, %v34_v5  }
  0x7c   :  { %41 = vst.msk [vmem:[#allocation0 + $0x81] ss:$16 sm:$0x30] %vm3_vm0, %v34_v5   ;;  %43 = vst.msk [vmem:[#allocation0 + $0x81] ss:$16 sm:$0xc0] %vm3_vm0, %v34_v5   ;;  %v84_v6 = vpop.permute.xlu1 %83   ;;  %v71_v7 = vpop.permute.xlu0 %70  }
  0x7d   :  { %87 = vst.msk [vmem:[#allocation0 + $0x83] ss:$16 sm:$0x3] %vm3_vm0, %v84_v6   ;;  %89 = vst.msk [vmem:[#allocation0 + $0x83] ss:$16 sm:$0xc] %vm3_vm0, %v84_v6  }
  0x7e   :  { %91 = vst.msk [vmem:[#allocation0 + $0x83] ss:$16 sm:$0x30] %vm3_vm0, %v84_v6   ;;  %93 = vst.msk [vmem:[#allocation0 + $0x83] ss:$16 sm:$0xc0] %vm3_vm0, %v84_v6  }
  0x7f   :  { %74 = vst.msk [vmem:[#allocation0 + $0x3] ss:$16 sm:$0x3] %vm3_vm0, %v71_v7   ;;  %76 = vst.msk [vmem:[#allocation0 + $0x3] ss:$16 sm:$0xc] %vm3_vm0, %v71_v7  }
  0x80   :  { %78 = vst.msk [vmem:[#allocation0 + $0x3] ss:$16 sm:$0x30] %vm3_vm0, %v71_v7   ;;  %80 = vst.msk [vmem:[#allocation0 + $0x3] ss:$16 sm:$0xc0] %vm3_vm0, %v71_v7   ;;  %v109_v8 = vpop.permute.xlu1 %108   ;;  %v96_v9 = vpop.permute.xlu0 %95  }
  0x81   :  { %112 = vst.msk [vmem:[#allocation0 + $0x88] ss:$16 sm:$0x3] %vm3_vm0, %v109_v8   ;;  %114 = vst.msk [vmem:[#allocation0 + $0x88] ss:$16 sm:$0xc] %vm3_vm0, %v109_v8  }
  0x82   :  { %116 = vst.msk [vmem:[#allocation0 + $0x88] ss:$16 sm:$0x30] %vm3_vm0, %v109_v8   ;;  %118 = vst.msk [vmem:[#allocation0 + $0x88] ss:$16 sm:$0xc0] %vm3_vm0, %v109_v8  }
  0x83   :  { %99 = vst.msk [vmem:[#allocation0 + $0x8] ss:$16 sm:$0x3] %vm3_vm0, %v96_v9   ;;  %101 = vst.msk [vmem:[#allocation0 + $0x8] ss:$16 sm:$0xc] %vm3_vm0, %v96_v9  }
  0x84   :  { %103 = vst.msk [vmem:[#allocation0 + $0x8] ss:$16 sm:$0x30] %vm3_vm0, %v96_v9   ;;  %105 = vst.msk [vmem:[#allocation0 + $0x8] ss:$16 sm:$0xc0] %vm3_vm0, %v96_v9   ;;  %v134_v13 = vpop.permute.xlu1 %133   ;;  %v121_v14 = vpop.permute.xlu0 %120  }
  0x85   :  { %v307_v10 = vld [vmem:[#allocation0 + $0x80] sm:$0xf]  ;;  %v321_v11 = vld [vmem:[#allocation0 + $0x90] sm:$0xf] }
  0x86   :  { %v335_v12 = vld [vmem:[#allocation0 + $0xa0] sm:$0xf]  ;;  %v349_v15 = vld [vmem:[#allocation0 + $0xb0] sm:$0xf]  ;;  %v308_v19 = vpack.c.bf16 %v502_v18, %v307_v10  ;;  %v322_v20 = vpack.c.bf16 %v502_v18, %v321_v11 }
  0x87   :  { %v363_v16 = vld [vmem:[#allocation0 + $0xc0] sm:$0xf]  ;;  %v377_v17 = vld [vmem:[#allocation0 + $0xd0] sm:$0xf]  ;;  %v336_v21 = vpack.c.bf16 %v502_v18, %v335_v12  ;;  %v350_v25 = vpack.c.bf16 %v502_v18, %v349_v15 }
  0x88   :  { %137 = vst.msk [vmem:[#allocation0 + $0x89] ss:$16 sm:$0x3] %vm3_vm0, %v134_v13   ;;  %139 = vst.msk [vmem:[#allocation0 + $0x89] ss:$16 sm:$0xc] %vm3_vm0, %v134_v13   ;;  %v364_v26 = vpack.c.bf16 %v502_v18, %v363_v16  ;;  %v378_v27 = vpack.c.bf16 %v502_v18, %v377_v17  ;;  %v159_v37 = vpop.permute.xlu1 %158   ;;  %v146_v38 = vpop.permute.xlu0 %145  }
  0x89   :  { %141 = vst.msk [vmem:[#allocation0 + $0x89] ss:$16 sm:$0x30] %vm3_vm0, %v134_v13   ;;  %143 = vst.msk [vmem:[#allocation0 + $0x89] ss:$16 sm:$0xc0] %vm3_vm0, %v134_v13  }
  0x8a   :  { %124 = vst.msk [vmem:[#allocation0 + $0x9] ss:$16 sm:$0x3] %vm3_vm0, %v121_v14   ;;  %126 = vst.msk [vmem:[#allocation0 + $0x9] ss:$16 sm:$0xc] %vm3_vm0, %v121_v14  }
  0x8b   :  { %128 = vst.msk [vmem:[#allocation0 + $0x9] ss:$16 sm:$0x30] %vm3_vm0, %v121_v14   ;;  %130 = vst.msk [vmem:[#allocation0 + $0x9] ss:$16 sm:$0xc0] %vm3_vm0, %v121_v14  }
  0x8c   :  { %v391_v22 = vld [vmem:[#allocation0 + $0xe0] sm:$0xf]  ;;  %v405_v23 = vld [vmem:[#allocation0 + $0xf0] sm:$0xf]  ;;  %471 = vst [vmem:[%s712_s1 + $0x20] sm:$0x3] %v308_v19  ;;  %v184_v47 = vpop.permute.xlu1 %183   ;;  %v171_v48 = vpop.permute.xlu0 %170  }
  0x8d   :  { %v198_v24 = vld [vmem:[#allocation0] sm:$0xf]  ;;  %v209_v28 = vld [vmem:[#allocation0 + $0x10] sm:$0xf]  ;;  %v392_v32 = vpack.c.bf16 %v502_v18, %v391_v22  ;;  %v406_v33 = vpack.c.bf16 %v502_v18, %v405_v23  ;;  %473 = vst [vmem:[%s712_s1 + $0x24] sm:$0x3] %v322_v20 }
  0x8e   :  { %v223_v29 = vld [vmem:[#allocation0 + $0x20] sm:$0xf]  ;;  %v237_v30 = vld [vmem:[#allocation0 + $0x30] sm:$0xf]  ;;  %v199_v31 = vpack.c.bf16 %v502_v18, %v198_v24  ;;  %475 = vst [vmem:[%s712_s1 + $0x28] sm:$0x3] %v336_v21  ;;  %v210_v39 = vpack.c.bf16 %v502_v18, %v209_v28 }
  0x8f   :  { %v251_v34 = vld [vmem:[#allocation0 + $0x40] sm:$0xf]  ;;  %v265_v35 = vld [vmem:[#allocation0 + $0x50] sm:$0xf]  ;;  %v224_v40 = vpack.c.bf16 %v502_v18, %v223_v29  ;;  %v238_v41 = vpack.c.bf16 %v502_v18, %v237_v30  ;;  %477 = vst [vmem:[%s712_s1 + $0x2c] sm:$0x3] %v350_v25 }
  0x90   :  { %v279_v36 = vld [vmem:[#allocation0 + $0x60] sm:$0xf]  ;;  %479 = vst [vmem:[%s712_s1 + $0x30] sm:$0x3] %v364_v26  ;;  %481 = vst [vmem:[%s712_s1 + $0x34] sm:$0x3] %v378_v27  ;;  %v252_v43 = vpack.c.bf16 %v502_v18, %v251_v34  ;;  %v266_v44 = vpack.c.bf16 %v502_v18, %v265_v35 }
  0x91   :  { %v293_v42 = vld [vmem:[#allocation0 + $0x70] sm:$0xf]  ;;  %162 = vst.msk [vmem:[#allocation0 + $0x8a] ss:$16 sm:$0x3] %vm3_vm0, %v159_v37   ;;  %v280_v45 = vpack.c.bf16 %v502_v18, %v279_v36  ;;  %201 = vst [vmem:[%s712_s1] sm:$0x3] %v199_v31 }
  0x92   :  { %164 = vst.msk [vmem:[#allocation0 + $0x8a] ss:$16 sm:$0xc] %vm3_vm0, %v159_v37   ;;  %166 = vst.msk [vmem:[#allocation0 + $0x8a] ss:$16 sm:$0x30] %vm3_vm0, %v159_v37   ;;  %v294_v46 = vpack.c.bf16 %v502_v18, %v293_v42 }
  0x93   :  { %168 = vst.msk [vmem:[#allocation0 + $0x8a] ss:$16 sm:$0xc0] %vm3_vm0, %v159_v37   ;;  %149 = vst.msk [vmem:[#allocation0 + $0xa] ss:$16 sm:$0x3] %vm3_vm0, %v146_v38  }
  0x94   :  { %151 = vst.msk [vmem:[#allocation0 + $0xa] ss:$16 sm:$0xc] %vm3_vm0, %v146_v38   ;;  %153 = vst.msk [vmem:[#allocation0 + $0xa] ss:$16 sm:$0x30] %vm3_vm0, %v146_v38  }
  0x95   :  { %155 = vst.msk [vmem:[#allocation0 + $0xa] ss:$16 sm:$0xc0] %vm3_vm0, %v146_v38   ;;  %483 = vst [vmem:[%s712_s1 + $0x38] sm:$0x3] %v392_v32 }
  0x96   :  { %485 = vst [vmem:[%s712_s1 + $0x3c] sm:$0x3] %v406_v33  ;;  %457 = vst [vmem:[%s712_s1 + $0x4] sm:$0x3] %v210_v39 }
  0x97   :  { %459 = vst [vmem:[%s712_s1 + $0x8] sm:$0x3] %v224_v40  ;;  %461 = vst [vmem:[%s712_s1 + $0xc] sm:$0x3] %v238_v41 }
  0x98   :  { %463 = vst [vmem:[%s712_s1 + $0x10] sm:$0x3] %v252_v43  ;;  %465 = vst [vmem:[%s712_s1 + $0x14] sm:$0x3] %v266_v44 }
  0x99   :  { %467 = vst [vmem:[%s712_s1 + $0x18] sm:$0x3] %v280_v45  ;;  %469 = vst [vmem:[%s712_s1 + $0x1c] sm:$0x3] %v294_v46 }
  0x9a   :  { %187 = vst.msk [vmem:[#allocation0 + $0x8b] ss:$16 sm:$0x3] %vm3_vm0, %v184_v47   ;;  %189 = vst.msk [vmem:[#allocation0 + $0x8b] ss:$16 sm:$0xc] %vm3_vm0, %v184_v47  }
  0x9b   :  { %191 = vst.msk [vmem:[#allocation0 + $0x8b] ss:$16 sm:$0x30] %vm3_vm0, %v184_v47   ;;  %193 = vst.msk [vmem:[#allocation0 + $0x8b] ss:$16 sm:$0xc0] %vm3_vm0, %v184_v47  }
  0x9c   :  { %174 = vst.msk [vmem:[#allocation0 + $0xb] ss:$16 sm:$0x3] %vm3_vm0, %v171_v48   ;;  %176 = vst.msk [vmem:[#allocation0 + $0xb] ss:$16 sm:$0xc] %vm3_vm0, %v171_v48  }
  0x9d   :  { %178 = vst.msk [vmem:[#allocation0 + $0xb] ss:$16 sm:$0x30] %vm3_vm0, %v171_v48   ;;  %180 = vst.msk [vmem:[#allocation0 + $0xb] ss:$16 sm:$0xc0] %vm3_vm0, %v171_v48  }
  0xa1   :  { %v314_v49 = vld [vmem:[#allocation0 + $0x88] sm:$0xf]  ;;  %v328_v50 = vld [vmem:[#allocation0 + $0x98] sm:$0xf] }
  0xa2   :  { %v342_v51 = vld [vmem:[#allocation0 + $0xa8] sm:$0xf]  ;;  %v315_v52 = vpack.c.bf16 %v502_v18, %v314_v49  ;;  %v329_v53 = vpack.c.bf16 %v502_v18, %v328_v50  ;;  %v356_v55 = vld [vmem:[#allocation0 + $0xb8] sm:$0xf] }
  0xa3   :  { %v343_v54 = vpack.c.bf16 %v502_v18, %v342_v51  ;;  %v370_v56 = vld [vmem:[#allocation0 + $0xc8] sm:$0xf]  ;;  %v384_v57 = vld [vmem:[#allocation0 + $0xd8] sm:$0xf]  ;;  %v357_v58 = vpack.c.bf16 %v502_v18, %v356_v55 }
  0xa4   :  { %v371_v59 = vpack.c.bf16 %v502_v18, %v370_v56  ;;  %v385_v60 = vpack.c.bf16 %v502_v18, %v384_v57  ;;  %v398_v61 = vld [vmem:[#allocation0 + $0xe8] sm:$0xf]  ;;  %v412_v62 = vld [vmem:[#allocation0 + $0xf8] sm:$0xf]  ;;  %472 = vst [vmem:[%s712_s1 + $0x22] sm:$0x3] %v315_v52 }
  0xa5   :  { %v203_v63 = vld [vmem:[#allocation0 + $0x8] sm:$0xf]  ;;  %474 = vst [vmem:[%s712_s1 + $0x26] sm:$0x3] %v329_v53  ;;  %476 = vst [vmem:[%s712_s1 + $0x2a] sm:$0x3] %v343_v54  ;;  %v399_v0 = vpack.c.bf16 %v502_v18, %v398_v61  ;;  %v413_v1 = vpack.c.bf16 %v502_v18, %v412_v62 }
  0xa6   :  { %v204_v2 = vpack.c.bf16 %v502_v18, %v203_v63  ;;  %v216_v3 = vld [vmem:[#allocation0 + $0x18] sm:$0xf]  ;;  %v230_v4 = vld [vmem:[#allocation0 + $0x28] sm:$0xf]  ;;  %478 = vst [vmem:[%s712_s1 + $0x2e] sm:$0x3] %v357_v58 }
  0xa7   :  { %v244_v5 = vld [vmem:[#allocation0 + $0x38] sm:$0xf]  ;;  %480 = vst [vmem:[%s712_s1 + $0x32] sm:$0x3] %v371_v59  ;;  %482 = vst [vmem:[%s712_s1 + $0x36] sm:$0x3] %v385_v60  ;;  %v217_v6 = vpack.c.bf16 %v502_v18, %v216_v3  ;;  %v231_v7 = vpack.c.bf16 %v502_v18, %v230_v4 }
  0xa8   :  { %v245_v8 = vpack.c.bf16 %v502_v18, %v244_v5  ;;  %v258_v9 = vld [vmem:[#allocation0 + $0x48] sm:$0xf]  ;;  %v272_v10 = vld [vmem:[#allocation0 + $0x58] sm:$0xf]  ;;  %484 = vst [vmem:[%s712_s1 + $0x3a] sm:$0x3] %v399_v0 }
  0xa9   :  { %v286_v11 = vld [vmem:[#allocation0 + $0x68] sm:$0xf]  ;;  %486 = vst [vmem:[%s712_s1 + $0x3e] sm:$0x3] %v413_v1  ;;  %456 = vst [vmem:[%s712_s1 + $0x2] sm:$0x3] %v204_v2  ;;  %v259_v12 = vpack.c.bf16 %v502_v18, %v258_v9  ;;  %v273_v13 = vpack.c.bf16 %v502_v18, %v272_v10 }
  0xaa   :  { %v287_v14 = vpack.c.bf16 %v502_v18, %v286_v11  ;;  %v300_v15 = vld [vmem:[#allocation0 + $0x78] sm:$0xf]  ;;  %458 = vst [vmem:[%s712_s1 + $0x6] sm:$0x3] %v217_v6  ;;  %460 = vst [vmem:[%s712_s1 + $0xa] sm:$0x3] %v231_v7 }
  0xab   :  { %462 = vst [vmem:[%s712_s1 + $0xe] sm:$0x3] %v245_v8  ;;  %v301_v16 = vpack.c.bf16 %v502_v18, %v300_v15  ;;  %464 = vst [vmem:[%s712_s1 + $0x12] sm:$0x3] %v259_v12 }
  0xac   :  { %466 = vst [vmem:[%s712_s1 + $0x16] sm:$0x3] %v273_v13  ;;  %468 = vst [vmem:[%s712_s1 + $0x1a] sm:$0x3] %v287_v14 }
  0xad   :  { %470 = vst [vmem:[%s712_s1 + $0x1e] sm:$0x3] %v301_v16 }

// kernel: _lambda_.19
= control target key start
LH: loop header
LB: loop body
LE: loop exit
PB: predicated region body
PF: predicated region fallthrough
CT: control target
= control target key end

     0   :  { %v552_v1 = vmov 0   ;;  %v389_v38 = vlaneseq  ;;  %s690_s1 = inlined_call_operand.vmem [shape: bf16[512,128], index: 1, kind: input, shape index: {}]   ;;  %s691_s0 = inlined_call_operand.vmem [shape: bf16[16,512], index: 0, kind: input, shape index: {}]   ;;  %s692_s2 = inlined_call_operand.vmem [shape: f32[16,1], index: 2, kind: input, shape index: {}]   ;;  %s693_s3 = inlined_call_operand.vmem [shape: f32[16,128], index: 3, kind: output, shape index: {}]  }
   0x1   :  { %v508_v0 = vld [vmem:[%s690_s1 + $0x40] sm:$0xff]   ;;  %507 = vset.pattern.permute.xlu0 %v552_v1  ;;  %v512_v5 = vld [vmem:[%s690_s1 + $0x48] sm:$0xff]   ;;  %v516_v9 = vld [vmem:[%s690_s1 + $0x50] sm:$0xff]  }
   0x2   :  { %v509_v2 = vld [vmem:[%s690_s1 + $0xc0] sm:$0xff]   ;;  %462 = vmatprep.subr.bf16.mxu0 %v508_v0  ;;  %v513_v6 = vld [vmem:[%s690_s1 + $0xc8] sm:$0xff]   ;;  %v517_v10 = vld [vmem:[%s690_s1 + $0xd0] sm:$0xff]   ;;  %v390_v43 = vshrl.u32 %v389_v38, 7 }
   0x3   :  { %v510_v3 = vld [vmem:[%s690_s1] sm:$0xff]   ;;  %484 = vmatprep.subr.bf16.mxu1 %v509_v2  ;;  %v514_v7 = vld [vmem:[%s690_s1 + $0x8] sm:$0xff]   ;;  %v518_v11 = vld [vmem:[%s690_s1 + $0x10] sm:$0xff]  }
   0x4   :  { %v511_v4 = vld [vmem:[%s690_s1 + $0x80] sm:$0xff]   ;;  %463 = vmatpush3.bf16.msra.mxu0 %v510_v3  ;;  %v515_v8 = vld [vmem:[%s690_s1 + $0x88] sm:$0xff]   ;;  %v519_v12 = vld [vmem:[%s690_s1 + $0x90] sm:$0xff]   ;;  %vm392_vm0 = vcmp.lt.s32.totalorder %v390_v43, 3 }
   0x5   :  { %485 = vmatpush3.bf16.msra.mxu1 %v511_v4  ;;  %464 = vmatprep.subr.bf16.mxu0 %v512_v5  ;;  %v520_v13 = vld [vmem:[%s690_s1 + $0x58] sm:$0xff]   ;;  %v524_v17 = vld [vmem:[%s690_s1 + $0x60] sm:$0xff]   ;;  %v528_v21 = vld [vmem:[%s690_s1 + $0x68] sm:$0xff]  }
   0x6   :  { %486 = vmatprep.subr.bf16.mxu1 %v513_v6  ;;  %v521_v14 = vld [vmem:[%s690_s1 + $0xd8] sm:$0xff]   ;;  %v525_v18 = vld [vmem:[%s690_s1 + $0xe0] sm:$0xff]   ;;  %v529_v22 = vld [vmem:[%s690_s1 + $0xe8] sm:$0xff]  }
   0x7   :  { %v522_v15 = vld [vmem:[%s690_s1 + $0x18] sm:$0xff]   ;;  %v526_v19 = vld [vmem:[%s690_s1 + $0x20] sm:$0xff]   ;;  %v530_v23 = vld [vmem:[%s690_s1 + $0x28] sm:$0xff]  }
   0x8   :  { %465 = vmatpush3.bf16.msra.mxu0 %v514_v7  ;;  %v523_v16 = vld [vmem:[%s690_s1 + $0x98] sm:$0xff]   ;;  %v527_v20 = vld [vmem:[%s690_s1 + $0xa0] sm:$0xff]   ;;  %v531_v24 = vld [vmem:[%s690_s1 + $0xa8] sm:$0xff]  }
   0x9   :  { %487 = vmatpush3.bf16.msra.mxu1 %v515_v8  ;;  %466 = vmatprep.subr.bf16.mxu0 %v516_v9  ;;  %v532_v25 = vld [vmem:[%s690_s1 + $0x70] sm:$0xff]   ;;  %v536_v29 = vld [vmem:[%s690_s1 + $0x78] sm:$0xff]   ;;  %v83_v37 = vld [vmem:[%s692_s2] sm:$0xff] }
   0xa   :  { %488 = vmatprep.subr.bf16.mxu1 %v517_v10  ;;  %v533_v26 = vld [vmem:[%s690_s1 + $0xf0] sm:$0xff]   ;;  %v537_v30 = vld [vmem:[%s690_s1 + $0xf8] sm:$0xff]   ;;  %87 = vperm.xlu0 %507, %v83_v37  }
   0xb   :  { %v534_v27 = vld [vmem:[%s690_s1 + $0x30] sm:$0xff]   ;;  %v538_v31 = vld [vmem:[%s690_s1 + $0x38] sm:$0xff]  }
   0xc   :  { %467 = vmatpush3.bf16.msra.mxu0 %v518_v11  ;;  %v535_v28 = vld [vmem:[%s690_s1 + $0xb0] sm:$0xff]   ;;  %v539_v32 = vld [vmem:[%s690_s1 + $0xb8] sm:$0xff]  }
   0xd   :  { %489 = vmatpush3.bf16.msra.mxu1 %v519_v12  ;;  %468 = vmatprep.subr.bf16.mxu0 %v520_v13  ;;  %v540_v33 = vld [vmem:[%s691_s0] ss:$16 sps:$4 sm:$0xff]   ;;  %v542_v34 = vld [vmem:[%s691_s0 + $0x4] ss:$16 sps:$4 sm:$0xff]   ;;  %v543_v35 = vld [vmem:[%s691_s0 + $0x8] ss:$16 sps:$4 sm:$0xff]  }
   0xe   :  { %490 = vmatprep.subr.bf16.mxu1 %v521_v14  ;;  %v545_v36 = vld [vmem:[%s691_s0 + $0xc] ss:$16 sps:$4 sm:$0xff]   ;;  %339 = vmatprep.mubr.bf16.mxu0 %v542_v34 }
   0xf   :  { %380 = vmatprep.mubr.bf16.mxu1 %v545_v36 }
  0x10   :  { %469 = vmatpush3.bf16.msra.mxu0 %v522_v15 }
  0x11   :  { %491 = vmatpush3.bf16.msra.mxu1 %v523_v16  ;;  %470 = vmatprep.subr.bf16.mxu0 %v524_v17 }
  0x12   :  { %492 = vmatprep.subr.bf16.mxu1 %v525_v18 }
  0x14   :  { %471 = vmatpush3.bf16.msra.mxu0 %v526_v19 }
  0x15   :  { %493 = vmatpush3.bf16.msra.mxu1 %v527_v20  ;;  %472 = vmatprep.subr.bf16.mxu0 %v528_v21 }
  0x16   :  { %494 = vmatprep.subr.bf16.mxu1 %v529_v22 }
  0x18   :  { %473 = vmatpush3.bf16.msra.mxu0 %v530_v23 }
  0x19   :  { %495 = vmatpush3.bf16.msra.mxu1 %v531_v24  ;;  %474 = vmatprep.subr.bf16.mxu0 %v532_v25 }
  0x1a   :  { %496 = vmatprep.subr.bf16.mxu1 %v533_v26 }
  0x1c   :  { %475 = vmatpush3.bf16.msra.mxu0 %v534_v27 }
  0x1d   :  { %497 = vmatpush3.bf16.msra.mxu1 %v535_v28  ;;  %476 = vmatprep.subr.bf16.mxu0 %v536_v29 }
  0x1e   :  { %498 = vmatprep.subr.bf16.mxu1 %v537_v30 }
  0x20   :  { %477 = vmatpush3.bf16.msra.mxu0 %v538_v31 }
  0x21   :  { %499 = vmatpush3.bf16.msra.mxu1 %v539_v32 }
  0x23   :  { %340 = vmatmul.mubr.bf16.vlgmr.msra.gmra.mrb[0].mxu0 %v540_v33 }
  0x24   :  { %381 = vmatmul.mubr.bf16.vlgmr.msra.gmra.mrb[0].mxu1 %v543_v35 }
  0x89   :  { %v88_v40 = vpop.permute.xlu0 %87 }
  0xf6   :  { %v478_v39 = vpop.f32.mrb[0].mxu0 }
  0xf7   :  { %v500_v41 = vpop.f32.mrb[0].mxu1  ;;  %v479_v42 = vpop.f32.mrb[1].mxu0 }
  0xf8   :  { %v480_v44 = vadd.f32 %v479_v42, %v478_v39  ;;  %v501_v45 = vpop.f32.mrb[1].mxu1  ;;  %v481_v46 = vpop.f32.mrb[2].mxu0 }
  0xf9   :  { %v502_v47 = vadd.f32 %v501_v45, %v500_v41  ;;  %v503_v48 = vpop.f32.mrb[2].mxu1  ;;  %v482_v49 = vpop.f32.mrb[3].mxu0 }
  0xfa   :  { %v342_v50 = vadd.f32 %v480_v44, %v88_v40  ;;  %v504_v51 = vpop.f32.mrb[3].mxu1 }
  0xfc   :  { %v383_v52 = vadd.f32 %v502_v47, %v342_v50 }
  0xfe   :  { %v394_v53 = vsel %vm392_vm0, %v383_v52, -1e+30 }
  0xff   :  { %v396_v54 = vmax.f32 %v394_v53, -1e+30 }
 0x101   :  { %v397_v55 = vrot.slane %v396_v54, 4 }
 0x103   :  { %v398_v56 = vmax.f32 %v396_v54, %v397_v55 }
 0x105   :  { %v399_v57 = vrot.slane %v398_v56, 2 }
 0x107   :  { %v400_v58 = vmax.f32 %v398_v56, %v399_v57 }
 0x109   :  { %v401_v59 = vrot.slane %v400_v58, 1 }
 0x10b   :  { %v402_v60 = vmax.f32 %v400_v58, %v401_v59 }
 0x10d   :  { %v403_v61 = vsub.f32 %v394_v53, %v402_v60  ;;  %v404_v62 = vsub.f32 -1e+30, %v402_v60 }
 0x10f   :  { %v405_v63 = vmul.f32 1.442695, %v403_v61  ;;  %v407_v0 = vmul.f32 1.442695, %v404_v62 }
 0x111   :  { %546 = vpow2.f32 %v405_v63 }
 0x112   :  { %548 = vpow2.f32 %v407_v0 }
 0x11b   :  { %v547_v1 = vpop.eup %546 }
 0x11c   :  { %v549_v2 = vpop.eup %548 }
 0x11d   :  { %v409_v3 = vadd.f32 %v549_v2, %v547_v1 }
 0x11f   :  { %v410_v4 = vrot.slane %v409_v3, 4 }
 0x121   :  { %v411_v5 = vadd.f32 %v410_v4, %v409_v3 }
 0x123   :  { %v412_v6 = vrot.slane %v411_v5, 2 }
 0x125   :  { %v413_v7 = vadd.f32 %v412_v6, %v411_v5 }
 0x127   :  { %v414_v8 = vrot.slane %v413_v7, 1 }
 0x129   :  { %v415_v9 = vadd.f32 %v414_v8, %v413_v7 }
 0x12b   :  { %550 = vlog2.f32 %v415_v9 }
 0x135   :  { %v551_v10 = vpop.eup %550 }
 0x136   :  { %v417_v11 = vmul.f32 0.6931472, %v551_v10 }
 0x138   :  { %v418_v12 = vsub.f32 %v403_v61, %v417_v11  ;;  %v419_v13 = vsub.f32 %v404_v62, %v417_v11 }
 0x13a   :  { %420 = vst [vmem:[%s693_s3] sm:$0xff] %v418_v12  ;;  %421 = vst [vmem:[%s693_s3 + $0x8] sm:$0xff] %v419_v13 }

// kernel: _lambda_.18
= control target key start
LH: loop header
LB: loop body
LE: loop exit
PB: predicated region body
PF: predicated region fallthrough
CT: control target
= control target key end

     0   :  { %v276_v1 = vmov 0   ;;  %s368_s1 = inlined_call_operand.vmem [shape: bf16[128,128], index: 1, kind: input, shape index: {}]   ;;  %s369_s0 = inlined_call_operand.vmem [shape: bf16[32,128], index: 0, kind: input, shape index: {}]   ;;  %s370_s2 = inlined_call_operand.vmem [shape: f32[32,1], index: 2, kind: input, shape index: {}]   ;;  %s371_s3 = inlined_call_operand.vmem [shape: f32[32,1], index: 3, kind: input, shape index: {}]   ;;  %s372_s4 = inlined_call_operand.vmem [shape: f32[32,128], index: 4, kind: output, shape index: {}]  }
   0x1   :  { %v266_v0 = vld [vmem:[%s368_s1] sm:$0xff]   ;;  %265 = vset.pattern.permute.xlu1 %v276_v1  ;;  %264 = vset.pattern.permute.xlu0 %v276_v1  ;;  %v267_v2 = vld [vmem:[%s368_s1 + $0x8] sm:$0xff]   ;;  %v268_v3 = vld [vmem:[%s368_s1 + $0x10] sm:$0xff]  }
   0x2   :  { %243 = vmatprep.subr.bf16.mxu0 %v266_v0  ;;  %v269_v4 = vld [vmem:[%s368_s1 + $0x18] sm:$0xff]   ;;  %v274_v5 = vld [vmem:[%s369_s0] sm:$0xff]   ;;  %v161_v6 = vld [vmem:[%s370_s2 + $0x10] sm:$0xff] }
   0x3   :  { %244 = vmatpush3.bf16.msra.mxu0 %v266_v0  ;;  %259 = vmatprep.mubr.bf16.mxu0 %v274_v5  ;;  %v159_v7 = vld [vmem:[%s370_s2] sm:$0xff]  ;;  %v162_v9 = vld [vmem:[%s370_s2 + $0x18] sm:$0xff]  ;;  %v160_v10 = vld [vmem:[%s370_s2 + $0x8] sm:$0xff] }
   0x4   :  { %245 = vmatprep.subr.bf16.mxu0 %v267_v2  ;;  %175 = vperm.xlu1 %265, %v161_v6   ;;  %v270_v8 = vld [vmem:[%s368_s1 + $0x20] sm:$0xff]   ;;  %v271_v11 = vld [vmem:[%s368_s1 + $0x28] sm:$0xff]   ;;  %v272_v14 = vld [vmem:[%s368_s1 + $0x30] sm:$0xff]  }
   0x5   :  { %165 = vperm.xlu0 %264, %v159_v7   ;;  %v188_v12 = vld [vmem:[%s371_s3 + $0x8] sm:$0xff]  ;;  %v187_v13 = vld [vmem:[%s371_s3] sm:$0xff]  ;;  %v190_v15 = vld [vmem:[%s371_s3 + $0x18] sm:$0xff] }
   0x6   :  { %v189_v16 = vld [vmem:[%s371_s3 + $0x10] sm:$0xff]  ;;  %v273_v17 = vld [vmem:[%s368_s1 + $0x38] sm:$0xff]   ;;  %v275_v18 = vld [vmem:[%s369_s0 + $0x8] sm:$0xff]  }
   0x7   :  { %246 = vmatpush3.bf16.msra.mxu0 %v267_v2 }
   0x8   :  { %247 = vmatprep.subr.bf16.mxu0 %v268_v3  ;;  %180 = vperm.xlu1 %265, %v162_v9  }
   0x9   :  { %170 = vperm.xlu0 %264, %v160_v10  }
   0xb   :  { %248 = vmatpush3.bf16.msra.mxu0 %v268_v3 }
   0xc   :  { %249 = vmatprep.subr.bf16.mxu0 %v269_v4  ;;  %198 = vperm.xlu1 %265, %v188_v12  }
   0xd   :  { %193 = vperm.xlu0 %264, %v187_v13  }
   0xf   :  { %250 = vmatpush3.bf16.msra.mxu0 %v269_v4 }
  0x10   :  { %251 = vmatprep.subr.bf16.mxu0 %v270_v8  ;;  %208 = vperm.xlu1 %265, %v190_v15  }
  0x11   :  { %203 = vperm.xlu0 %264, %v189_v16  }
  0x13   :  { %252 = vmatpush3.bf16.msra.mxu0 %v270_v8 }
  0x14   :  { %253 = vmatprep.subr.bf16.mxu0 %v271_v11 }
  0x17   :  { %254 = vmatpush3.bf16.msra.mxu0 %v271_v11 }
  0x18   :  { %255 = vmatprep.subr.bf16.mxu0 %v272_v14 }
  0x1b   :  { %256 = vmatpush3.bf16.msra.mxu0 %v272_v14 }
  0x1c   :  { %257 = vmatprep.subr.bf16.mxu0 %v273_v17 }
  0x1f   :  { %258 = vmatpush3.bf16.msra.mxu0 %v273_v17 }
  0x22   :  { %260 = vmatmul.mubr.bf16.vlgmr.msra.gmra.mrb[0].mxu0 %v275_v18 }
  0x83   :  { %v176_v20 = vpop.permute.xlu1 %175 }
  0x84   :  { %v166_v19 = vpop.permute.xlu0 %165 }
  0x87   :  { %v181_v22 = vpop.permute.xlu1 %180 }
  0x88   :  { %v171_v21 = vpop.permute.xlu0 %170 }
  0x8b   :  { %v199_v25 = vpop.permute.xlu1 %198 }
  0x8c   :  { %v194_v23 = vpop.permute.xlu0 %193 }
  0x8f   :  { %v209_v42 = vpop.permute.xlu1 %208 }
  0x90   :  { %v204_v36 = vpop.permute.xlu0 %203 }
  0xf5   :  { %v261_v24 = vpop.f32.mrb[0].mxu0 }
  0xf6   :  { %vm149_vm0 = vcmp.ge.f32.partialorder %v261_v24, 0.0  ;;  %v153_v26 = vmul.f32 0.01, %v261_v24  ;;  %v132_v27 = vpop.f32.mrb[1].mxu0 }
  0xf7   :  { %vm147_vm1 = vcmp.ge.f32.partialorder %v132_v27, 0.0  ;;  %v151_v28 = vmul.f32 0.01, %v132_v27  ;;  %v262_v29 = vpop.f32.mrb[2].mxu0 }
  0xf8   :  { %v157_v30 = vsel %vm149_vm0, %v261_v24, %v153_v26  ;;  %vm150_vm2 = vcmp.ge.f32.partialorder %v262_v29, 0.0  ;;  %v154_v31 = vmul.f32 0.01, %v262_v29  ;;  %v135_v32 = vpop.f32.mrb[3].mxu0 }
  0xf9   :  { %v185_v33 = vmul.f32 %v176_v20, %v157_v30  ;;  %v155_v34 = vsel %vm147_vm1, %v132_v27, %v151_v28  ;;  %vm148_vm3 = vcmp.ge.f32.partialorder %v135_v32, 0.0  ;;  %v152_v35 = vmul.f32 0.01, %v135_v32 }
  0xfa   :  { %v183_v37 = vmul.f32 %v166_v19, %v155_v34  ;;  %v158_v38 = vsel %vm150_vm2, %v262_v29, %v154_v31 }
  0xfb   :  { %v213_v39 = vadd.f32 %v204_v36, %v185_v33  ;;  %v186_v40 = vmul.f32 %v181_v22, %v158_v38  ;;  %v156_v41 = vsel %vm148_vm3, %v135_v32, %v152_v35 }
  0xfc   :  { %v211_v43 = vadd.f32 %v194_v23, %v183_v37  ;;  %v184_v44 = vmul.f32 %v171_v21, %v156_v41 }
  0xfd   :  { %217 = vst [vmem:[%s372_s4 + $0x10] sm:$0xff] %v213_v39  ;;  %v214_v45 = vadd.f32 %v209_v42, %v186_v40 }
  0xfe   :  { %215 = vst [vmem:[%s372_s4] sm:$0xff] %v211_v43  ;;  %v212_v46 = vadd.f32 %v199_v25, %v184_v44 }
  0xff   :  { %218 = vst [vmem:[%s372_s4 + $0x18] sm:$0xff] %v214_v45 }
 0x100   :  { %216 = vst [vmem:[%s372_s4 + $0x8] sm:$0xff] %v212_v46 }

</bundles_post_ra>
